<compile_context>
chip_gen: v6e
topology: v6e:2x2x1
jax: 0.10.0
libtpu: 0.0.40
codegen_flags: <defaults>
</compile_context>

<pallas_src>
import functools

import jax
import jax.numpy as jnp
from jax.experimental import pallas as pl
from jax.experimental.pallas import tpu as pltpu

# ----------------------------- config ---------------------------------------
IMG = 16          # img_shape
VOL = 8           # vol_shape
NPTS = 8          # n_pts_per_ray
PE = 2            # positional-encoding frequencies
SH = 0
OUT_CH = 1
NVIEWS = 2
HID = 32          # hidden width of the per-voxel MLP stand-ins
NPIX = IMG * IMG  # 256
NVOX = VOL ** 3   # 512


# ----------------------------- fused Pallas kernel --------------------------
def _fused_kernel(figs_ref, bias_ref, wc_ref, wcol_ref, zsel_ref,
                  hpe_ref, wxc_ref, wxd_ref, wxm_ref, w2_ref, b2_ref,
                  out_ref, *, n_views, n_batch):
    """Single-step fused forward: clarity -> trilinear sample -> CT mean ->
    density/mixture/refiner MLPs.  Everything stays in VMEM."""

    # ---- per-batch clarity + trilinear sampling ------------------------------
    samples = []
    for b in range(n_batch):                      # static B=3 unrolled loop
        fig = figs_ref[b]                                          # (1, NPIX)
        z = wc_ref[...] * fig + bias_ref[b]                        # (NPTS, NPIX)
        clarity = z * (1.0 / (1.0 + jnp.exp(-z)))                  # SiLU, f32
        clarity_bf = clarity.astype(jnp.bfloat16)                  # MXU operand

        s = jnp.zeros((1, NVOX), jnp.float32)
        for dz in range(2):
            # pixel gather + weights as one bf16 MXU matmul per z-slab
            pz = jnp.dot(clarity_bf, wcol_ref[b, dz],
                         preferred_element_type=jnp.float32)       # (NPTS, NVOX)
            # z-select: one-hot over the 8 ray points (tiny sublane reduce)
            s = s + jnp.sum(zsel_ref[b, dz] * pz, axis=0, keepdims=True)
        samples.append(s)                                          # (1, NVOX)

    # ---- CT mean over the first n_views batches (explicit, no revisit hack) --
    ct_mean = samples[0]
    for b in range(1, n_views):
        ct_mean = ct_mean + samples[b]
    ct_mean = ct_mean * (1.0 / n_views)
    clar_list = [ct_mean] + samples[n_views:]                      # length B2

    # ---- density / mixture / refiner stand-ins -------------------------------
    # First-layer pe-part (wpe @ pebasis + b1) is precomputed in glue (hpe_ref);
    # only the rank-1 clarity/density/mixture columns are applied here.
    def layer(i, extras):
        h = hpe_ref[i]                                             # (HID, NVOX)
        for e in extras:
            h = h + e
        h = jnp.where(h > 0.0, h, 0.01 * h)                        # LeakyReLU(0.01)
        return jnp.dot(w2_ref[i], h,
                       preferred_element_type=jnp.float32) + b2_ref[i]  # (1, NVOX)

    for j, clar in enumerate(clar_list):
        dens = layer(0, [wxc_ref[0] * clar])
        mixt = layer(1, [wxc_ref[1] * clar, wxd_ref[1] * dens])
        shc = layer(2, [wxc_ref[2] * clar, wxd_ref[2] * dens, wxm_ref[2] * mixt])
        out_ref[j] = shc                                           # lane-dense


def fused_renderer_pallas(figs, bias, wc, wcol, zsel, hpe,
                          wxc, wxd, wxm, w2, b2, n_views):
    """One fused pallas_call, single grid step (whole problem fits in VMEM)."""
    B = figs.shape[0]
    B2 = B - n_views + 1

    def cmap(nd):
        return lambda i: (0,) * nd

    kernel = functools.partial(_fused_kernel, n_views=n_views, n_batch=B)

    return pl.pallas_call(
        kernel,
        out_shape=jax.ShapeDtypeStruct((B2, 1, NVOX), jnp.float32),
        grid_spec=pltpu.PrefetchScalarGridSpec(
            num_scalar_prefetch=0,
            grid=(1,),
            in_specs=[
                pl.BlockSpec((B, 1, NPIX), cmap(3)),        # figures (flattened)
                pl.BlockSpec((B, NPTS, 1), cmap(3)),        # clarity bias + emb
                pl.BlockSpec((NPTS, 1), cmap(2)),           # clarity weight
                pl.BlockSpec((B, 2, NPIX, NVOX), cmap(4)),  # bf16 scatter matrices
                pl.BlockSpec((B, 2, NPTS, NVOX), cmap(4)),  # z one-hot selectors
                pl.BlockSpec((3, HID, NVOX), cmap(3)),      # H_pe = wpe@peb + b1
                pl.BlockSpec((3, HID, 1), cmap(3)),         # W1: clarity column
                pl.BlockSpec((3, HID, 1), cmap(3)),         # W1: density column
                pl.BlockSpec((3, HID, 1), cmap(3)),         # W1: mixture column
                pl.BlockSpec((3, 1, HID), cmap(3)),         # W2
                pl.BlockSpec((3, 1, 1), cmap(3)),           # b2
            ],
            out_specs=pl.BlockSpec((B2, 1, NVOX), cmap(3)),
        ),
        compiler_params=pltpu.CompilerParams(
            dimension_semantics=("arbitrary",)),
        cost_estimate=pl.CostEstimate(
            flops=14_000_000, transcendentals=8_192, bytes_accessed=2_000_000),
    )(figs, bias, wc, wcol, zsel, hpe, wxc, wxd, wxm, w2, b2)


# ----------------------------- glue: cameras / encodings --------------------
def make_pebasis(vol, pe):
    """nerfstudio NeRFEncoding(num_freq=pe, min_exp=0, max_exp=8) of zyx grid."""
    vs = jnp.linspace(-1.0, 1.0, vol)
    zg, yg, xg = jnp.meshgrid(vs, vs, vs, indexing="ij")
    zyx = jnp.stack([zg, yg, xg], axis=-1).reshape(-1, 3)
    freqs = 2.0 ** jnp.linspace(0.0, 8.0, pe)
    scaled = (2.0 * jnp.pi * zyx)[..., None] * freqs              # (N, 3, pe)
    scaled = scaled.reshape(-1, 3 * pe)
    enc = jnp.sin(jnp.concatenate([scaled, scaled + jnp.pi / 2.0], axis=-1))
    return enc.reshape(vol, vol, vol, 6 * pe).transpose(3, 0, 1, 2)  # (6*pe, V,V,V)


def camera_transform_points_ndc(azim, elev, dist=10.0, fov_deg=16.0,
                                znear=8.0, zfar=12.0):
    """pytorch3d: look_at_view_transform(dist, elev*90, azim*180) +
    FoVPerspectiveCameras(fov=16, znear=8, zfar=12).transform_points_ndc."""
    ndc_lin = jnp.linspace(-1.5, 1.5, VOL)
    xg, yg, zg = jnp.meshgrid(ndc_lin, ndc_lin, ndc_lin, indexing="ij")
    pts = jnp.stack([xg, yg, zg], axis=-1).reshape(-1, 3)          # (P, 3) world

    elev_r = jnp.deg2rad(elev * 90.0)
    azim_r = jnp.deg2rad(azim * 180.0)
    cam = jnp.stack([dist * jnp.cos(elev_r) * jnp.sin(azim_r),
                     dist * jnp.sin(elev_r),
                     dist * jnp.cos(elev_r) * jnp.cos(azim_r)], axis=-1)  # (B,3)

    def _norm(v):
        return v / jnp.maximum(jnp.linalg.norm(v, axis=-1, keepdims=True), 1e-5)

    up = jnp.broadcast_to(jnp.array([0.0, 1.0, 0.0], jnp.float32), cam.shape)
    z_axis = _norm(-cam)
    x_axis = _norm(jnp.cross(up, z_axis))
    y_axis = _norm(jnp.cross(z_axis, x_axis))
    # TODO(synk): degenerate "camera above origin" branch of look_at_rotation omitted.
    R = jnp.stack([x_axis, y_axis, z_axis], axis=-1)               # (B,3,3)
    T = -jnp.einsum("bij,bi->bj", R, cam)                          # (B,3)

    pv = jnp.einsum("pi,bij->bpj", pts, R) + T[:, None, :]         # world -> view
    s = 1.0 / jnp.tan(jnp.deg2rad(fov_deg) / 2.0)
    f1 = zfar / (zfar - znear)
    f2 = -(zfar * znear) / (zfar - znear)
    xv, yv, zv = pv[..., 0], pv[..., 1], pv[..., 2]
    x_ndc = s * xv / zv
    y_ndc = s * yv / zv
    z_ndc = (f1 * zv + f2) / zv
    return jnp.stack([x_ndc, y_ndc, z_ndc], axis=-1)               # (B, P, 3)


def trilinear_scatter_matrices(grid_pts, D, H, W):
    """F.grid_sample(mode='bilinear', padding_mode='zeros', align_corners=True)
    precomputed as per-batch, per-z-slab dense scatter matrices:
      wcol[b, dz, p, v] = sum of the 4 (dy,dx) tap weights mapping voxel v onto
                          pixel p at z-slab floor(z)+dz   (bf16 MXU operand)
      zsel[b, dz, z, v] = one-hot of the clamped z index for that slab  (f32)
    No dense (NVOX, D*H*W) matrix, no scatter op — built from one_hot compares."""
    gx, gy, gz = grid_pts[..., 0], grid_pts[..., 1], grid_pts[..., 2]
    ix = (gx + 1.0) * 0.5 * (W - 1)
    iy = (gy + 1.0) * 0.5 * (H - 1)
    iz = (gz + 1.0) * 0.5 * (D - 1)
    x0, y0, z0 = jnp.floor(ix), jnp.floor(iy), jnp.floor(iz)
    fx, fy, fz = ix - x0, iy - y0, iz - z0
    B, P = gx.shape

    wcol_list, zsel_list = [], []
    for dz in (0, 1):
        zi = z0 + dz
        z_valid = (zi >= 0) & (zi < D)
        zi_c = jnp.clip(zi, 0, D - 1).astype(jnp.int32)
        zsel_list.append(jax.nn.one_hot(zi_c, D, dtype=jnp.float32))   # (B, P, D)

        acc = jnp.zeros((B, P, H * W), jnp.float32)
        for dy in (0, 1):
            for dx in (0, 1):
                xi, yi = x0 + dx, y0 + dy
                w = ((fx if dx else 1.0 - fx)
                     * (fy if dy else 1.0 - fy)
                     * (fz if dz else 1.0 - fz))
                valid = z_valid & (xi >= 0) & (xi < W) & (yi >= 0) & (yi < H)
                xi_c = jnp.clip(xi, 0, W - 1).astype(jnp.int32)
                yi_c = jnp.clip(yi, 0, H - 1).astype(jnp.int32)
                pix = yi_c * W + xi_c
                w = jnp.where(valid, w, 0.0).astype(jnp.float32)
                acc = acc + jax.nn.one_hot(pix, H * W, dtype=jnp.float32) * w[..., None]
        wcol_list.append(acc)                                          # (B, P, HW)

    wcol = jnp.stack(wcol_list, axis=1).transpose(0, 1, 3, 2)          # (B,2,HW,P)
    zsel = jnp.stack(zsel_list, axis=1).transpose(0, 1, 3, 2)          # (B,2,D,P)
    return wcol.astype(jnp.bfloat16), zsel


def timestep_embedding(azim, elev):
    """Deterministic stand-in for UNet2DModel timestep + class ('timestep') embeddings."""
    c = jnp.arange(NPTS, dtype=jnp.float32) + 1.0
    return (jnp.sin((azim * 900.0)[:, None] * c[None, :] * 0.01)
            + jnp.cos((elev * 1800.0)[:, None] * c[None, :] * 0.01))


# ----------------------------- parameters -----------------------------------
def init_params(key):
    ks = jax.random.split(key, 8)
    # fan-in per net: density 12+1, mixture 12+2, refiner 12+3
    scale = (1.0 / jnp.sqrt(jnp.array([13.0, 14.0, 15.0])))[:, None, None]
    return {
        "clarity_w": 0.1 * jax.random.normal(ks[0], (NPTS, 1), jnp.float32),
        "clarity_b": 0.01 * jax.random.normal(ks[1], (NPTS, 1), jnp.float32),
        "wpe": scale * jax.random.normal(ks[2], (3, HID, 6 * PE), jnp.float32),
        "wxc": scale * jax.random.normal(ks[3], (3, HID, 1), jnp.float32),
        "wxd": scale * jax.random.normal(ks[4], (3, HID, 1), jnp.float32),
        "wxm": scale * jax.random.normal(ks[5], (3, HID, 1), jnp.float32),
        "b1": jnp.zeros((3, HID, 1), jnp.float32),
        "w2": jax.random.normal(ks[6], (3, 1, HID), jnp.float32) / jnp.sqrt(HID),
        "b2": jnp.zeros((3, 1, 1), jnp.float32),
    }


# ----------------------------- forward --------------------------------------
def grid_nerv_forward(params, pebasis, figures, azim, elev, n_views=2):
    B = figures.shape[0]
    B2 = B - n_views + 1

    # cheap elementwise / one_hot glue (no scatter, no giant matrices)
    figs = figures.reshape(B, 1, NPIX)
    emb = timestep_embedding(azim, elev).reshape(B, NPTS, 1)
    bias_full = params["clarity_b"][None] + emb                      # (B, NPTS, 1)

    ndc_points = camera_transform_points_ndc(azim, elev)             # (B, NVOX, 3)
    wcol, zsel = trilinear_scatter_matrices(ndc_points, NPTS, IMG, IMG)

    # hoist the grid-invariant first-layer pe-part: (3, HID, NVOX) ~ 196 KB
    peb_flat = pebasis.reshape(6 * PE, NVOX)
    hpe = jnp.einsum("ihc,cv->ihv", params["wpe"], peb_flat) + params["b1"]

    # fused Pallas kernel: clarity -> sample -> CT mean -> 3 MLPs
    shcoeff = fused_renderer_pallas(
        figs, bias_full, params["clarity_w"], wcol, zsel, hpe,
        params["wxc"], params["wxd"], params["wxm"],
        params["w2"], params["b2"], n_views)                         # (B2, 1, NVOX)
    vols = shcoeff.reshape(B2, OUT_CH, VOL, VOL, VOL)

    # sh == 0 -> shcomps = shcoeff; split / repeat CT / concat (tiny, in glue)
    volumes_ct = jnp.repeat(vols[:1], n_views, axis=0)
    return jnp.concatenate([volumes_ct, vols[1:]], axis=0)           # (B, OUT_CH, V,V,V)


# ----------------------------- main ------------------------------------------
if __name__ == "__main__":
    key = jax.random.PRNGKey(0)
    k_fig, k_az, k_el, k_par = jax.random.split(key, 4)

    B = NVIEWS + 1  # 2 CT views + 1 XR view (the batch layout the forward expects)
    figures = jax.random.normal(k_fig, (B, 1, IMG, IMG), jnp.float32)
    azim = jax.random.uniform(k_az, (B,), jnp.float32, minval=-1.0, maxval=1.0)
    elev = jax.random.uniform(k_el, (B,), jnp.float32, minval=-1.0, maxval=1.0)

    params = init_params(k_par)
    pebasis = make_pebasis(VOL, PE)

    fwd = jax.jit(functools.partial(grid_nerv_forward, n_views=NVIEWS))
    volumes = fwd(params, pebasis, figures, azim, elev)
    jax.block_until_ready(volumes)

    assert volumes.shape == (B, OUT_CH, VOL, VOL, VOL), volumes.shape
    assert volumes.dtype == jnp.float32
    assert bool(jnp.all(jnp.isfinite(volumes)))
    print("KERNEL_OK")
</pallas_src>

<mosaic_0001>
module attributes {stable_mosaic.version = 11 : i64} {
  func.func @_fused_kernel(%arg0: i32, %arg1: memref<3x1x256xf32, #tpu.memory_space<vmem>>, %arg2: memref<3x8x1xf32, #tpu.memory_space<vmem>>, %arg3: memref<8x1xf32, #tpu.memory_space<vmem>>, %arg4: memref<3x2x256x512xbf16, #tpu.memory_space<vmem>>, %arg5: memref<3x2x8x512xf32, #tpu.memory_space<vmem>>, %arg6: memref<3x32x512xf32, #tpu.memory_space<vmem>>, %arg7: memref<3x32x1xf32, #tpu.memory_space<vmem>>, %arg8: memref<3x32x1xf32, #tpu.memory_space<vmem>>, %arg9: memref<3x32x1xf32, #tpu.memory_space<vmem>>, %arg10: memref<3x1x32xf32, #tpu.memory_space<vmem>>, %arg11: memref<3x1x1xf32, #tpu.memory_space<vmem>>, %arg12: memref<2x1x512xf32, #tpu.memory_space<vmem>>) attributes {dimension_semantics = [#tpu.dimension_semantics<arbitrary>], iteration_bounds = array<i64: 1>, scalar_prefetch = 0 : i64, scratch_operands = 0 : i64, tpu.core_type = #tpu.core_type<tc>, window_params = [{pipeline_mode = #tpu.pipeline_mode<synchronous>, transform_indices = @transform_0, window_bounds = array<i64: 3, 1, 256>}, {pipeline_mode = #tpu.pipeline_mode<synchronous>, transform_indices = @transform_1, window_bounds = array<i64: 3, 8, 1>}, {pipeline_mode = #tpu.pipeline_mode<synchronous>, transform_indices = @transform_2, window_bounds = array<i64: 8, 1>}, {pipeline_mode = #tpu.pipeline_mode<synchronous>, transform_indices = @transform_3, window_bounds = array<i64: 3, 2, 256, 512>}, {pipeline_mode = #tpu.pipeline_mode<synchronous>, transform_indices = @transform_4, window_bounds = array<i64: 3, 2, 8, 512>}, {pipeline_mode = #tpu.pipeline_mode<synchronous>, transform_indices = @transform_5, window_bounds = array<i64: 3, 32, 512>}, {pipeline_mode = #tpu.pipeline_mode<synchronous>, transform_indices = @transform_6, window_bounds = array<i64: 3, 32, 1>}, {pipeline_mode = #tpu.pipeline_mode<synchronous>, transform_indices = @transform_7, window_bounds = array<i64: 3, 32, 1>}, {pipeline_mode = #tpu.pipeline_mode<synchronous>, transform_indices = @transform_8, window_bounds = array<i64: 3, 32, 1>}, {pipeline_mode = #tpu.pipeline_mode<synchronous>, transform_indices = @transform_9, window_bounds = array<i64: 3, 1, 32>}, {pipeline_mode = #tpu.pipeline_mode<synchronous>, transform_indices = @transform_10, window_bounds = array<i64: 3, 1, 1>}, {pipeline_mode = #tpu.pipeline_mode<synchronous>, transform_indices = @transform_11, window_bounds = array<i64: 2, 1, 512>}]} {
    %c0 = arith.constant 0 : index
    %c0_0 = arith.constant 0 : index
    %c0_1 = arith.constant 0 : index
    %0 = vector.load %arg1[%c0, %c0_0, %c0_1] : memref<3x1x256xf32, #tpu.memory_space<vmem>>, vector<1x1x256xf32>
    %1 = vector.shape_cast %0 : vector<1x1x256xf32> to vector<1x256xf32>
    %c0_2 = arith.constant 0 : index
    %c0_3 = arith.constant 0 : index
    %2 = vector.load %arg3[%c0_2, %c0_3] : memref<8x1xf32, #tpu.memory_space<vmem>>, vector<8x1xf32>
    %3 = vector.broadcast %2 : vector<8x1xf32> to vector<8x256xf32>
    %4 = vector.broadcast %1 : vector<1x256xf32> to vector<8x256xf32>
    %5 = arith.mulf %3, %4 : vector<8x256xf32>
    %c0_4 = arith.constant 0 : index
    %c0_5 = arith.constant 0 : index
    %c0_6 = arith.constant 0 : index
    %6 = vector.load %arg2[%c0_4, %c0_5, %c0_6] : memref<3x8x1xf32, #tpu.memory_space<vmem>>, vector<1x8x1xf32>
    %7 = vector.shape_cast %6 : vector<1x8x1xf32> to vector<8x1xf32>
    %8 = vector.broadcast %7 : vector<8x1xf32> to vector<8x256xf32>
    %9 = arith.addf %5, %8 : vector<8x256xf32>
    %cst = arith.constant 0.000000e+00 : f32
    %10 = vector.broadcast %cst : f32 to vector<8x256xf32>
    %11 = arith.subf %10, %9 : vector<8x256xf32>
    %12 = math.exp %11 : vector<8x256xf32>
    %cst_7 = arith.constant 1.000000e+00 : f32
    %13 = vector.broadcast %cst_7 : f32 to vector<8x256xf32>
    %14 = arith.addf %13, %12 : vector<8x256xf32>
    %cst_8 = arith.constant 1.000000e+00 : f32
    %15 = vector.broadcast %cst_8 : f32 to vector<8x256xf32>
    %16 = arith.divf %15, %14 : vector<8x256xf32>
    %17 = arith.mulf %9, %16 : vector<8x256xf32>
    %18 = arith.truncf %17 : vector<8x256xf32> to vector<8x256xbf16>
    %cst_9 = arith.constant 0.000000e+00 : f32
    %19 = vector.broadcast %cst_9 : f32 to vector<1x512xf32>
    %c0_10 = arith.constant 0 : index
    %c0_11 = arith.constant 0 : index
    %c0_12 = arith.constant 0 : index
    %c0_13 = arith.constant 0 : index
    %20 = vector.load %arg4[%c0_10, %c0_11, %c0_12, %c0_13] : memref<3x2x256x512xbf16, #tpu.memory_space<vmem>>, vector<1x1x256x512xbf16>
    %21 = vector.shape_cast %20 : vector<1x1x256x512xbf16> to vector<256x512xbf16>
    %cst_14 = arith.constant dense<0.000000e+00> : vector<8x512xf32>
    %22 = tpu.matmul %18, %21, %cst_14 {dimension_numbers = #tpu.dot_dimension_numbers<[1], [0], [0], [1], [0, 0, 1, 1], [], []>} : vector<8x256xbf16>, vector<256x512xbf16>, vector<8x512xf32> -> vector<8x512xf32>
    %c0_15 = arith.constant 0 : index
    %c0_16 = arith.constant 0 : index
    %c0_17 = arith.constant 0 : index
    %c0_18 = arith.constant 0 : index
    %23 = vector.load %arg5[%c0_15, %c0_16, %c0_17, %c0_18] : memref<3x2x8x512xf32, #tpu.memory_space<vmem>>, vector<1x1x8x512xf32>
    %24 = vector.shape_cast %23 : vector<1x1x8x512xf32> to vector<8x512xf32>
    %25 = arith.mulf %24, %22 : vector<8x512xf32>
    %cst_19 = arith.constant dense<0.000000e+00> : vector<512xf32>
    %26 = vector.multi_reduction <add>, %25, %cst_19 [0] : vector<8x512xf32> to vector<512xf32>
    %27 = vector.shape_cast %26 : vector<512xf32> to vector<1x512xf32>
    %28 = arith.addf %19, %27 : vector<1x512xf32>
    %c0_20 = arith.constant 0 : index
    %c1 = arith.constant 1 : index
    %c0_21 = arith.constant 0 : index
    %c0_22 = arith.constant 0 : index
    %29 = vector.load %arg4[%c0_20, %c1, %c0_21, %c0_22] : memref<3x2x256x512xbf16, #tpu.memory_space<vmem>>, vector<1x1x256x512xbf16>
    %30 = vector.shape_cast %29 : vector<1x1x256x512xbf16> to vector<256x512xbf16>
    %cst_23 = arith.constant dense<0.000000e+00> : vector<8x512xf32>
    %31 = tpu.matmul %18, %30, %cst_23 {dimension_numbers = #tpu.dot_dimension_numbers<[1], [0], [0], [1], [0, 0, 1, 1], [], []>} : vector<8x256xbf16>, vector<256x512xbf16>, vector<8x512xf32> -> vector<8x512xf32>
    %c0_24 = arith.constant 0 : index
    %c1_25 = arith.constant 1 : index
    %c0_26 = arith.constant 0 : index
    %c0_27 = arith.constant 0 : index
    %32 = vector.load %arg5[%c0_24, %c1_25, %c0_26, %c0_27] : memref<3x2x8x512xf32, #tpu.memory_space<vmem>>, vector<1x1x8x512xf32>
    %33 = vector.shape_cast %32 : vector<1x1x8x512xf32> to vector<8x512xf32>
    %34 = arith.mulf %33, %31 : vector<8x512xf32>
    %cst_28 = arith.constant dense<0.000000e+00> : vector<512xf32>
    %35 = vector.multi_reduction <add>, %34, %cst_28 [0] : vector<8x512xf32> to vector<512xf32>
    %36 = vector.shape_cast %35 : vector<512xf32> to vector<1x512xf32>
    %37 = arith.addf %28, %36 : vector<1x512xf32>
    %c1_29 = arith.constant 1 : index
    %c0_30 = arith.constant 0 : index
    %c0_31 = arith.constant 0 : index
    %38 = vector.load %arg1[%c1_29, %c0_30, %c0_31] : memref<3x1x256xf32, #tpu.memory_space<vmem>>, vector<1x1x256xf32>
    %39 = vector.shape_cast %38 : vector<1x1x256xf32> to vector<1x256xf32>
    %c0_32 = arith.constant 0 : index
    %c0_33 = arith.constant 0 : index
    %40 = vector.load %arg3[%c0_32, %c0_33] : memref<8x1xf32, #tpu.memory_space<vmem>>, vector<8x1xf32>
    %41 = vector.broadcast %40 : vector<8x1xf32> to vector<8x256xf32>
    %42 = vector.broadcast %39 : vector<1x256xf32> to vector<8x256xf32>
    %43 = arith.mulf %41, %42 : vector<8x256xf32>
    %c1_34 = arith.constant 1 : index
    %c0_35 = arith.constant 0 : index
    %c0_36 = arith.constant 0 : index
    %44 = vector.load %arg2[%c1_34, %c0_35, %c0_36] : memref<3x8x1xf32, #tpu.memory_space<vmem>>, vector<1x8x1xf32>
    %45 = vector.shape_cast %44 : vector<1x8x1xf32> to vector<8x1xf32>
    %46 = vector.broadcast %45 : vector<8x1xf32> to vector<8x256xf32>
    %47 = arith.addf %43, %46 : vector<8x256xf32>
    %cst_37 = arith.constant 0.000000e+00 : f32
    %48 = vector.broadcast %cst_37 : f32 to vector<8x256xf32>
    %49 = arith.subf %48, %47 : vector<8x256xf32>
    %50 = math.exp %49 : vector<8x256xf32>
    %cst_38 = arith.constant 1.000000e+00 : f32
    %51 = vector.broadcast %cst_38 : f32 to vector<8x256xf32>
    %52 = arith.addf %51, %50 : vector<8x256xf32>
    %cst_39 = arith.constant 1.000000e+00 : f32
    %53 = vector.broadcast %cst_39 : f32 to vector<8x256xf32>
    %54 = arith.divf %53, %52 : vector<8x256xf32>
    %55 = arith.mulf %47, %54 : vector<8x256xf32>
    %56 = arith.truncf %55 : vector<8x256xf32> to vector<8x256xbf16>
    %cst_40 = arith.constant 0.000000e+00 : f32
    %57 = vector.broadcast %cst_40 : f32 to vector<1x512xf32>
    %c1_41 = arith.constant 1 : index
    %c0_42 = arith.constant 0 : index
    %c0_43 = arith.constant 0 : index
    %c0_44 = arith.constant 0 : index
    %58 = vector.load %arg4[%c1_41, %c0_42, %c0_43, %c0_44] : memref<3x2x256x512xbf16, #tpu.memory_space<vmem>>, vector<1x1x256x512xbf16>
    %59 = vector.shape_cast %58 : vector<1x1x256x512xbf16> to vector<256x512xbf16>
    %cst_45 = arith.constant dense<0.000000e+00> : vector<8x512xf32>
    %60 = tpu.matmul %56, %59, %cst_45 {dimension_numbers = #tpu.dot_dimension_numbers<[1], [0], [0], [1], [0, 0, 1, 1], [], []>} : vector<8x256xbf16>, vector<256x512xbf16>, vector<8x512xf32> -> vector<8x512xf32>
    %c1_46 = arith.constant 1 : index
    %c0_47 = arith.constant 0 : index
    %c0_48 = arith.constant 0 : index
    %c0_49 = arith.constant 0 : index
    %61 = vector.load %arg5[%c1_46, %c0_47, %c0_48, %c0_49] : memref<3x2x8x512xf32, #tpu.memory_space<vmem>>, vector<1x1x8x512xf32>
    %62 = vector.shape_cast %61 : vector<1x1x8x512xf32> to vector<8x512xf32>
    %63 = arith.mulf %62, %60 : vector<8x512xf32>
    %cst_50 = arith.constant dense<0.000000e+00> : vector<512xf32>
    %64 = vector.multi_reduction <add>, %63, %cst_50 [0] : vector<8x512xf32> to vector<512xf32>
    %65 = vector.shape_cast %64 : vector<512xf32> to vector<1x512xf32>
    %66 = arith.addf %57, %65 : vector<1x512xf32>
    %c1_51 = arith.constant 1 : index
    %c1_52 = arith.constant 1 : index
    %c0_53 = arith.constant 0 : index
    %c0_54 = arith.constant 0 : index
    %67 = vector.load %arg4[%c1_51, %c1_52, %c0_53, %c0_54] : memref<3x2x256x512xbf16, #tpu.memory_space<vmem>>, vector<1x1x256x512xbf16>
    %68 = vector.shape_cast %67 : vector<1x1x256x512xbf16> to vector<256x512xbf16>
    %cst_55 = arith.constant dense<0.000000e+00> : vector<8x512xf32>
    %69 = tpu.matmul %56, %68, %cst_55 {dimension_numbers = #tpu.dot_dimension_numbers<[1], [0], [0], [1], [0, 0, 1, 1], [], []>} : vector<8x256xbf16>, vector<256x512xbf16>, vector<8x512xf32> -> vector<8x512xf32>
    %c1_56 = arith.constant 1 : index
    %c1_57 = arith.constant 1 : index
    %c0_58 = arith.constant 0 : index
    %c0_59 = arith.constant 0 : index
    %70 = vector.load %arg5[%c1_56, %c1_57, %c0_58, %c0_59] : memref<3x2x8x512xf32, #tpu.memory_space<vmem>>, vector<1x1x8x512xf32>
    %71 = vector.shape_cast %70 : vector<1x1x8x512xf32> to vector<8x512xf32>
    %72 = arith.mulf %71, %69 : vector<8x512xf32>
    %cst_60 = arith.constant dense<0.000000e+00> : vector<512xf32>
    %73 = vector.multi_reduction <add>, %72, %cst_60 [0] : vector<8x512xf32> to vector<512xf32>
    %74 = vector.shape_cast %73 : vector<512xf32> to vector<1x512xf32>
    %75 = arith.addf %66, %74 : vector<1x512xf32>
    %c2 = arith.constant 2 : index
    %c0_61 = arith.constant 0 : index
    %c0_62 = arith.constant 0 : index
    %76 = vector.load %arg1[%c2, %c0_61, %c0_62] : memref<3x1x256xf32, #tpu.memory_space<vmem>>, vector<1x1x256xf32>
    %77 = vector.shape_cast %76 : vector<1x1x256xf32> to vector<1x256xf32>
    %c0_63 = arith.constant 0 : index
    %c0_64 = arith.constant 0 : index
    %78 = vector.load %arg3[%c0_63, %c0_64] : memref<8x1xf32, #tpu.memory_space<vmem>>, vector<8x1xf32>
    %79 = vector.broadcast %78 : vector<8x1xf32> to vector<8x256xf32>
    %80 = vector.broadcast %77 : vector<1x256xf32> to vector<8x256xf32>
    %81 = arith.mulf %79, %80 : vector<8x256xf32>
    %c2_65 = arith.constant 2 : index
    %c0_66 = arith.constant 0 : index
    %c0_67 = arith.constant 0 : index
    %82 = vector.load %arg2[%c2_65, %c0_66, %c0_67] : memref<3x8x1xf32, #tpu.memory_space<vmem>>, vector<1x8x1xf32>
    %83 = vector.shape_cast %82 : vector<1x8x1xf32> to vector<8x1xf32>
    %84 = vector.broadcast %83 : vector<8x1xf32> to vector<8x256xf32>
    %85 = arith.addf %81, %84 : vector<8x256xf32>
    %cst_68 = arith.constant 0.000000e+00 : f32
    %86 = vector.broadcast %cst_68 : f32 to vector<8x256xf32>
    %87 = arith.subf %86, %85 : vector<8x256xf32>
    %88 = math.exp %87 : vector<8x256xf32>
    %cst_69 = arith.constant 1.000000e+00 : f32
    %89 = vector.broadcast %cst_69 : f32 to vector<8x256xf32>
    %90 = arith.addf %89, %88 : vector<8x256xf32>
    %cst_70 = arith.constant 1.000000e+00 : f32
    %91 = vector.broadcast %cst_70 : f32 to vector<8x256xf32>
    %92 = arith.divf %91, %90 : vector<8x256xf32>
    %93 = arith.mulf %85, %92 : vector<8x256xf32>
    %94 = arith.truncf %93 : vector<8x256xf32> to vector<8x256xbf16>
    %cst_71 = arith.constant 0.000000e+00 : f32
    %95 = vector.broadcast %cst_71 : f32 to vector<1x512xf32>
    %c2_72 = arith.constant 2 : index
    %c0_73 = arith.constant 0 : index
    %c0_74 = arith.constant 0 : index
    %c0_75 = arith.constant 0 : index
    %96 = vector.load %arg4[%c2_72, %c0_73, %c0_74, %c0_75] : memref<3x2x256x512xbf16, #tpu.memory_space<vmem>>, vector<1x1x256x512xbf16>
    %97 = vector.shape_cast %96 : vector<1x1x256x512xbf16> to vector<256x512xbf16>
    %cst_76 = arith.constant dense<0.000000e+00> : vector<8x512xf32>
    %98 = tpu.matmul %94, %97, %cst_76 {dimension_numbers = #tpu.dot_dimension_numbers<[1], [0], [0], [1], [0, 0, 1, 1], [], []>} : vector<8x256xbf16>, vector<256x512xbf16>, vector<8x512xf32> -> vector<8x512xf32>
    %c2_77 = arith.constant 2 : index
    %c0_78 = arith.constant 0 : index
    %c0_79 = arith.constant 0 : index
    %c0_80 = arith.constant 0 : index
    %99 = vector.load %arg5[%c2_77, %c0_78, %c0_79, %c0_80] : memref<3x2x8x512xf32, #tpu.memory_space<vmem>>, vector<1x1x8x512xf32>
    %100 = vector.shape_cast %99 : vector<1x1x8x512xf32> to vector<8x512xf32>
    %101 = arith.mulf %100, %98 : vector<8x512xf32>
    %cst_81 = arith.constant dense<0.000000e+00> : vector<512xf32>
    %102 = vector.multi_reduction <add>, %101, %cst_81 [0] : vector<8x512xf32> to vector<512xf32>
    %103 = vector.shape_cast %102 : vector<512xf32> to vector<1x512xf32>
    %104 = arith.addf %95, %103 : vector<1x512xf32>
    %c2_82 = arith.constant 2 : index
    %c1_83 = arith.constant 1 : index
    %c0_84 = arith.constant 0 : index
    %c0_85 = arith.constant 0 : index
    %105 = vector.load %arg4[%c2_82, %c1_83, %c0_84, %c0_85] : memref<3x2x256x512xbf16, #tpu.memory_space<vmem>>, vector<1x1x256x512xbf16>
    %106 = vector.shape_cast %105 : vector<1x1x256x512xbf16> to vector<256x512xbf16>
    %cst_86 = arith.constant dense<0.000000e+00> : vector<8x512xf32>
    %107 = tpu.matmul %94, %106, %cst_86 {dimension_numbers = #tpu.dot_dimension_numbers<[1], [0], [0], [1], [0, 0, 1, 1], [], []>} : vector<8x256xbf16>, vector<256x512xbf16>, vector<8x512xf32> -> vector<8x512xf32>
    %c2_87 = arith.constant 2 : index
    %c1_88 = arith.constant 1 : index
    %c0_89 = arith.constant 0 : index
    %c0_90 = arith.constant 0 : index
    %108 = vector.load %arg5[%c2_87, %c1_88, %c0_89, %c0_90] : memref<3x2x8x512xf32, #tpu.memory_space<vmem>>, vector<1x1x8x512xf32>
    %109 = vector.shape_cast %108 : vector<1x1x8x512xf32> to vector<8x512xf32>
    %110 = arith.mulf %109, %107 : vector<8x512xf32>
    %cst_91 = arith.constant dense<0.000000e+00> : vector<512xf32>
    %111 = vector.multi_reduction <add>, %110, %cst_91 [0] : vector<8x512xf32> to vector<512xf32>
    %112 = vector.shape_cast %111 : vector<512xf32> to vector<1x512xf32>
    %113 = arith.addf %104, %112 : vector<1x512xf32>
    %114 = arith.addf %37, %75 : vector<1x512xf32>
    %cst_92 = arith.constant 5.000000e-01 : f32
    %115 = vector.broadcast %cst_92 : f32 to vector<1x512xf32>
    %116 = arith.mulf %114, %115 : vector<1x512xf32>
    %c0_93 = arith.constant 0 : index
    %c0_94 = arith.constant 0 : index
    %c0_95 = arith.constant 0 : index
    %117 = vector.load %arg7[%c0_93, %c0_94, %c0_95] : memref<3x32x1xf32, #tpu.memory_space<vmem>>, vector<1x32x1xf32>
    %118 = vector.shape_cast %117 : vector<1x32x1xf32> to vector<32x1xf32>
    %119 = vector.broadcast %118 : vector<32x1xf32> to vector<32x512xf32>
    %120 = vector.broadcast %116 : vector<1x512xf32> to vector<32x512xf32>
    %121 = arith.mulf %119, %120 : vector<32x512xf32>
    %c0_96 = arith.constant 0 : index
    %c0_97 = arith.constant 0 : index
    %c0_98 = arith.constant 0 : index
    %122 = vector.load %arg6[%c0_96, %c0_97, %c0_98] : memref<3x32x512xf32, #tpu.memory_space<vmem>>, vector<1x32x512xf32>
    %123 = vector.shape_cast %122 : vector<1x32x512xf32> to vector<32x512xf32>
    %124 = arith.addf %123, %121 : vector<32x512xf32>
    %cst_99 = arith.constant 0.000000e+00 : f32
    %125 = vector.broadcast %cst_99 : f32 to vector<32x512xf32>
    %126 = arith.cmpf ogt, %124, %125 : vector<32x512xf32>
    %cst_100 = arith.constant 0.00999999977 : f32
    %127 = vector.broadcast %cst_100 : f32 to vector<32x512xf32>
    %128 = arith.mulf %127, %124 : vector<32x512xf32>
    %129 = arith.select %126, %124, %128 : vector<32x512xi1>, vector<32x512xf32>
    %c0_101 = arith.constant 0 : index
    %c0_102 = arith.constant 0 : index
    %c0_103 = arith.constant 0 : index
    %130 = vector.load %arg10[%c0_101, %c0_102, %c0_103] : memref<3x1x32xf32, #tpu.memory_space<vmem>>, vector<1x1x32xf32>
    %131 = vector.shape_cast %130 : vector<1x1x32xf32> to vector<1x32xf32>
    %cst_104 = arith.constant dense<0.000000e+00> : vector<1x512xf32>
    %132 = tpu.matmul %131, %129, %cst_104 {dimension_numbers = #tpu.dot_dimension_numbers<[1], [0], [0], [1], [0, 0, 1, 1], [], []>} : vector<1x32xf32>, vector<32x512xf32>, vector<1x512xf32> -> vector<1x512xf32>
    %c0_105 = arith.constant 0 : index
    %c0_106 = arith.constant 0 : index
    %c0_107 = arith.constant 0 : index
    %133 = vector.load %arg11[%c0_105, %c0_106, %c0_107] : memref<3x1x1xf32, #tpu.memory_space<vmem>>, vector<1x1x1xf32>
    %134 = vector.shape_cast %133 : vector<1x1x1xf32> to vector<1x1xf32>
    %135 = vector.broadcast %134 : vector<1x1xf32> to vector<1x512xf32>
    %136 = arith.addf %132, %135 : vector<1x512xf32>
    %c1_108 = arith.constant 1 : index
    %c0_109 = arith.constant 0 : index
    %c0_110 = arith.constant 0 : index
    %137 = vector.load %arg7[%c1_108, %c0_109, %c0_110] : memref<3x32x1xf32, #tpu.memory_space<vmem>>, vector<1x32x1xf32>
    %138 = vector.shape_cast %137 : vector<1x32x1xf32> to vector<32x1xf32>
    %139 = vector.broadcast %138 : vector<32x1xf32> to vector<32x512xf32>
    %140 = vector.broadcast %116 : vector<1x512xf32> to vector<32x512xf32>
    %141 = arith.mulf %139, %140 : vector<32x512xf32>
    %c1_111 = arith.constant 1 : index
    %c0_112 = arith.constant 0 : index
    %c0_113 = arith.constant 0 : index
    %142 = vector.load %arg8[%c1_111, %c0_112, %c0_113] : memref<3x32x1xf32, #tpu.memory_space<vmem>>, vector<1x32x1xf32>
    %143 = vector.shape_cast %142 : vector<1x32x1xf32> to vector<32x1xf32>
    %144 = vector.broadcast %143 : vector<32x1xf32> to vector<32x512xf32>
    %145 = vector.broadcast %136 : vector<1x512xf32> to vector<32x512xf32>
    %146 = arith.mulf %144, %145 : vector<32x512xf32>
    %c1_114 = arith.constant 1 : index
    %c0_115 = arith.constant 0 : index
    %c0_116 = arith.constant 0 : index
    %147 = vector.load %arg6[%c1_114, %c0_115, %c0_116] : memref<3x32x512xf32, #tpu.memory_space<vmem>>, vector<1x32x512xf32>
    %148 = vector.shape_cast %147 : vector<1x32x512xf32> to vector<32x512xf32>
    %149 = arith.addf %148, %141 : vector<32x512xf32>
    %150 = arith.addf %149, %146 : vector<32x512xf32>
    %cst_117 = arith.constant 0.000000e+00 : f32
    %151 = vector.broadcast %cst_117 : f32 to vector<32x512xf32>
    %152 = arith.cmpf ogt, %150, %151 : vector<32x512xf32>
    %cst_118 = arith.constant 0.00999999977 : f32
    %153 = vector.broadcast %cst_118 : f32 to vector<32x512xf32>
    %154 = arith.mulf %153, %150 : vector<32x512xf32>
    %155 = arith.select %152, %150, %154 : vector<32x512xi1>, vector<32x512xf32>
    %c1_119 = arith.constant 1 : index
    %c0_120 = arith.constant 0 : index
    %c0_121 = arith.constant 0 : index
    %156 = vector.load %arg10[%c1_119, %c0_120, %c0_121] : memref<3x1x32xf32, #tpu.memory_space<vmem>>, vector<1x1x32xf32>
    %157 = vector.shape_cast %156 : vector<1x1x32xf32> to vector<1x32xf32>
    %cst_122 = arith.constant dense<0.000000e+00> : vector<1x512xf32>
    %158 = tpu.matmul %157, %155, %cst_122 {dimension_numbers = #tpu.dot_dimension_numbers<[1], [0], [0], [1], [0, 0, 1, 1], [], []>} : vector<1x32xf32>, vector<32x512xf32>, vector<1x512xf32> -> vector<1x512xf32>
    %c1_123 = arith.constant 1 : index
    %c0_124 = arith.constant 0 : index
    %c0_125 = arith.constant 0 : index
    %159 = vector.load %arg11[%c1_123, %c0_124, %c0_125] : memref<3x1x1xf32, #tpu.memory_space<vmem>>, vector<1x1x1xf32>
    %160 = vector.shape_cast %159 : vector<1x1x1xf32> to vector<1x1xf32>
    %161 = vector.broadcast %160 : vector<1x1xf32> to vector<1x512xf32>
    %162 = arith.addf %158, %161 : vector<1x512xf32>
    %c2_126 = arith.constant 2 : index
    %c0_127 = arith.constant 0 : index
    %c0_128 = arith.constant 0 : index
    %163 = vector.load %arg7[%c2_126, %c0_127, %c0_128] : memref<3x32x1xf32, #tpu.memory_space<vmem>>, vector<1x32x1xf32>
    %164 = vector.shape_cast %163 : vector<1x32x1xf32> to vector<32x1xf32>
    %165 = vector.broadcast %164 : vector<32x1xf32> to vector<32x512xf32>
    %166 = vector.broadcast %116 : vector<1x512xf32> to vector<32x512xf32>
    %167 = arith.mulf %165, %166 : vector<32x512xf32>
    %c2_129 = arith.constant 2 : index
    %c0_130 = arith.constant 0 : index
    %c0_131 = arith.constant 0 : index
    %168 = vector.load %arg8[%c2_129, %c0_130, %c0_131] : memref<3x32x1xf32, #tpu.memory_space<vmem>>, vector<1x32x1xf32>
    %169 = vector.shape_cast %168 : vector<1x32x1xf32> to vector<32x1xf32>
    %170 = vector.broadcast %169 : vector<32x1xf32> to vector<32x512xf32>
    %171 = vector.broadcast %136 : vector<1x512xf32> to vector<32x512xf32>
    %172 = arith.mulf %170, %171 : vector<32x512xf32>
    %c2_132 = arith.constant 2 : index
    %c0_133 = arith.constant 0 : index
    %c0_134 = arith.constant 0 : index
    %173 = vector.load %arg9[%c2_132, %c0_133, %c0_134] : memref<3x32x1xf32, #tpu.memory_space<vmem>>, vector<1x32x1xf32>
    %174 = vector.shape_cast %173 : vector<1x32x1xf32> to vector<32x1xf32>
    %175 = vector.broadcast %174 : vector<32x1xf32> to vector<32x512xf32>
    %176 = vector.broadcast %162 : vector<1x512xf32> to vector<32x512xf32>
    %177 = arith.mulf %175, %176 : vector<32x512xf32>
    %c2_135 = arith.constant 2 : index
    %c0_136 = arith.constant 0 : index
    %c0_137 = arith.constant 0 : index
    %178 = vector.load %arg6[%c2_135, %c0_136, %c0_137] : memref<3x32x512xf32, #tpu.memory_space<vmem>>, vector<1x32x512xf32>
    %179 = vector.shape_cast %178 : vector<1x32x512xf32> to vector<32x512xf32>
    %180 = arith.addf %179, %167 : vector<32x512xf32>
    %181 = arith.addf %180, %172 : vector<32x512xf32>
    %182 = arith.addf %181, %177 : vector<32x512xf32>
    %cst_138 = arith.constant 0.000000e+00 : f32
    %183 = vector.broadcast %cst_138 : f32 to vector<32x512xf32>
    %184 = arith.cmpf ogt, %182, %183 : vector<32x512xf32>
    %cst_139 = arith.constant 0.00999999977 : f32
    %185 = vector.broadcast %cst_139 : f32 to vector<32x512xf32>
    %186 = arith.mulf %185, %182 : vector<32x512xf32>
    %187 = arith.select %184, %182, %186 : vector<32x512xi1>, vector<32x512xf32>
    %c2_140 = arith.constant 2 : index
    %c0_141 = arith.constant 0 : index
    %c0_142 = arith.constant 0 : index
    %188 = vector.load %arg10[%c2_140, %c0_141, %c0_142] : memref<3x1x32xf32, #tpu.memory_space<vmem>>, vector<1x1x32xf32>
    %189 = vector.shape_cast %188 : vector<1x1x32xf32> to vector<1x32xf32>
    %cst_143 = arith.constant dense<0.000000e+00> : vector<1x512xf32>
    %190 = tpu.matmul %189, %187, %cst_143 {dimension_numbers = #tpu.dot_dimension_numbers<[1], [0], [0], [1], [0, 0, 1, 1], [], []>} : vector<1x32xf32>, vector<32x512xf32>, vector<1x512xf32> -> vector<1x512xf32>
    %c2_144 = arith.constant 2 : index
    %c0_145 = arith.constant 0 : index
    %c0_146 = arith.constant 0 : index
    %191 = vector.load %arg11[%c2_144, %c0_145, %c0_146] : memref<3x1x1xf32, #tpu.memory_space<vmem>>, vector<1x1x1xf32>
    %192 = vector.shape_cast %191 : vector<1x1x1xf32> to vector<1x1xf32>
    %193 = vector.broadcast %192 : vector<1x1xf32> to vector<1x512xf32>
    %194 = arith.addf %190, %193 : vector<1x512xf32>
    %c0_147 = arith.constant 0 : index
    %c0_148 = arith.constant 0 : index
    %c0_149 = arith.constant 0 : index
    %195 = vector.load %arg12[%c0_147, %c0_148, %c0_149] : memref<2x1x512xf32, #tpu.memory_space<vmem>>, vector<1x1x512xf32>
    %196 = vector.shape_cast %195 : vector<1x1x512xf32> to vector<1x512xf32>
    %197 = vector.shape_cast %194 : vector<1x512xf32> to vector<1x1x512xf32>
    tpu.vector_store %arg12[%c0_147, %c0_148, %c0_149], %197 {strides = array<i32>} : memref<2x1x512xf32, #tpu.memory_space<vmem>>, vector<1x1x512xf32>,
    %c0_150 = arith.constant 0 : index
    %c0_151 = arith.constant 0 : index
    %c0_152 = arith.constant 0 : index
    %198 = vector.load %arg7[%c0_150, %c0_151, %c0_152] : memref<3x32x1xf32, #tpu.memory_space<vmem>>, vector<1x32x1xf32>
    %199 = vector.shape_cast %198 : vector<1x32x1xf32> to vector<32x1xf32>
    %200 = vector.broadcast %199 : vector<32x1xf32> to vector<32x512xf32>
    %201 = vector.broadcast %113 : vector<1x512xf32> to vector<32x512xf32>
    %202 = arith.mulf %200, %201 : vector<32x512xf32>
    %c0_153 = arith.constant 0 : index
    %c0_154 = arith.constant 0 : index
    %c0_155 = arith.constant 0 : index
    %203 = vector.load %arg6[%c0_153, %c0_154, %c0_155] : memref<3x32x512xf32, #tpu.memory_space<vmem>>, vector<1x32x512xf32>
    %204 = vector.shape_cast %203 : vector<1x32x512xf32> to vector<32x512xf32>
    %205 = arith.addf %204, %202 : vector<32x512xf32>
    %cst_156 = arith.constant 0.000000e+00 : f32
    %206 = vector.broadcast %cst_156 : f32 to vector<32x512xf32>
    %207 = arith.cmpf ogt, %205, %206 : vector<32x512xf32>
    %cst_157 = arith.constant 0.00999999977 : f32
    %208 = vector.broadcast %cst_157 : f32 to vector<32x512xf32>
    %209 = arith.mulf %208, %205 : vector<32x512xf32>
    %210 = arith.select %207, %205, %209 : vector<32x512xi1>, vector<32x512xf32>
    %c0_158 = arith.constant 0 : index
    %c0_159 = arith.constant 0 : index
    %c0_160 = arith.constant 0 : index
    %211 = vector.load %arg10[%c0_158, %c0_159, %c0_160] : memref<3x1x32xf32, #tpu.memory_space<vmem>>, vector<1x1x32xf32>
    %212 = vector.shape_cast %211 : vector<1x1x32xf32> to vector<1x32xf32>
    %cst_161 = arith.constant dense<0.000000e+00> : vector<1x512xf32>
    %213 = tpu.matmul %212, %210, %cst_161 {dimension_numbers = #tpu.dot_dimension_numbers<[1], [0], [0], [1], [0, 0, 1, 1], [], []>} : vector<1x32xf32>, vector<32x512xf32>, vector<1x512xf32> -> vector<1x512xf32>
    %c0_162 = arith.constant 0 : index
    %c0_163 = arith.constant 0 : index
    %c0_164 = arith.constant 0 : index
    %214 = vector.load %arg11[%c0_162, %c0_163, %c0_164] : memref<3x1x1xf32, #tpu.memory_space<vmem>>, vector<1x1x1xf32>
    %215 = vector.shape_cast %214 : vector<1x1x1xf32> to vector<1x1xf32>
    %216 = vector.broadcast %215 : vector<1x1xf32> to vector<1x512xf32>
    %217 = arith.addf %213, %216 : vector<1x512xf32>
    %c1_165 = arith.constant 1 : index
    %c0_166 = arith.constant 0 : index
    %c0_167 = arith.constant 0 : index
    %218 = vector.load %arg7[%c1_165, %c0_166, %c0_167] : memref<3x32x1xf32, #tpu.memory_space<vmem>>, vector<1x32x1xf32>
    %219 = vector.shape_cast %218 : vector<1x32x1xf32> to vector<32x1xf32>
    %220 = vector.broadcast %219 : vector<32x1xf32> to vector<32x512xf32>
    %221 = vector.broadcast %113 : vector<1x512xf32> to vector<32x512xf32>
    %222 = arith.mulf %220, %221 : vector<32x512xf32>
    %c1_168 = arith.constant 1 : index
    %c0_169 = arith.constant 0 : index
    %c0_170 = arith.constant 0 : index
    %223 = vector.load %arg8[%c1_168, %c0_169, %c0_170] : memref<3x32x1xf32, #tpu.memory_space<vmem>>, vector<1x32x1xf32>
    %224 = vector.shape_cast %223 : vector<1x32x1xf32> to vector<32x1xf32>
    %225 = vector.broadcast %224 : vector<32x1xf32> to vector<32x512xf32>
    %226 = vector.broadcast %217 : vector<1x512xf32> to vector<32x512xf32>
    %227 = arith.mulf %225, %226 : vector<32x512xf32>
    %c1_171 = arith.constant 1 : index
    %c0_172 = arith.constant 0 : index
    %c0_173 = arith.constant 0 : index
    %228 = vector.load %arg6[%c1_171, %c0_172, %c0_173] : memref<3x32x512xf32, #tpu.memory_space<vmem>>, vector<1x32x512xf32>
    %229 = vector.shape_cast %228 : vector<1x32x512xf32> to vector<32x512xf32>
    %230 = arith.addf %229, %222 : vector<32x512xf32>
    %231 = arith.addf %230, %227 : vector<32x512xf32>
    %cst_174 = arith.constant 0.000000e+00 : f32
    %232 = vector.broadcast %cst_174 : f32 to vector<32x512xf32>
    %233 = arith.cmpf ogt, %231, %232 : vector<32x512xf32>
    %cst_175 = arith.constant 0.00999999977 : f32
    %234 = vector.broadcast %cst_175 : f32 to vector<32x512xf32>
    %235 = arith.mulf %234, %231 : vector<32x512xf32>
    %236 = arith.select %233, %231, %235 : vector<32x512xi1>, vector<32x512xf32>
    %c1_176 = arith.constant 1 : index
    %c0_177 = arith.constant 0 : index
    %c0_178 = arith.constant 0 : index
    %237 = vector.load %arg10[%c1_176, %c0_177, %c0_178] : memref<3x1x32xf32, #tpu.memory_space<vmem>>, vector<1x1x32xf32>
    %238 = vector.shape_cast %237 : vector<1x1x32xf32> to vector<1x32xf32>
    %cst_179 = arith.constant dense<0.000000e+00> : vector<1x512xf32>
    %239 = tpu.matmul %238, %236, %cst_179 {dimension_numbers = #tpu.dot_dimension_numbers<[1], [0], [0], [1], [0, 0, 1, 1], [], []>} : vector<1x32xf32>, vector<32x512xf32>, vector<1x512xf32> -> vector<1x512xf32>
    %c1_180 = arith.constant 1 : index
    %c0_181 = arith.constant 0 : index
    %c0_182 = arith.constant 0 : index
    %240 = vector.load %arg11[%c1_180, %c0_181, %c0_182] : memref<3x1x1xf32, #tpu.memory_space<vmem>>, vector<1x1x1xf32>
    %241 = vector.shape_cast %240 : vector<1x1x1xf32> to vector<1x1xf32>
    %242 = vector.broadcast %241 : vector<1x1xf32> to vector<1x512xf32>
    %243 = arith.addf %239, %242 : vector<1x512xf32>
    %c2_183 = arith.constant 2 : index
    %c0_184 = arith.constant 0 : index
    %c0_185 = arith.constant 0 : index
    %244 = vector.load %arg7[%c2_183, %c0_184, %c0_185] : memref<3x32x1xf32, #tpu.memory_space<vmem>>, vector<1x32x1xf32>
    %245 = vector.shape_cast %244 : vector<1x32x1xf32> to vector<32x1xf32>
    %246 = vector.broadcast %245 : vector<32x1xf32> to vector<32x512xf32>
    %247 = vector.broadcast %113 : vector<1x512xf32> to vector<32x512xf32>
    %248 = arith.mulf %246, %247 : vector<32x512xf32>
    %c2_186 = arith.constant 2 : index
    %c0_187 = arith.constant 0 : index
    %c0_188 = arith.constant 0 : index
    %249 = vector.load %arg8[%c2_186, %c0_187, %c0_188] : memref<3x32x1xf32, #tpu.memory_space<vmem>>, vector<1x32x1xf32>
    %250 = vector.shape_cast %249 : vector<1x32x1xf32> to vector<32x1xf32>
    %251 = vector.broadcast %250 : vector<32x1xf32> to vector<32x512xf32>
    %252 = vector.broadcast %217 : vector<1x512xf32> to vector<32x512xf32>
    %253 = arith.mulf %251, %252 : vector<32x512xf32>
    %c2_189 = arith.constant 2 : index
    %c0_190 = arith.constant 0 : index
    %c0_191 = arith.constant 0 : index
    %254 = vector.load %arg9[%c2_189, %c0_190, %c0_191] : memref<3x32x1xf32, #tpu.memory_space<vmem>>, vector<1x32x1xf32>
    %255 = vector.shape_cast %254 : vector<1x32x1xf32> to vector<32x1xf32>
    %256 = vector.broadcast %255 : vector<32x1xf32> to vector<32x512xf32>
    %257 = vector.broadcast %243 : vector<1x512xf32> to vector<32x512xf32>
    %258 = arith.mulf %256, %257 : vector<32x512xf32>
    %c2_192 = arith.constant 2 : index
    %c0_193 = arith.constant 0 : index
    %c0_194 = arith.constant 0 : index
    %259 = vector.load %arg6[%c2_192, %c0_193, %c0_194] : memref<3x32x512xf32, #tpu.memory_space<vmem>>, vector<1x32x512xf32>
    %260 = vector.shape_cast %259 : vector<1x32x512xf32> to vector<32x512xf32>
    %261 = arith.addf %260, %248 : vector<32x512xf32>
    %262 = arith.addf %261, %253 : vector<32x512xf32>
    %263 = arith.addf %262, %258 : vector<32x512xf32>
    %cst_195 = arith.constant 0.000000e+00 : f32
    %264 = vector.broadcast %cst_195 : f32 to vector<32x512xf32>
    %265 = arith.cmpf ogt, %263, %264 : vector<32x512xf32>
    %cst_196 = arith.constant 0.00999999977 : f32
    %266 = vector.broadcast %cst_196 : f32 to vector<32x512xf32>
    %267 = arith.mulf %266, %263 : vector<32x512xf32>
    %268 = arith.select %265, %263, %267 : vector<32x512xi1>, vector<32x512xf32>
    %c2_197 = arith.constant 2 : index
    %c0_198 = arith.constant 0 : index
    %c0_199 = arith.constant 0 : index
    %269 = vector.load %arg10[%c2_197, %c0_198, %c0_199] : memref<3x1x32xf32, #tpu.memory_space<vmem>>, vector<1x1x32xf32>
    %270 = vector.shape_cast %269 : vector<1x1x32xf32> to vector<1x32xf32>
    %cst_200 = arith.constant dense<0.000000e+00> : vector<1x512xf32>
    %271 = tpu.matmul %270, %268, %cst_200 {dimension_numbers = #tpu.dot_dimension_numbers<[1], [0], [0], [1], [0, 0, 1, 1], [], []>} : vector<1x32xf32>, vector<32x512xf32>, vector<1x512xf32> -> vector<1x512xf32>
    %c2_201 = arith.constant 2 : index
    %c0_202 = arith.constant 0 : index
    %c0_203 = arith.constant 0 : index
    %272 = vector.load %arg11[%c2_201, %c0_202, %c0_203] : memref<3x1x1xf32, #tpu.memory_space<vmem>>, vector<1x1x1xf32>
    %273 = vector.shape_cast %272 : vector<1x1x1xf32> to vector<1x1xf32>
    %274 = vector.broadcast %273 : vector<1x1xf32> to vector<1x512xf32>
    %275 = arith.addf %271, %274 : vector<1x512xf32>
    %c1_204 = arith.constant 1 : index
    %c0_205 = arith.constant 0 : index
    %c0_206 = arith.constant 0 : index
    %276 = vector.load %arg12[%c1_204, %c0_205, %c0_206] : memref<2x1x512xf32, #tpu.memory_space<vmem>>, vector<1x1x512xf32>
    %277 = vector.shape_cast %276 : vector<1x1x512xf32> to vector<1x512xf32>
    %278 = vector.shape_cast %275 : vector<1x512xf32> to vector<1x1x512xf32>
    tpu.vector_store %arg12[%c1_204, %c0_205, %c0_206], %278 {strides = array<i32>} : memref<2x1x512xf32, #tpu.memory_space<vmem>>, vector<1x1x512xf32>,
    return
  }
  func.func @transform_0(%arg0: i32) -> (i32, i32, i32) {
    %c0_i32 = arith.constant 0 : i32
    %c0_i32_0 = arith.constant 0 : i32
    %c0_i32_1 = arith.constant 0 : i32
    %c0_i32_2 = arith.constant 0 : i32
    return %c0_i32, %c0_i32_0, %c0_i32_1 : i32, i32, i32
  }
  func.func @transform_1(%arg0: i32) -> (i32, i32, i32) {
    %c0_i32 = arith.constant 0 : i32
    %c0_i32_0 = arith.constant 0 : i32
    %c0_i32_1 = arith.constant 0 : i32
    %c0_i32_2 = arith.constant 0 : i32
    return %c0_i32, %c0_i32_0, %c0_i32_1 : i32, i32, i32
  }
  func.func @transform_2(%arg0: i32) -> (i32, i32) {
    %c0_i32 = arith.constant 0 : i32
    %c0_i32_0 = arith.constant 0 : i32
    %c0_i32_1 = arith.constant 0 : i32
    return %c0_i32, %c0_i32_0 : i32, i32
  }
  func.func @transform_3(%arg0: i32) -> (i32, i32, i32, i32) {
    %c0_i32 = arith.constant 0 : i32
    %c0_i32_0 = arith.constant 0 : i32
    %c0_i32_1 = arith.constant 0 : i32
    %c0_i32_2 = arith.constant 0 : i32
    %c0_i32_3 = arith.constant 0 : i32
    return %c0_i32, %c0_i32_0, %c0_i32_1, %c0_i32_2 : i32, i32, i32, i32
  }
  func.func @transform_4(%arg0: i32) -> (i32, i32, i32, i32) {
    %c0_i32 = arith.constant 0 : i32
    %c0_i32_0 = arith.constant 0 : i32
    %c0_i32_1 = arith.constant 0 : i32
    %c0_i32_2 = arith.constant 0 : i32
    %c0_i32_3 = arith.constant 0 : i32
    return %c0_i32, %c0_i32_0, %c0_i32_1, %c0_i32_2 : i32, i32, i32, i32
  }
  func.func @transform_5(%arg0: i32) -> (i32, i32, i32) {
    %c0_i32 = arith.constant 0 : i32
    %c0_i32_0 = arith.constant 0 : i32
    %c0_i32_1 = arith.constant 0 : i32
    %c0_i32_2 = arith.constant 0 : i32
    return %c0_i32, %c0_i32_0, %c0_i32_1 : i32, i32, i32
  }
  func.func @transform_6(%arg0: i32) -> (i32, i32, i32) {
    %c0_i32 = arith.constant 0 : i32
    %c0_i32_0 = arith.constant 0 : i32
    %c0_i32_1 = arith.constant 0 : i32
    %c0_i32_2 = arith.constant 0 : i32
    return %c0_i32, %c0_i32_0, %c0_i32_1 : i32, i32, i32
  }
  func.func @transform_7(%arg0: i32) -> (i32, i32, i32) {
    %c0_i32 = arith.constant 0 : i32
    %c0_i32_0 = arith.constant 0 : i32
    %c0_i32_1 = arith.constant 0 : i32
    %c0_i32_2 = arith.constant 0 : i32
    return %c0_i32, %c0_i32_0, %c0_i32_1 : i32, i32, i32
  }
  func.func @transform_8(%arg0: i32) -> (i32, i32, i32) {
    %c0_i32 = arith.constant 0 : i32
    %c0_i32_0 = arith.constant 0 : i32
    %c0_i32_1 = arith.constant 0 : i32
    %c0_i32_2 = arith.constant 0 : i32
    return %c0_i32, %c0_i32_0, %c0_i32_1 : i32, i32, i32
  }
  func.func @transform_9(%arg0: i32) -> (i32, i32, i32) {
    %c0_i32 = arith.constant 0 : i32
    %c0_i32_0 = arith.constant 0 : i32
    %c0_i32_1 = arith.constant 0 : i32
    %c0_i32_2 = arith.constant 0 : i32
    return %c0_i32, %c0_i32_0, %c0_i32_1 : i32, i32, i32
  }
  func.func @transform_10(%arg0: i32) -> (i32, i32, i32) {
    %c0_i32 = arith.constant 0 : i32
    %c0_i32_0 = arith.constant 0 : i32
    %c0_i32_1 = arith.constant 0 : i32
    %c0_i32_2 = arith.constant 0 : i32
    return %c0_i32, %c0_i32_0, %c0_i32_1 : i32, i32, i32
  }
  func.func @transform_11(%arg0: i32) -> (i32, i32, i32) {
    %c0_i32 = arith.constant 0 : i32
    %c0_i32_0 = arith.constant 0 : i32
    %c0_i32_1 = arith.constant 0 : i32
    %c0_i32_2 = arith.constant 0 : i32
    return %c0_i32, %c0_i32_0, %c0_i32_1 : i32, i32, i32
  }
}

</mosaic_0001>

<bundles_post_ra>
// kernel: neg.8
= control target key start
LH: loop header
LB: loop body
LE: loop exit
PB: predicated region body
PF: predicated region fallthrough
CT: control target
= control target key end

     0   :  { %s24_s0 = inlined_call_operand.vmem [shape: f32[3,3], index: 0, kind: input, shape index: {}]   ;;  %s25_s1 = inlined_call_operand.vmem [shape: f32[3,3], index: 1, kind: output, shape index: {}]  }
   0x1   :  { %v2_v0 = vld [vmem:[%s24_s0] sm:$0x7] }
   0x2   :  { %v5_v1 = vxor.u32 2147483648, %v2_v0 }
   0x4   :  { %7 = vst [vmem:[%s25_s1] sm:$0xf] %v5_v1 }

// kernel: grid_nerv_forward.1
= control target key start
LH: loop header
LB: loop body
LE: loop exit
PB: predicated region body
PF: predicated region fallthrough
CT: control target
= control target key end

     0   :  { %v6804_v0 = vmov 0   ;;  %v9545_v15 = vlaneseq  ;;  %s9533_s2 = inlined_call_operand.vmem [shape: f32[8,1], index: 2, kind: input, shape index: {}]   ;;  %s9534_s1 = inlined_call_operand.vmem [shape: f32[3,8,1], index: 1, kind: input, shape index: {}]   ;;  %s9535_s6 = inlined_call_operand.vmem [shape: f32[3,32,1], index: 6, kind: input, shape index: {}]   ;;  %s9536_s3 = inlined_call_operand.vmem [shape: bf16[3,2,256,512], index: 3, kind: input, shape index: {}]   ;;  %s9537_s10 = inlined_call_operand.vmem [shape: f32[3,1,1], index: 10, kind: input, shape index: {}]   ;;  %s9538_s7 = inlined_call_operand.vmem [shape: f32[3,32,1], index: 7, kind: input, shape index: {}]   ;;  %s9539_s0 = inlined_call_operand.vmem [shape: f32[3,1,256], index: 0, kind: input, shape index: {}]   ;;  %s9540_s8 = inlined_call_operand.vmem [shape: f32[3,32,1], index: 8, kind: input, shape index: {}]   ;;  %s9541_s4 = inlined_call_operand.vmem [shape: f32[3,2,8,512], index: 4, kind: input, shape index: {}]   ;;  %s9542_s5 = inlined_call_operand.vmem [shape: f32[3,32,512], index: 5, kind: input, shape index: {}]   ;;  %s9543_s9 = inlined_call_operand.vmem [shape: f32[3,1,32], index: 9, kind: input, shape index: {}]   ;;  %s9544_s11 = inlined_call_operand.vmem [shape: f32[2,1,512], index: 11, kind: output, shape index: {}]  }
   0x1   :  { %6186 = vset.pattern.permute.xlu1 %v6804_v0  ;;  %6185 = vset.pattern.permute.xlu0 %v6804_v0  ;;  %v39_v1 = vld [vmem:[%s9533_s2] sm:$0xff]  ;;  %v5526_v2 = vld [vmem:[%s9534_s1 + $0x8] sm:$0xff]  ;;  %v5792_v3 = vld [vmem:[%s9534_s1 + $0x10] sm:$0xff] }
   0x2   :  { %42 = vperm.xlu0 %6185, %v39_v1   ;;  %1107 = vperm.xlu1 %6186, %v5526_v2   ;;  %v58_v4 = vld [vmem:[%s9534_s1] sm:$0xff]  ;;  %v6882_v5 = vld [vmem:[%s9535_s6 + $0x18] sm:$0xff]  ;;  %v6887_v6 = vld [vmem:[%s9535_s6 + $0x10] sm:$0xff]  ;;  %v6948_v23 = vshrl.u32 %v9545_v15, 7 }
   0x3   :  { %v6893_v7 = vld [vmem:[%s9535_s6 + $0x8] sm:$0xff]  ;;  %v6899_v8 = vld [vmem:[%s9535_s6] sm:$0xff]  ;;  %v6910_v11 = vld [vmem:[%s9535_s6 + $0x38] sm:$0xff] }
   0x4   :  { %v6187_v9 = vld [vmem:[%s9536_s3 + $0xe4] ss:$16 sps:$4 sm:$0xff]   ;;  %v3313_v10 = vld [vmem:[%s9537_s10] sm:$0x1]  ;;  %v6189_v12 = vld [vmem:[%s9536_s3 + $0xec] ss:$16 sps:$4 sm:$0xff]  }
   0x5   :  { %v6191_v13 = vld [vmem:[%s9536_s3 + $0xe0] ss:$16 sps:$4 sm:$0xff]   ;;  %v6192_v14 = vld [vmem:[%s9536_s3 + $0xe8] ss:$16 sps:$4 sm:$0xff]   ;;  %466 = vmatprep.subr.bf16.mxu0 %v6187_v9  ;;  %507 = vmatprep.subr.bf16.mxu1 %v6189_v12  ;;  %v6193_v16 = vld [vmem:[%s9536_s3 + $0xc4] ss:$16 sps:$4 sm:$0xff]  }
   0x6   :  { %2155 = vperm.xlu1 %6186, %v5792_v3   ;;  %61 = vperm.xlu0 %6185, %v58_v4   ;;  %v6195_v17 = vld [vmem:[%s9536_s3 + $0xcc] ss:$16 sps:$4 sm:$0xff]   ;;  %v6197_v18 = vld [vmem:[%s9536_s3 + $0xc0] ss:$16 sps:$4 sm:$0xff]   ;;  %v6198_v19 = vld [vmem:[%s9536_s3 + $0xc8] ss:$16 sps:$4 sm:$0xff]  }
   0x7   :  { %467 = vmatpush1.bf16.msra.mxu0 %v6191_v13  ;;  %508 = vmatpush1.bf16.msra.mxu1 %v6192_v14  ;;  %v6938_v20 = vld [vmem:[%s9535_s6 + $0x30] sm:$0xff]  ;;  %v6201_v22 = vld [vmem:[%s9536_s3 + $0xac] ss:$16 sps:$4 sm:$0xff]   ;;  %9567 = vst [vmem:[#allocation2_spill] sm:$0xff] %v6948_v23  ;;  %v6204_v26 = vld [vmem:[%s9536_s3 + $0xa8] ss:$16 sps:$4 sm:$0xff]  }
   0x8   :  { %468 = vmatprep.subr.bf16.mxu0 %v6193_v16  ;;  %v6199_v21 = vld [vmem:[%s9536_s3 + $0xa4] ss:$16 sps:$4 sm:$0xff]   ;;  %v6953_v24 = vld [vmem:[%s9538_s7 + $0x38] sm:$0xff]  ;;  %509 = vmatprep.subr.bf16.mxu1 %v6195_v17  ;;  %v6203_v25 = vld [vmem:[%s9536_s3 + $0xa0] ss:$16 sps:$4 sm:$0xff]   ;;  %v6980_v31 = vsub.s32 1, %v6948_v23 }
   0x9   :  { %v6205_v27 = vld [vmem:[%s9536_s3 + $0x84] ss:$16 sps:$4 sm:$0xff]   ;;  %v6207_v28 = vld [vmem:[%s9536_s3 + $0x8c] ss:$16 sps:$4 sm:$0xff]   ;;  %v6209_v32 = vld [vmem:[%s9536_s3 + $0x80] ss:$16 sps:$4 sm:$0xff]  }
   0xa   :  { %3213 = vperm.xlu0 %6185, %v6882_v5   ;;  %3208 = vperm.xlu1 %6186, %v6887_v6   ;;  %v6971_v29 = vld [vmem:[%s9535_s6 + $0x28] sm:$0xff]  ;;  %v6977_v30 = vld [vmem:[%s9538_s7 + $0x30] sm:$0xff]  ;;  %v6997_v36 = vld [vmem:[%s9539_s0 + $0x2] sm:$0x3] }
   0xb   :  { %469 = vmatpush1.bf16.msra.mxu0 %v6197_v18  ;;  %510 = vmatpush1.bf16.msra.mxu1 %v6198_v19  ;;  %v6210_v33 = vld [vmem:[%s9536_s3 + $0x88] ss:$16 sps:$4 sm:$0xff]   ;;  %v6211_v34 = vld [vmem:[%s9536_s3 + $0x64] ss:$16 sps:$4 sm:$0xff]   ;;  %v6213_v35 = vld [vmem:[%s9536_s3 + $0x6c] ss:$16 sps:$4 sm:$0xff]   ;;  %v1098_v38 = vrot.slane %v6997_v36, %v6980_v31 }
   0xc   :  { %470 = vmatprep.subr.bf16.mxu0 %v6199_v21  ;;  %511 = vmatprep.subr.bf16.mxu1 %v6201_v22  ;;  %v7003_v37 = vld [vmem:[%s9535_s6 + $0x20] sm:$0xff]  ;;  %v7011_v39 = vld [vmem:[%s9538_s7 + $0x28] sm:$0xff]  ;;  %v7058_v52 = vld [vmem:[%s9535_s6 + $0x58] sm:$0xff] }
   0xd   :  { %v6215_v40 = vld [vmem:[%s9536_s3 + $0x60] ss:$16 sps:$4 sm:$0xff]   ;;  %v6216_v41 = vld [vmem:[%s9536_s3 + $0x68] ss:$16 sps:$4 sm:$0xff]   ;;  %v6217_v42 = vld [vmem:[%s9536_s3 + $0x44] ss:$16 sps:$4 sm:$0xff]  }
   0xe   :  { %3203 = vperm.xlu0 %6185, %v6893_v7   ;;  %3198 = vperm.xlu1 %6186, %v6899_v8   ;;  %v7025_v43 = vld [vmem:[%s9539_s0 + $0x4] sm:$0x3]  ;;  %v6219_v44 = vld [vmem:[%s9536_s3 + $0x4c] ss:$16 sps:$4 sm:$0xff]   ;;  %v6084_v47 = vld [vmem:[%s9537_s10 + $0x1] sm:$0x1] }
   0xf   :  { %471 = vmatpush1.bf16.msra.mxu0 %v6203_v25  ;;  %512 = vmatpush1.bf16.msra.mxu1 %v6204_v26  ;;  %v2146_v45 = vrot.slane %v7025_v43, %v6980_v31  ;;  %v7036_v46 = vld [vmem:[%s9538_s7 + $0x20] sm:$0xff]  ;;  %v6222_v49 = vld [vmem:[%s9536_s3 + $0x48] ss:$16 sps:$4 sm:$0xff]   ;;  %v6225_v51 = vld [vmem:[%s9536_s3 + $0x2c] ss:$16 sps:$4 sm:$0xff]  }
  0x10   :  { %472 = vmatprep.subr.bf16.mxu0 %v6205_v27  ;;  %513 = vmatprep.subr.bf16.mxu1 %v6207_v28  ;;  %v6221_v48 = vld [vmem:[%s9536_s3 + $0x40] ss:$16 sps:$4 sm:$0xff]   ;;  %v6223_v50 = vld [vmem:[%s9536_s3 + $0x24] ss:$16 sps:$4 sm:$0xff]   ;;  %v6228_v55 = vld [vmem:[%s9536_s3 + $0x28] ss:$16 sps:$4 sm:$0xff]  }
  0x11   :  { %v7063_v53 = vld [vmem:[%s9535_s6 + $0x50] sm:$0xff]  ;;  %v6231_v57 = vld [vmem:[%s9536_s3 + $0xc] ss:$16 sps:$4 sm:$0xff]   ;;  %v6234_v61 = vld [vmem:[%s9536_s3 + $0x8] ss:$16 sps:$4 sm:$0xff]  }
  0x12   :  { %3316 = vperm.xlu0 %6185, %v3313_v10   ;;  %3491 = vperm.xlu1 %6186, %v6910_v11   ;;  %v6227_v54 = vld [vmem:[%s9536_s3 + $0x20] ss:$16 sps:$4 sm:$0xff]   ;;  %v6229_v56 = vld [vmem:[%s9536_s3 + $0x4] ss:$16 sps:$4 sm:$0xff]   ;;  %v7081_v58 = vld [vmem:[%s9538_s7 + $0x58] sm:$0xff] }
  0x13   :  { %473 = vmatpush1.bf16.msra.mxu0 %v6209_v32  ;;  %514 = vmatpush1.bf16.msra.mxu1 %v6210_v33  ;;  %v7087_v59 = vld [vmem:[%s9535_s6 + $0x48] sm:$0xff]  ;;  %v6233_v60 = vld [vmem:[%s9536_s3] ss:$16 sps:$4 sm:$0xff]   ;;  %v6235_v62 = vld [vmem:[%s9536_s3 + $0x1e4] ss:$16 sps:$4 sm:$0xff]  }
  0x14   :  { %474 = vmatprep.subr.bf16.mxu0 %v6211_v34  ;;  %515 = vmatprep.subr.bf16.mxu1 %v6213_v35  ;;  %v6237_v63 = vld [vmem:[%s9536_s3 + $0x1ec] ss:$16 sps:$4 sm:$0xff]   ;;  %v7105_v0 = vld [vmem:[%s9538_s7 + $0x50] sm:$0xff]  ;;  %v6240_v3 = vld [vmem:[%s9536_s3 + $0x1e8] ss:$16 sps:$4 sm:$0xff]  }
  0x15   :  { %v7111_v1 = vld [vmem:[%s9540_s8 + $0x58] sm:$0xff]  ;;  %v6239_v2 = vld [vmem:[%s9536_s3 + $0x1e0] ss:$16 sps:$4 sm:$0xff]   ;;  %v6241_v4 = vld [vmem:[%s9536_s3 + $0x1c4] ss:$16 sps:$4 sm:$0xff]  }
  0x16   :  { %3486 = vperm.xlu0 %6185, %v6938_v20   ;;  %3532 = vperm.xlu1 %6186, %v6953_v24   ;;  %v6243_v9 = vld [vmem:[%s9536_s3 + $0x1cc] ss:$16 sps:$4 sm:$0xff]   ;;  %v7129_v10 = vld [vmem:[%s9535_s6 + $0x40] sm:$0xff]  ;;  %v6246_v14 = vld [vmem:[%s9536_s3 + $0x1c8] ss:$16 sps:$4 sm:$0xff]  }
  0x17   :  { %475 = vmatpush1.bf16.msra.mxu0 %v6215_v40  ;;  %516 = vmatpush1.bf16.msra.mxu1 %v6216_v41  ;;  %v7135_v12 = vld [vmem:[%s9538_s7 + $0x48] sm:$0xff]  ;;  %v6245_v13 = vld [vmem:[%s9536_s3 + $0x1c0] ss:$16 sps:$4 sm:$0xff]   ;;  %v6247_v16 = vld [vmem:[%s9536_s3 + $0x1a4] ss:$16 sps:$4 sm:$0xff]  }
  0x18   :  { %476 = vmatprep.subr.bf16.mxu0 %v6217_v42  ;;  %517 = vmatprep.subr.bf16.mxu1 %v6219_v44  ;;  %v6249_v17 = vld [vmem:[%s9536_s3 + $0x1ac] ss:$16 sps:$4 sm:$0xff]   ;;  %v7153_v18 = vld [vmem:[%s9540_s8 + $0x50] sm:$0xff]  ;;  %v7159_v19 = vld [vmem:[%s9538_s7 + $0x40] sm:$0xff] }
  0x19   :  { %v6251_v21 = vld [vmem:[%s9536_s3 + $0x1a0] ss:$16 sps:$4 sm:$0xff]   ;;  %v6252_v22 = vld [vmem:[%s9536_s3 + $0x1a8] ss:$16 sps:$4 sm:$0xff]   ;;  %v6253_v25 = vld [vmem:[%s9536_s3 + $0x184] ss:$16 sps:$4 sm:$0xff]  }
  0x1a   :  { %3481 = vperm.xlu0 %6185, %v6971_v29   ;;  %3527 = vperm.xlu1 %6186, %v6977_v30   ;;  %v6255_v26 = vld [vmem:[%s9536_s3 + $0x18c] ss:$16 sps:$4 sm:$0xff]   ;;  %v7183_v28 = vld [vmem:[%s9540_s8 + $0x40] sm:$0xff]  ;;  %v6258_v33 = vld [vmem:[%s9536_s3 + $0x188] ss:$16 sps:$4 sm:$0xff]  }
  0x1b   :  { %477 = vmatpush1.bf16.msra.mxu0 %v6221_v48  ;;  %518 = vmatpush1.bf16.msra.mxu1 %v6222_v49  ;;  %v7177_v27 = vld [vmem:[%s9540_s8 + $0x48] sm:$0xff]  ;;  %v6257_v32 = vld [vmem:[%s9536_s3 + $0x180] ss:$16 sps:$4 sm:$0xff]   ;;  %v6259_v34 = vld [vmem:[%s9536_s3 + $0x164] ss:$16 sps:$4 sm:$0xff]  }
  0x1c   :  { %478 = vmatprep.subr.bf16.mxu0 %v6223_v50  ;;  %519 = vmatprep.subr.bf16.mxu1 %v6225_v51  ;;  %v6261_v35 = vld [vmem:[%s9536_s3 + $0x16c] ss:$16 sps:$4 sm:$0xff]   ;;  %v6263_v40 = vld [vmem:[%s9536_s3 + $0x160] ss:$16 sps:$4 sm:$0xff]   ;;  %v6264_v41 = vld [vmem:[%s9536_s3 + $0x168] ss:$16 sps:$4 sm:$0xff]  }
  0x1d   :  { %v6265_v42 = vld [vmem:[%s9536_s3 + $0x144] ss:$16 sps:$4 sm:$0xff]   ;;  %v6267_v44 = vld [vmem:[%s9536_s3 + $0x14c] ss:$16 sps:$4 sm:$0xff]   ;;  %v6270_v48 = vld [vmem:[%s9536_s3 + $0x148] ss:$16 sps:$4 sm:$0xff]  }
  0x1e   :  { %3476 = vperm.xlu0 %6185, %v7003_v37   ;;  %3522 = vperm.xlu1 %6186, %v7011_v39   ;;  %v6271_v49 = vld [vmem:[%s9536_s3 + $0x124] ss:$16 sps:$4 sm:$0xff]   ;;  %v6275_v50 = vld [vmem:[%s9536_s3 + $0x120] ss:$16 sps:$4 sm:$0xff]   ;;  %v6276_v51 = vld [vmem:[%s9536_s3 + $0x128] ss:$16 sps:$4 sm:$0xff]  }
  0x1f   :  { %479 = vmatpush1.bf16.msra.mxu0 %v6227_v54  ;;  %520 = vmatpush1.bf16.msra.mxu1 %v6228_v55  ;;  %v6281_v54 = vld [vmem:[%s9536_s3 + $0x100] ss:$16 sps:$4 sm:$0xff]   ;;  %v6282_v55 = vld [vmem:[%s9536_s3 + $0x108] ss:$16 sps:$4 sm:$0xff]  }
  0x20   :  { %480 = vmatprep.subr.bf16.mxu0 %v6229_v56  ;;  %521 = vmatprep.subr.bf16.mxu1 %v6231_v57  ;;  %v6285_v56 = vld [vmem:[%s9536_s3 + $0x2e4] ss:$16 sps:$4 sm:$0xff]   ;;  %v6146_v57 = vld [vmem:[%s9537_s10 + $0x1] sm:$0x1] }
  0x22   :  { %3517 = vperm.xlu0 %6185, %v7036_v46   ;;  %3670 = vperm.xlu1 %6186, %v6084_v47   ;;  %v6269_v47 = vld [vmem:[%s9536_s3 + $0x140] ss:$16 sps:$4 sm:$0xff]  }
  0x23   :  { %481 = vmatpush1.bf16.msra.mxu0 %v6233_v60  ;;  %522 = vmatpush1.bf16.msra.mxu1 %v6234_v61 }
  0x24   :  { %482 = vmatprep.subr.bf16.mxu0 %v6235_v62  ;;  %523 = vmatprep.subr.bf16.mxu1 %v6237_v63 }
  0x26   :  { %3844 = vperm.xlu0 %6185, %v7058_v52   ;;  %3839 = vperm.xlu1 %6186, %v7063_v53  }
  0x27   :  { %483 = vmatpush2.bf16.msra.mxu0 %v6239_v2  ;;  %524 = vmatpush2.bf16.msra.mxu1 %v6240_v3 }
  0x28   :  { %484 = vmatprep.subr.bf16.mxu0 %v6241_v4  ;;  %525 = vmatprep.subr.bf16.mxu1 %v6243_v9 }
  0x2a   :  { %3885 = vperm.xlu0 %6185, %v7081_v58   ;;  %3834 = vperm.xlu1 %6186, %v7087_v59  }
  0x2b   :  { %485 = vmatpush2.bf16.msra.mxu0 %v6245_v13  ;;  %526 = vmatpush2.bf16.msra.mxu1 %v6246_v14 }
  0x2c   :  { %486 = vmatprep.subr.bf16.mxu0 %v6247_v16  ;;  %527 = vmatprep.subr.bf16.mxu1 %v6249_v17  ;;  %v6283_v16 = vld [vmem:[%s9536_s3 + $0x2e0] ss:$16 sps:$4 sm:$0xff]   ;;  %v6286_v17 = vld [vmem:[%s9536_s3 + $0x2e8] ss:$16 sps:$4 sm:$0xff]  }
  0x2e   :  { %3880 = vperm.xlu0 %6185, %v7105_v0   ;;  %3926 = vperm.xlu1 %6186, %v7111_v1  }
  0x2f   :  { %487 = vmatpush2.bf16.msra.mxu0 %v6251_v21  ;;  %528 = vmatpush2.bf16.msra.mxu1 %v6252_v22  ;;  %v6291_v21 = vld [vmem:[%s9536_s3 + $0x2c4] ss:$16 sps:$4 sm:$0xff]   ;;  %v6289_v22 = vld [vmem:[%s9536_s3 + $0x2c0] ss:$16 sps:$4 sm:$0xff]  }
  0x30   :  { %488 = vmatprep.subr.bf16.mxu0 %v6253_v25  ;;  %529 = vmatprep.subr.bf16.mxu1 %v6255_v26  ;;  %v6292_v25 = vld [vmem:[%s9536_s3 + $0x2c8] ss:$16 sps:$4 sm:$0xff]   ;;  %v6294_v26 = vld [vmem:[%s9536_s3 + $0x2cc] ss:$16 sps:$4 sm:$0xff]  }
  0x32   :  { %3829 = vperm.xlu0 %6185, %v7129_v10   ;;  %3875 = vperm.xlu1 %6186, %v7135_v12  }
  0x33   :  { %489 = vmatpush2.bf16.msra.mxu0 %v6257_v32  ;;  %530 = vmatpush2.bf16.msra.mxu1 %v6258_v33  ;;  %v6295_v32 = vld [vmem:[%s9536_s3 + $0x2a0] ss:$16 sps:$4 sm:$0xff]   ;;  %v6298_v33 = vld [vmem:[%s9536_s3 + $0x2a8] ss:$16 sps:$4 sm:$0xff]  }
  0x34   :  { %490 = vmatprep.subr.bf16.mxu0 %v6259_v34  ;;  %531 = vmatprep.subr.bf16.mxu1 %v6261_v35  ;;  %v6303_v34 = vld [vmem:[%s9536_s3 + $0x284] ss:$16 sps:$4 sm:$0xff]   ;;  %v6306_v35 = vld [vmem:[%s9536_s3 + $0x28c] ss:$16 sps:$4 sm:$0xff]  }
  0x36   :  { %3921 = vperm.xlu0 %6185, %v7153_v18   ;;  %3870 = vperm.xlu1 %6186, %v7159_v19  }
  0x37   :  { %491 = vmatpush2.bf16.msra.mxu0 %v6263_v40  ;;  %532 = vmatpush2.bf16.msra.mxu1 %v6264_v41  ;;  %v6301_v40 = vld [vmem:[%s9536_s3 + $0x280] ss:$16 sps:$4 sm:$0xff]   ;;  %v6304_v41 = vld [vmem:[%s9536_s3 + $0x288] ss:$16 sps:$4 sm:$0xff]  }
  0x38   :  { %492 = vmatprep.subr.bf16.mxu0 %v6265_v42  ;;  %533 = vmatprep.subr.bf16.mxu1 %v6267_v44  ;;  %v6309_v44 = vld [vmem:[%s9536_s3 + $0x264] ss:$16 sps:$4 sm:$0xff]  }
  0x3a   :  { %3916 = vperm.xlu0 %6185, %v7177_v27   ;;  %3911 = vperm.xlu1 %6186, %v7183_v28  }
  0x3b   :  { %493 = vmatpush2.bf16.msra.mxu0 %v6269_v47  ;;  %534 = vmatpush2.bf16.msra.mxu1 %v6270_v48  ;;  %v6312_v47 = vld [vmem:[%s9536_s3 + $0x26c] ss:$16 sps:$4 sm:$0xff]  }
  0x3c   :  { %494 = vmatprep.subr.bf16.mxu0 %v6271_v49  ;;  %v6307_v49 = vld [vmem:[%s9536_s3 + $0x260] ss:$16 sps:$4 sm:$0xff]  }
  0x3e   :  { %4287 = vperm.xlu0 %6185, %v6882_v5   ;;  %4282 = vperm.xlu1 %6186, %v6887_v6   ;;  %v6273_v5 = vld [vmem:[%s9536_s3 + $0x12c] ss:$16 sps:$4 sm:$0xff]   ;;  %v4387_v6 = vld [vmem:[%s9537_s10] sm:$0x1] }
  0x3f   :  { %535 = vmatprep.subr.bf16.mxu1 %v6273_v5  ;;  %495 = vmatpush2.bf16.msra.mxu0 %v6275_v50  ;;  %v6310_v5 = vld [vmem:[%s9536_s3 + $0x268] ss:$16 sps:$4 sm:$0xff]   ;;  %v6318_v50 = vld [vmem:[%s9536_s3 + $0x24c] ss:$16 sps:$4 sm:$0xff]  }
  0x40   :  { %536 = vmatpush2.bf16.msra.mxu1 %v6276_v51 }
  0x42   :  { %4277 = vperm.xlu0 %6185, %v6893_v7   ;;  %4272 = vperm.xlu1 %6186, %v6899_v8   ;;  %v6277_v7 = vld [vmem:[%s9536_s3 + $0x104] ss:$16 sps:$4 sm:$0xff]   ;;  %v6279_v8 = vld [vmem:[%s9536_s3 + $0x10c] ss:$16 sps:$4 sm:$0xff]  }
  0x43   :  { %496 = vmatprep.subr.bf16.mxu0 %v6277_v7  ;;  %537 = vmatprep.subr.bf16.mxu1 %v6279_v8  ;;  %v6313_v7 = vld [vmem:[%s9536_s3 + $0x240] ss:$16 sps:$4 sm:$0xff]   ;;  %v6316_v8 = vld [vmem:[%s9536_s3 + $0x248] ss:$16 sps:$4 sm:$0xff]  }
  0x44   :  { %497 = vmatpush2.bf16.msra.mxu0 %v6281_v54  ;;  %538 = vmatpush2.bf16.msra.mxu1 %v6282_v55  ;;  %v6321_v54 = vld [vmem:[%s9536_s3 + $0x224] ss:$16 sps:$4 sm:$0xff]   ;;  %v6324_v55 = vld [vmem:[%s9536_s3 + $0x22c] ss:$16 sps:$4 sm:$0xff]  }
  0x45   :  { %969 = vmatprep.subr.bf16.mxu0 %v6285_v56 }
  0x46   :  { %4390 = vperm.xlu0 %6185, %v4387_v6   ;;  %4563 = vperm.xlu1 %6186, %v6910_v11   ;;  %v6288_v11 = vld [vmem:[%s9536_s3 + $0x2ec] ss:$16 sps:$4 sm:$0xff]   ;;  %v6315_v6 = vld [vmem:[%s9536_s3 + $0x244] ss:$16 sps:$4 sm:$0xff]  }
  0x47   :  { %1010 = vmatprep.subr.bf16.mxu1 %v6288_v11  ;;  %v6319_v11 = vld [vmem:[%s9536_s3 + $0x220] ss:$16 sps:$4 sm:$0xff]  }
  0x4a   :  { %4558 = vperm.xlu0 %6185, %v6938_v20   ;;  %4603 = vperm.xlu1 %6186, %v6953_v24   ;;  %v6116_v20 = vld [vmem:[%s9537_s10 + $0x2] sm:$0x1] }
  0x4b   :  { %v6178_v24 = vld [vmem:[%s9537_s10 + $0x2] sm:$0x1] }
  0x4e   :  { %4553 = vperm.xlu0 %6185, %v6971_v29   ;;  %4598 = vperm.xlu1 %6186, %v6977_v30   ;;  %v7284_v29 = vsub.s32 0, %v6948_v23  ;;  %v38_v30 = vld [vmem:[%s9539_s0] sm:$0x3] }
  0x52   :  { %4548 = vperm.xlu0 %6185, %v7003_v37   ;;  %4593 = vperm.xlu1 %6186, %v7011_v39   ;;  %v1094_v37 = vrot.slane %v6997_v36, %v7284_v29  ;;  %v2142_v39 = vrot.slane %v7025_v43, %v7284_v29 }
  0x56   :  { %4588 = vperm.xlu0 %6185, %v7036_v46   ;;  %4738 = vperm.xlu1 %6186, %v6146_v57   ;;  %v6322_v57 = vld [vmem:[%s9536_s3 + $0x228] ss:$16 sps:$4 sm:$0xff]  }
  0x5a   :  { %4911 = vperm.xlu0 %6185, %v7058_v52   ;;  %4906 = vperm.xlu1 %6186, %v7063_v53   ;;  %v49_v52 = vrot.slane %v38_v30, %v7284_v29  ;;  %v53_v53 = vrot.slane %v38_v30, %v6980_v31  ;;  %v6325_v30 = vld [vmem:[%s9536_s3 + $0x200] ss:$16 sps:$4 sm:$0xff]  }
  0x5e   :  { %4951 = vperm.xlu0 %6185, %v7081_v58   ;;  %4901 = vperm.xlu1 %6186, %v7087_v59  }
  0x62   :  { %4946 = vperm.xlu0 %6185, %v7105_v0   ;;  %4991 = vperm.xlu1 %6186, %v7111_v1  }
  0x66   :  { %4896 = vperm.xlu0 %6185, %v7129_v10   ;;  %4941 = vperm.xlu1 %6186, %v7135_v12  }
  0x6a   :  { %4986 = vperm.xlu0 %6185, %v7153_v18   ;;  %4936 = vperm.xlu1 %6186, %v7159_v19  }
  0x6e   :  { %4981 = vperm.xlu0 %6185, %v7177_v27   ;;  %4976 = vperm.xlu1 %6186, %v7183_v28   ;;  %v6297_v27 = vld [vmem:[%s9536_s3 + $0x2a4] ss:$16 sps:$4 sm:$0xff]   ;;  %v6300_v28 = vld [vmem:[%s9536_s3 + $0x2ac] ss:$16 sps:$4 sm:$0xff]  }
  0x72   :  { %4080 = vperm.xlu0 %6185, %v6116_v20   ;;  %5142 = vperm.xlu1 %6186, %v6178_v24   ;;  %v6327_v20 = vld [vmem:[%s9536_s3 + $0x204] ss:$16 sps:$4 sm:$0xff]   ;;  %v6330_v24 = vld [vmem:[%s9536_s3 + $0x20c] ss:$16 sps:$4 sm:$0xff]  }
  0x7d   :  { %v43_v46 = vpop.permute.xlu0 %42  ;;  %v7353_v42 = vpop.permute.xlu1 %1107 }
  0x7e   :  { %v7295_v58 = vmul.f32 %v1094_v37, %v43_v46  ;;  %v1102_v59 = vmul.f32 %v1098_v38, %v43_v46  ;;  %v7300_v60 = vmul.f32 %v2142_v39, %v43_v46  ;;  %v7305_v61 = vmul.f32 %v2146_v45, %v43_v46  ;;  %v6328_v37 = vld [vmem:[%s9536_s3 + $0x208] ss:$16 sps:$4 sm:$0xff]   ;;  %v6333_v39 = vld [vmem:[%s9536_s3 + $0x3e4] ss:$16 sps:$4 sm:$0xff]  }
  0x7f   :  { %v56_v63 = vmul.f32 %v49_v52, %v43_v46  ;;  %v57_v0 = vmul.f32 %v53_v53, %v43_v46  ;;  %v6336_v46 = vld [vmem:[%s9536_s3 + $0x3ec] ss:$16 sps:$4 sm:$0xff]   ;;  %v6331_v52 = vld [vmem:[%s9536_s3 + $0x3e0] ss:$16 sps:$4 sm:$0xff]   ;;  %v6334_v53 = vld [vmem:[%s9536_s3 + $0x3e8] ss:$16 sps:$4 sm:$0xff]  }
  0x80   :  { %v7362_v48 = vadd.f32 %v7353_v42, %v1102_v59  ;;  %v6339_v59 = vld [vmem:[%s9536_s3 + $0x3c4] ss:$16 sps:$4 sm:$0xff]  }
  0x81   :  { %v62_v62 = vpop.permute.xlu0 %61 }
  0x82   :  { %v64_v1 = vadd.f32 %v62_v62, %v56_v63  ;;  %v65_v2 = vadd.f32 %v62_v62, %v57_v0  ;;  %v1113_v51 = vsub.f32 0.0, %v7362_v48  ;;  %v6342_v62 = vld [vmem:[%s9536_s3 + $0x3cc] ss:$16 sps:$4 sm:$0xff]   ;;  %v6337_v63 = vld [vmem:[%s9536_s3 + $0x3c0] ss:$16 sps:$4 sm:$0xff]  }
  0x83   :  { %v6340_v0 = vld [vmem:[%s9536_s3 + $0x3c8] ss:$16 sps:$4 sm:$0xff]  }
  0x84   :  { %v66_v3 = vsub.f32 0.0, %v64_v1  ;;  %v67_v4 = vsub.f32 0.0, %v65_v2  ;;  %v1116_v56 = vmul.f32 1.442695, %v1113_v51  ;;  %v6388_v51 = vld [vmem:[%s9536_s3 + $0x4c8] ss:$16 sps:$4 sm:$0xff]  }
  0x86   :  { %v68_v9 = vmul.f32 1.442695, %v66_v3  ;;  %v70_v10 = vmul.f32 1.442695, %v67_v4  ;;  %v6343_v3 = vld [vmem:[%s9536_s3 + $0x3a0] ss:$16 sps:$4 sm:$0xff]  }
  0x87   :  { %v6346_v4 = vld [vmem:[%s9536_s3 + $0x3a8] ss:$16 sps:$4 sm:$0xff]  }
  0x88   :  { %6763 = vpow2.f32 %v68_v9 }
  0x89   :  { %6765 = vpow2.f32 %v70_v10  ;;  %v6351_v10 = vld [vmem:[%s9536_s3 + $0x384] ss:$16 sps:$4 sm:$0xff]  }
  0x95   :  { %v6764_v36 = vpop.eup %6763 }
  0x96   :  { %v6766_v38 = vpop.eup %6765  ;;  %v72_v12 = vadd.f32 1.0, %v6764_v36  ;;  %v6354_v36 = vld [vmem:[%s9536_s3 + $0x38c] ss:$16 sps:$4 sm:$0xff]  }
  0x97   :  { %v73_v13 = vadd.f32 1.0, %v6766_v38 }
  0x98   :  { %6767 = vrcp.f32 %v72_v12  ;;  %v6349_v12 = vld [vmem:[%s9536_s3 + $0x380] ss:$16 sps:$4 sm:$0xff]  }
  0x99   :  { %6769 = vrcp.f32 %v73_v13  ;;  %v6352_v13 = vld [vmem:[%s9536_s3 + $0x388] ss:$16 sps:$4 sm:$0xff]  }
  0x9a   :  { %6771 = vpow2.f32 %v1116_v56  ;;  %v6402_v56 = vld [vmem:[%s9536_s3 + $0x48c] ss:$16 sps:$4 sm:$0xff]  }
  0xa5   :  { %v6768_v31 = vpop.eup %6767 }
  0xa6   :  { %v6770_v43 = vpop.eup %6769  ;;  %v78_v45 = vmul.f32 %v6768_v31, %v64_v1  ;;  %v6345_v1 = vld [vmem:[%s9536_s3 + $0x3a4] ss:$16 sps:$4 sm:$0xff]  }
  0xa7   :  { %v79_v14 = vmul.f32 %v6770_v43, %v65_v2  ;;  %v6348_v2 = vld [vmem:[%s9536_s3 + $0x3ac] ss:$16 sps:$4 sm:$0xff]   ;;  %v6772_v9 = vpop.eup %6771  ;;  %v6357_v31 = vld [vmem:[%s9536_s3 + $0x364] ss:$16 sps:$4 sm:$0xff]  }
  0xa8   :  { %v7313_v18 = vpack.c.bf16 %v78_v45, %v78_v45  ;;  %v1119_v38 = vadd.f32 1.0, %v6772_v9  ;;  %v6360_v43 = vld [vmem:[%s9536_s3 + $0x36c] ss:$16 sps:$4 sm:$0xff]   ;;  %v6355_v45 = vld [vmem:[%s9536_s3 + $0x360] ss:$16 sps:$4 sm:$0xff]  }
  0xa9   :  { %v81_v19 = vpack.c.bf16 %v79_v14, %v79_v14  ;;  %v6358_v14 = vld [vmem:[%s9536_s3 + $0x368] ss:$16 sps:$4 sm:$0xff]  }
  0xaa   :  { %6773 = vrcp.f32 %v1119_v38  ;;  %v6424_v9 = vld [vmem:[%s9536_s3 + $0x408] ss:$16 sps:$4 sm:$0xff]   ;;  %v6427_v38 = vld [vmem:[%s9536_s3 + $0x5e0] ss:$16 sps:$4 sm:$0xff]  }
  0xab   :  { %498 = vmatprep.mubr.bf16.mxu0 %v81_v19  ;;  %539 = vmatprep.mubr.bf16.mxu1 %v81_v19 }
  0xac   :  { %499 = vmatmul.mubr.bf16.vlgmr.msra.gmra.mxu0 %v7313_v18  ;;  %540 = vmatmul.mubr.bf16.vlgmr.msra.gmra.mxu1 %v7313_v18 }
  0xad   :  { %970 = vmatpush1.bf16.msra.mxu0 %v6283_v16  ;;  %1011 = vmatpush1.bf16.msra.mxu1 %v6286_v17  ;;  %v6363_v16 = vld [vmem:[%s9536_s3 + $0x344] ss:$16 sps:$4 sm:$0xff]   ;;  %v6366_v17 = vld [vmem:[%s9536_s3 + $0x34c] ss:$16 sps:$4 sm:$0xff]  }
  0xae   :  { %1001 = vmatprep.mubr.bf16.mxu0 %v81_v19  ;;  %1042 = vmatprep.mubr.bf16.mxu1 %v81_v19  ;;  %v6361_v19 = vld [vmem:[%s9536_s3 + $0x340] ss:$16 sps:$4 sm:$0xff]  }
  0xaf   :  { %971 = vmatprep.subr.bf16.mxu0 %v6291_v21  ;;  %1012 = vmatprep.subr.bf16.mxu1 %v6294_v26  ;;  %v6364_v21 = vld [vmem:[%s9536_s3 + $0x348] ss:$16 sps:$4 sm:$0xff]   ;;  %v6367_v26 = vld [vmem:[%s9536_s3 + $0x320] ss:$16 sps:$4 sm:$0xff]  }
  0xb1   :  { %972 = vmatpush1.bf16.msra.mxu0 %v6289_v22  ;;  %1013 = vmatpush1.bf16.msra.mxu1 %v6292_v25  ;;  %v6369_v22 = vld [vmem:[%s9536_s3 + $0x324] ss:$16 sps:$4 sm:$0xff]   ;;  %v6372_v25 = vld [vmem:[%s9536_s3 + $0x32c] ss:$16 sps:$4 sm:$0xff]  }
  0xb2   :  { %973 = vmatprep.subr.bf16.mxu0 %v6297_v27  ;;  %1014 = vmatprep.subr.bf16.mxu1 %v6300_v28  ;;  %v6370_v27 = vld [vmem:[%s9536_s3 + $0x328] ss:$16 sps:$4 sm:$0xff]   ;;  %v6375_v28 = vld [vmem:[%s9536_s3 + $0x304] ss:$16 sps:$4 sm:$0xff]  }
  0xb5   :  { %974 = vmatpush1.bf16.msra.mxu0 %v6295_v32  ;;  %1015 = vmatpush1.bf16.msra.mxu1 %v6298_v33  ;;  %v6378_v32 = vld [vmem:[%s9536_s3 + $0x30c] ss:$16 sps:$4 sm:$0xff]  }
  0xb6   :  { %975 = vmatprep.subr.bf16.mxu0 %v6303_v34  ;;  %1016 = vmatprep.subr.bf16.mxu1 %v6306_v35  ;;  %v6373_v34 = vld [vmem:[%s9536_s3 + $0x300] ss:$16 sps:$4 sm:$0xff]   ;;  %v6376_v35 = vld [vmem:[%s9536_s3 + $0x308] ss:$16 sps:$4 sm:$0xff]  }
  0xb7   :  { %v6774_v33 = vpop.eup %6773 }
  0xb9   :  { %976 = vmatpush1.bf16.msra.mxu0 %v6301_v40  ;;  %1017 = vmatpush1.bf16.msra.mxu1 %v6304_v41  ;;  %v6381_v40 = vld [vmem:[%s9536_s3 + $0x4e4] ss:$16 sps:$4 sm:$0xff]   ;;  %v6384_v41 = vld [vmem:[%s9536_s3 + $0x4ec] ss:$16 sps:$4 sm:$0xff]  }
  0xba   :  { %977 = vmatprep.subr.bf16.mxu0 %v6309_v44  ;;  %1018 = vmatprep.subr.bf16.mxu1 %v6312_v47  ;;  %v1125_v44 = vmul.f32 %v6774_v33, %v7362_v48  ;;  %v6379_v47 = vld [vmem:[%s9536_s3 + $0x4e0] ss:$16 sps:$4 sm:$0xff]   ;;  %v6390_v48 = vld [vmem:[%s9536_s3 + $0x4cc] ss:$16 sps:$4 sm:$0xff]  }
  0xbb   :  { %v6456_v33 = vld [vmem:[%s9536_s3 + $0x56c] ss:$16 sps:$4 sm:$0xff]  }
  0xbd   :  { %978 = vmatpush1.bf16.msra.mxu0 %v6307_v49  ;;  %1019 = vmatpush1.bf16.msra.mxu1 %v6310_v5  ;;  %v6382_v49 = vld [vmem:[%s9536_s3 + $0x4e8] ss:$16 sps:$4 sm:$0xff]   ;;  %v7516_v5 = vpack.c.bf16 %v1125_v44, %v1125_v44  ;;  %v6457_v44 = vld [vmem:[%s9536_s3 + $0x540] ss:$16 sps:$4 sm:$0xff]  }
  0xbe   :  { %979 = vmatprep.subr.bf16.mxu0 %v6315_v6  ;;  %1020 = vmatprep.subr.bf16.mxu1 %v6318_v50  ;;  %v6387_v6 = vld [vmem:[%s9536_s3 + $0x4c4] ss:$16 sps:$4 sm:$0xff]   ;;  %v6385_v50 = vld [vmem:[%s9536_s3 + $0x4c0] ss:$16 sps:$4 sm:$0xff]  }
  0xc1   :  { %980 = vmatpush1.bf16.msra.mxu0 %v6313_v7  ;;  %1021 = vmatpush1.bf16.msra.mxu1 %v6316_v8  ;;  %v6393_v7 = vld [vmem:[%s9536_s3 + $0x4a4] ss:$16 sps:$4 sm:$0xff]   ;;  %v6391_v8 = vld [vmem:[%s9536_s3 + $0x4a0] ss:$16 sps:$4 sm:$0xff]  }
  0xc2   :  { %981 = vmatprep.subr.bf16.mxu0 %v6321_v54  ;;  %1022 = vmatprep.subr.bf16.mxu1 %v6324_v55  ;;  %v6394_v54 = vld [vmem:[%s9536_s3 + $0x4a8] ss:$16 sps:$4 sm:$0xff]   ;;  %v6399_v55 = vld [vmem:[%s9536_s3 + $0x484] ss:$16 sps:$4 sm:$0xff]  }
  0xc5   :  { %982 = vmatpush1.bf16.msra.mxu0 %v6319_v11  ;;  %1023 = vmatpush1.bf16.msra.mxu1 %v6322_v57  ;;  %v6397_v11 = vld [vmem:[%s9536_s3 + $0x480] ss:$16 sps:$4 sm:$0xff]   ;;  %v7557_v57 = vadd.f32 %v7353_v42, %v7295_v58 }
  0xc6   :  { %983 = vmatprep.subr.bf16.mxu0 %v6327_v20  ;;  %1024 = vmatprep.subr.bf16.mxu1 %v6330_v24  ;;  %v6400_v20 = vld [vmem:[%s9536_s3 + $0x488] ss:$16 sps:$4 sm:$0xff]   ;;  %v6405_v24 = vld [vmem:[%s9536_s3 + $0x464] ss:$16 sps:$4 sm:$0xff]   ;;  %v6403_v58 = vld [vmem:[%s9536_s3 + $0x460] ss:$16 sps:$4 sm:$0xff]  }
  0xc7   :  { %v1112_v42 = vsub.f32 0.0, %v7557_v57 }
  0xc9   :  { %984 = vmatpush1.bf16.msra.mxu0 %v6325_v30  ;;  %1025 = vmatpush1.bf16.msra.mxu1 %v6328_v37  ;;  %v6408_v30 = vld [vmem:[%s9536_s3 + $0x46c] ss:$16 sps:$4 sm:$0xff]   ;;  %v6406_v37 = vld [vmem:[%s9536_s3 + $0x468] ss:$16 sps:$4 sm:$0xff]  }
  0xca   :  { %985 = vmatprep.subr.bf16.mxu0 %v6333_v39  ;;  %1026 = vmatprep.subr.bf16.mxu1 %v6336_v46  ;;  %v6411_v39 = vld [vmem:[%s9536_s3 + $0x444] ss:$16 sps:$4 sm:$0xff]   ;;  %v6414_v46 = vld [vmem:[%s9536_s3 + $0x44c] ss:$16 sps:$4 sm:$0xff]  }
  0xcd   :  { %986 = vmatpush2.bf16.msra.mxu0 %v6331_v52  ;;  %1027 = vmatpush2.bf16.msra.mxu1 %v6334_v53  ;;  %v6409_v52 = vld [vmem:[%s9536_s3 + $0x440] ss:$16 sps:$4 sm:$0xff]   ;;  %v1114_v53 = vmul.f32 1.442695, %v1112_v42 }
  0xce   :  { %987 = vmatprep.subr.bf16.mxu0 %v6339_v59  ;;  %1028 = vmatprep.subr.bf16.mxu1 %v6342_v62  ;;  %v6412_v59 = vld [vmem:[%s9536_s3 + $0x448] ss:$16 sps:$4 sm:$0xff]   ;;  %v6417_v62 = vld [vmem:[%s9536_s3 + $0x424] ss:$16 sps:$4 sm:$0xff]   ;;  %v6481_v42 = vld [vmem:[%s9536_s3 + $0x6c0] ss:$16 sps:$4 sm:$0xff]  }
  0xcf   :  { %6775 = vpow2.f32 %v1114_v53  ;;  %v6490_v53 = vld [vmem:[%s9536_s3 + $0x6a8] ss:$16 sps:$4 sm:$0xff]  }
  0xd1   :  { %988 = vmatpush2.bf16.msra.mxu0 %v6337_v63  ;;  %1029 = vmatpush2.bf16.msra.mxu1 %v6340_v0  ;;  %v6420_v63 = vld [vmem:[%s9536_s3 + $0x42c] ss:$16 sps:$4 sm:$0xff]   ;;  %v6415_v0 = vld [vmem:[%s9536_s3 + $0x420] ss:$16 sps:$4 sm:$0xff]  }
  0xd2   :  { %989 = vmatprep.subr.bf16.mxu0 %v6345_v1  ;;  %1030 = vmatprep.subr.bf16.mxu1 %v6348_v2  ;;  %v6418_v1 = vld [vmem:[%s9536_s3 + $0x428] ss:$16 sps:$4 sm:$0xff]   ;;  %v6423_v2 = vld [vmem:[%s9536_s3 + $0x404] ss:$16 sps:$4 sm:$0xff]  }
  0xd5   :  { %990 = vmatpush2.bf16.msra.mxu0 %v6343_v3  ;;  %1031 = vmatpush2.bf16.msra.mxu1 %v6346_v4  ;;  %v6426_v3 = vld [vmem:[%s9536_s3 + $0x40c] ss:$16 sps:$4 sm:$0xff]   ;;  %v6421_v4 = vld [vmem:[%s9536_s3 + $0x400] ss:$16 sps:$4 sm:$0xff]  }
  0xd6   :  { %991 = vmatprep.subr.bf16.mxu0 %v6351_v10  ;;  %1032 = vmatprep.subr.bf16.mxu1 %v6354_v36  ;;  %v6429_v10 = vld [vmem:[%s9536_s3 + $0x5e4] ss:$16 sps:$4 sm:$0xff]   ;;  %v6432_v36 = vld [vmem:[%s9536_s3 + $0x5ec] ss:$16 sps:$4 sm:$0xff]  }
  0xd9   :  { %992 = vmatpush2.bf16.msra.mxu0 %v6349_v12  ;;  %1033 = vmatpush2.bf16.msra.mxu1 %v6352_v13  ;;  %v6430_v12 = vld [vmem:[%s9536_s3 + $0x5e8] ss:$16 sps:$4 sm:$0xff]   ;;  %v6435_v13 = vld [vmem:[%s9536_s3 + $0x5c4] ss:$16 sps:$4 sm:$0xff]  }
  0xda   :  { %993 = vmatprep.subr.bf16.mxu0 %v6357_v31  ;;  %1034 = vmatprep.subr.bf16.mxu1 %v6360_v43  ;;  %v6438_v31 = vld [vmem:[%s9536_s3 + $0x5cc] ss:$16 sps:$4 sm:$0xff]   ;;  %v6433_v43 = vld [vmem:[%s9536_s3 + $0x5c0] ss:$16 sps:$4 sm:$0xff]  }
  0xdd   :  { %994 = vmatpush2.bf16.msra.mxu0 %v6355_v45  ;;  %1035 = vmatpush2.bf16.msra.mxu1 %v6358_v14  ;;  %v6436_v45 = vld [vmem:[%s9536_s3 + $0x5c8] ss:$16 sps:$4 sm:$0xff]   ;;  %v6441_v14 = vld [vmem:[%s9536_s3 + $0x5a4] ss:$16 sps:$4 sm:$0xff]  }
  0xde   :  { %995 = vmatprep.subr.bf16.mxu0 %v6363_v16  ;;  %1036 = vmatprep.subr.bf16.mxu1 %v6366_v17  ;;  %v6776_v16 = vpop.eup %6775  ;;  %v6444_v17 = vld [vmem:[%s9536_s3 + $0x5ac] ss:$16 sps:$4 sm:$0xff]  }
  0xe1   :  { %996 = vmatpush2.bf16.msra.mxu0 %v6361_v19  ;;  %1037 = vmatpush2.bf16.msra.mxu1 %v6364_v21  ;;  %v6439_v19 = vld [vmem:[%s9536_s3 + $0x5a0] ss:$16 sps:$4 sm:$0xff]   ;;  %v1118_v21 = vadd.f32 1.0, %v6776_v16  ;;  %v6519_v16 = vld [vmem:[%s9536_s3 + $0x604] ss:$16 sps:$4 sm:$0xff]  }
  0xe2   :  { %997 = vmatprep.subr.bf16.mxu0 %v6369_v22  ;;  %1038 = vmatprep.subr.bf16.mxu1 %v6372_v25  ;;  %v6442_v22 = vld [vmem:[%s9536_s3 + $0x5a8] ss:$16 sps:$4 sm:$0xff]   ;;  %v6447_v25 = vld [vmem:[%s9536_s3 + $0x584] ss:$16 sps:$4 sm:$0xff]  }
  0xe3   :  { %6777 = vrcp.f32 %v1118_v21  ;;  %v6520_v21 = vld [vmem:[%s9536_s3 + $0x608] ss:$16 sps:$4 sm:$0xff]  }
  0xe5   :  { %998 = vmatpush2.bf16.msra.mxu0 %v6367_v26  ;;  %1039 = vmatpush2.bf16.msra.mxu1 %v6370_v27  ;;  %v6450_v26 = vld [vmem:[%s9536_s3 + $0x58c] ss:$16 sps:$4 sm:$0xff]   ;;  %v6445_v27 = vld [vmem:[%s9536_s3 + $0x580] ss:$16 sps:$4 sm:$0xff]  }
  0xe6   :  { %999 = vmatprep.subr.bf16.mxu0 %v6375_v28  ;;  %1040 = vmatprep.subr.bf16.mxu1 %v6378_v32  ;;  %v6448_v28 = vld [vmem:[%s9536_s3 + $0x588] ss:$16 sps:$4 sm:$0xff]   ;;  %v6453_v32 = vld [vmem:[%s9536_s3 + $0x564] ss:$16 sps:$4 sm:$0xff]  }
  0xe9   :  { %1000 = vmatpush2.bf16.msra.mxu0 %v6373_v34  ;;  %1041 = vmatpush2.bf16.msra.mxu1 %v6376_v35  ;;  %v6451_v34 = vld [vmem:[%s9536_s3 + $0x560] ss:$16 sps:$4 sm:$0xff]   ;;  %v6454_v35 = vld [vmem:[%s9536_s3 + $0x568] ss:$16 sps:$4 sm:$0xff]  }
  0xea   :  { %1513 = vmatprep.subr.bf16.mxu0 %v6381_v40  ;;  %1554 = vmatprep.subr.bf16.mxu1 %v6384_v41  ;;  %v6459_v40 = vld [vmem:[%s9536_s3 + $0x544] ss:$16 sps:$4 sm:$0xff]   ;;  %v6462_v41 = vld [vmem:[%s9536_s3 + $0x54c] ss:$16 sps:$4 sm:$0xff]  }
  0xec   :  { %1002 = vmatmul.mubr.bf16.vlgmr.msra.gmra.mxu0 %v7313_v18  ;;  %1043 = vmatmul.mubr.bf16.vlgmr.msra.gmra.mxu1 %v7313_v18  ;;  %v6396_v18 = vld [vmem:[%s9536_s3 + $0x4ac] ss:$16 sps:$4 sm:$0xff]  }
  0xed   :  { %1514 = vmatpush1.bf16.msra.mxu0 %v6379_v47  ;;  %1545 = vmatprep.mubr.bf16.mxu0 %v7516_v5  ;;  %v6460_v47 = vld [vmem:[%s9536_s3 + $0x548] ss:$16 sps:$4 sm:$0xff]  }
  0xee   :  { %1555 = vmatpush1.bf16.msra.mxu1 %v6382_v49  ;;  %1586 = vmatprep.mubr.bf16.mxu1 %v7516_v5  ;;  %v6465_v49 = vld [vmem:[%s9536_s3 + $0x524] ss:$16 sps:$4 sm:$0xff]  }
  0xef   :  { %1515 = vmatprep.subr.bf16.mxu0 %v6387_v6  ;;  %1556 = vmatprep.subr.bf16.mxu1 %v6390_v48  ;;  %v6468_v6 = vld [vmem:[%s9536_s3 + $0x52c] ss:$16 sps:$4 sm:$0xff]   ;;  %v6463_v48 = vld [vmem:[%s9536_s3 + $0x520] ss:$16 sps:$4 sm:$0xff]  }
  0xf1   :  { %1516 = vmatpush1.bf16.msra.mxu0 %v6385_v50  ;;  %v6466_v50 = vld [vmem:[%s9536_s3 + $0x528] ss:$16 sps:$4 sm:$0xff]  }
  0xf2   :  { %1557 = vmatpush1.bf16.msra.mxu1 %v6388_v51  ;;  %1517 = vmatprep.subr.bf16.mxu0 %v6393_v7  ;;  %v6471_v51 = vld [vmem:[%s9536_s3 + $0x504] ss:$16 sps:$4 sm:$0xff]   ;;  %v6778_v7 = vpop.eup %6777 }
  0xf3   :  { %1558 = vmatprep.subr.bf16.mxu1 %v6396_v18  ;;  %v6474_v18 = vld [vmem:[%s9536_s3 + $0x50c] ss:$16 sps:$4 sm:$0xff]  }
  0xf5   :  { %1518 = vmatpush1.bf16.msra.mxu0 %v6391_v8  ;;  %v6469_v8 = vld [vmem:[%s9536_s3 + $0x500] ss:$16 sps:$4 sm:$0xff]  }
  0xf6   :  { %1559 = vmatpush1.bf16.msra.mxu1 %v6394_v54  ;;  %1519 = vmatprep.subr.bf16.mxu0 %v6399_v55  ;;  %v1124_v54 = vmul.f32 %v6778_v7, %v7557_v57  ;;  %v6472_v55 = vld [vmem:[%s9536_s3 + $0x508] ss:$16 sps:$4 sm:$0xff]   ;;  %v6475_v57 = vld [vmem:[%s9536_s3 + $0x6e0] ss:$16 sps:$4 sm:$0xff]   ;;  %v6549_v7 = vld [vmem:[%s9536_s3 + $0x764] ss:$16 sps:$4 sm:$0xff]  }
  0xf7   :  { %1560 = vmatprep.subr.bf16.mxu1 %v6402_v56  ;;  %v6477_v56 = vld [vmem:[%s9536_s3 + $0x6e4] ss:$16 sps:$4 sm:$0xff]  }
  0xf9   :  { %1520 = vmatpush1.bf16.msra.mxu0 %v6397_v11  ;;  %v6480_v11 = vld [vmem:[%s9536_s3 + $0x6ec] ss:$16 sps:$4 sm:$0xff]  }
  0xfa   :  { %1561 = vmatpush1.bf16.msra.mxu1 %v6400_v20  ;;  %1521 = vmatprep.subr.bf16.mxu0 %v6405_v24  ;;  %v7717_v20 = vpack.c.bf16 %v1124_v54, %v1124_v54  ;;  %v6478_v24 = vld [vmem:[%s9536_s3 + $0x6e8] ss:$16 sps:$4 sm:$0xff]  }
  0xfb   :  { %1562 = vmatprep.subr.bf16.mxu1 %v6408_v30  ;;  %v6483_v30 = vld [vmem:[%s9536_s3 + $0x6c4] ss:$16 sps:$4 sm:$0xff]   ;;  %v6550_v54 = vld [vmem:[%s9536_s3 + $0x768] ss:$16 sps:$4 sm:$0xff]  }
  0xfd   :  { %1522 = vmatpush1.bf16.msra.mxu0 %v6403_v58  ;;  %v6486_v58 = vld [vmem:[%s9536_s3 + $0x6cc] ss:$16 sps:$4 sm:$0xff]  }
  0xfe   :  { %1563 = vmatpush1.bf16.msra.mxu1 %v6406_v37  ;;  %1523 = vmatprep.subr.bf16.mxu0 %v6411_v39  ;;  %v6484_v37 = vld [vmem:[%s9536_s3 + $0x6c8] ss:$16 sps:$4 sm:$0xff]   ;;  %v6489_v39 = vld [vmem:[%s9536_s3 + $0x6a4] ss:$16 sps:$4 sm:$0xff]  }
  0xff   :  { %1564 = vmatprep.subr.bf16.mxu1 %v6414_v46  ;;  %v6492_v46 = vld [vmem:[%s9536_s3 + $0x6ac] ss:$16 sps:$4 sm:$0xff]  }
 0x101   :  { %1524 = vmatpush1.bf16.msra.mxu0 %v6409_v52  ;;  %v6487_v52 = vld [vmem:[%s9536_s3 + $0x6a0] ss:$16 sps:$4 sm:$0xff]  }
 0x102   :  { %1565 = vmatpush1.bf16.msra.mxu1 %v6412_v59  ;;  %1525 = vmatprep.subr.bf16.mxu0 %v6417_v62  ;;  %v6498_v59 = vld [vmem:[%s9536_s3 + $0x68c] ss:$16 sps:$4 sm:$0xff]   ;;  %v7756_v62 = vpop.permute.xlu1 %2155 }
 0x103   :  { %1566 = vmatprep.subr.bf16.mxu1 %v6420_v63  ;;  %v6493_v63 = vld [vmem:[%s9536_s3 + $0x680] ss:$16 sps:$4 sm:$0xff]  }
 0x105   :  { %1526 = vmatpush1.bf16.msra.mxu0 %v6415_v0  ;;  %v6496_v0 = vld [vmem:[%s9536_s3 + $0x688] ss:$16 sps:$4 sm:$0xff]  }
 0x106   :  { %1567 = vmatpush1.bf16.msra.mxu1 %v6418_v1  ;;  %1527 = vmatprep.subr.bf16.mxu0 %v6423_v2  ;;  %v6501_v1 = vld [vmem:[%s9536_s3 + $0x664] ss:$16 sps:$4 sm:$0xff]   ;;  %v6504_v2 = vld [vmem:[%s9536_s3 + $0x66c] ss:$16 sps:$4 sm:$0xff]  }
 0x107   :  { %1568 = vmatprep.subr.bf16.mxu1 %v6426_v3  ;;  %v7772_v3 = vadd.f32 %v7756_v62, %v7305_v61  ;;  %v6510_v61 = vld [vmem:[%s9536_s3 + $0x64c] ss:$16 sps:$4 sm:$0xff]  }
 0x109   :  { %1528 = vmatpush1.bf16.msra.mxu0 %v6421_v4  ;;  %v6499_v4 = vld [vmem:[%s9536_s3 + $0x660] ss:$16 sps:$4 sm:$0xff]  }
 0x10a   :  { %1569 = vmatpush1.bf16.msra.mxu1 %v6424_v9  ;;  %1529 = vmatprep.subr.bf16.mxu0 %v6429_v10  ;;  %v6502_v9 = vld [vmem:[%s9536_s3 + $0x668] ss:$16 sps:$4 sm:$0xff]   ;;  %v6507_v10 = vld [vmem:[%s9536_s3 + $0x644] ss:$16 sps:$4 sm:$0xff]  }
 0x10b   :  { %1570 = vmatprep.subr.bf16.mxu1 %v6432_v36  ;;  %v2161_v36 = vsub.f32 0.0, %v7772_v3 }
 0x10d   :  { %1530 = vmatpush2.bf16.msra.mxu0 %v6427_v38  ;;  %v6505_v38 = vld [vmem:[%s9536_s3 + $0x640] ss:$16 sps:$4 sm:$0xff]  }
 0x10e   :  { %1571 = vmatpush2.bf16.msra.mxu1 %v6430_v12  ;;  %1531 = vmatprep.subr.bf16.mxu0 %v6435_v13  ;;  %v6508_v12 = vld [vmem:[%s9536_s3 + $0x648] ss:$16 sps:$4 sm:$0xff]   ;;  %v6513_v13 = vld [vmem:[%s9536_s3 + $0x624] ss:$16 sps:$4 sm:$0xff]  }
 0x10f   :  { %1572 = vmatprep.subr.bf16.mxu1 %v6438_v31  ;;  %v6516_v31 = vld [vmem:[%s9536_s3 + $0x62c] ss:$16 sps:$4 sm:$0xff]  }
 0x111   :  { %1532 = vmatpush2.bf16.msra.mxu0 %v6433_v43  ;;  %v2164_v43 = vmul.f32 1.442695, %v2161_v36 }
 0x112   :  { %1573 = vmatpush2.bf16.msra.mxu1 %v6436_v45  ;;  %1533 = vmatprep.subr.bf16.mxu0 %v6441_v14  ;;  %v6511_v45 = vld [vmem:[%s9536_s3 + $0x620] ss:$16 sps:$4 sm:$0xff]   ;;  %v6514_v14 = vld [vmem:[%s9536_s3 + $0x628] ss:$16 sps:$4 sm:$0xff]  }
 0x113   :  { %1574 = vmatprep.subr.bf16.mxu1 %v6444_v17  ;;  %v6522_v17 = vld [vmem:[%s9536_s3 + $0x60c] ss:$16 sps:$4 sm:$0xff]   ;;  %6779 = vpow2.f32 %v2164_v43 }
 0x115   :  { %1534 = vmatpush2.bf16.msra.mxu0 %v6439_v19  ;;  %v6517_v19 = vld [vmem:[%s9536_s3 + $0x600] ss:$16 sps:$4 sm:$0xff]  }
 0x116   :  { %1575 = vmatpush2.bf16.msra.mxu1 %v6442_v22  ;;  %1535 = vmatprep.subr.bf16.mxu0 %v6447_v25  ;;  %v6525_v22 = vld [vmem:[%s9536_s3 + $0x7e4] ss:$16 sps:$4 sm:$0xff]   ;;  %v6528_v25 = vld [vmem:[%s9536_s3 + $0x7ec] ss:$16 sps:$4 sm:$0xff]  }
 0x117   :  { %1576 = vmatprep.subr.bf16.mxu1 %v6450_v26  ;;  %v6523_v26 = vld [vmem:[%s9536_s3 + $0x7e0] ss:$16 sps:$4 sm:$0xff]  }
 0x119   :  { %1536 = vmatpush2.bf16.msra.mxu0 %v6445_v27  ;;  %v6526_v27 = vld [vmem:[%s9536_s3 + $0x7e8] ss:$16 sps:$4 sm:$0xff]  }
 0x11a   :  { %1577 = vmatpush2.bf16.msra.mxu1 %v6448_v28  ;;  %1537 = vmatprep.subr.bf16.mxu0 %v6453_v32  ;;  %v6531_v28 = vld [vmem:[%s9536_s3 + $0x7c4] ss:$16 sps:$4 sm:$0xff]   ;;  %v6534_v32 = vld [vmem:[%s9536_s3 + $0x7cc] ss:$16 sps:$4 sm:$0xff]  }
 0x11b   :  { %1578 = vmatprep.subr.bf16.mxu1 %v6456_v33  ;;  %v6529_v33 = vld [vmem:[%s9536_s3 + $0x7c0] ss:$16 sps:$4 sm:$0xff]  }
 0x11d   :  { %1538 = vmatpush2.bf16.msra.mxu0 %v6451_v34  ;;  %v6532_v34 = vld [vmem:[%s9536_s3 + $0x7c8] ss:$16 sps:$4 sm:$0xff]  }
 0x11e   :  { %1579 = vmatpush2.bf16.msra.mxu1 %v6454_v35  ;;  %1539 = vmatprep.subr.bf16.mxu0 %v6459_v40  ;;  %v6537_v35 = vld [vmem:[%s9536_s3 + $0x7a4] ss:$16 sps:$4 sm:$0xff]   ;;  %v6540_v40 = vld [vmem:[%s9536_s3 + $0x7ac] ss:$16 sps:$4 sm:$0xff]  }
 0x11f   :  { %1580 = vmatprep.subr.bf16.mxu1 %v6462_v41 }
 0x120   :  { %v6780_v41 = vpop.eup %6779 }
 0x121   :  { %1540 = vmatpush2.bf16.msra.mxu0 %v6457_v44  ;;  %v6535_v44 = vld [vmem:[%s9536_s3 + $0x7a0] ss:$16 sps:$4 sm:$0xff]  }
 0x122   :  { %1581 = vmatpush2.bf16.msra.mxu1 %v6460_v47  ;;  %1541 = vmatprep.subr.bf16.mxu0 %v6465_v49  ;;  %v6538_v47 = vld [vmem:[%s9536_s3 + $0x7a8] ss:$16 sps:$4 sm:$0xff]   ;;  %v6543_v49 = vld [vmem:[%s9536_s3 + $0x784] ss:$16 sps:$4 sm:$0xff]  }
 0x123   :  { %1582 = vmatprep.subr.bf16.mxu1 %v6468_v6  ;;  %v6546_v6 = vld [vmem:[%s9536_s3 + $0x78c] ss:$16 sps:$4 sm:$0xff]  }
 0x125   :  { %1542 = vmatpush2.bf16.msra.mxu0 %v6463_v48  ;;  %v2167_v48 = vadd.f32 1.0, %v6780_v41  ;;  %v6604_v41 = vld [vmem:[%s9536_s3 + $0x848] ss:$16 sps:$4 sm:$0xff]  }
 0x126   :  { %1583 = vmatpush2.bf16.msra.mxu1 %v6466_v50  ;;  %1543 = vmatprep.subr.bf16.mxu0 %v6471_v51  ;;  %v6541_v50 = vld [vmem:[%s9536_s3 + $0x780] ss:$16 sps:$4 sm:$0xff]   ;;  %v6544_v51 = vld [vmem:[%s9536_s3 + $0x788] ss:$16 sps:$4 sm:$0xff]  }
 0x127   :  { %1584 = vmatprep.subr.bf16.mxu1 %v6474_v18  ;;  %v6552_v18 = vld [vmem:[%s9536_s3 + $0x76c] ss:$16 sps:$4 sm:$0xff]   ;;  %6781 = vrcp.f32 %v2167_v48  ;;  %v6615_v48 = vld [vmem:[%s9536_s3 + $0x804] ss:$16 sps:$4 sm:$0xff]  }
 0x129   :  { %1544 = vmatpush2.bf16.msra.mxu0 %v6469_v8  ;;  %v6547_v8 = vld [vmem:[%s9536_s3 + $0x760] ss:$16 sps:$4 sm:$0xff]  }
 0x12a   :  { %1585 = vmatpush2.bf16.msra.mxu1 %v6472_v55  ;;  %2017 = vmatprep.subr.bf16.mxu0 %v6477_v56  ;;  %v6555_v55 = vld [vmem:[%s9536_s3 + $0x744] ss:$16 sps:$4 sm:$0xff]   ;;  %v6558_v56 = vld [vmem:[%s9536_s3 + $0x74c] ss:$16 sps:$4 sm:$0xff]  }
 0x12b   :  { %2058 = vmatprep.subr.bf16.mxu1 %v6480_v11  ;;  %v6553_v11 = vld [vmem:[%s9536_s3 + $0x740] ss:$16 sps:$4 sm:$0xff]  }
 0x12c   :  { %1546 = vmatmul.mubr.bf16.vlgmr.msra.gmra.mxu0 %v7717_v20 }
 0x12d   :  { %1587 = vmatmul.mubr.bf16.vlgmr.msra.gmra.mxu1 %v7717_v20  ;;  %2018 = vmatpush1.bf16.msra.mxu0 %v6475_v57  ;;  %v6556_v57 = vld [vmem:[%s9536_s3 + $0x748] ss:$16 sps:$4 sm:$0xff]  }
 0x12e   :  { %2049 = vmatprep.mubr.bf16.mxu0 %v7516_v5  ;;  %2059 = vmatpush1.bf16.msra.mxu1 %v6478_v24  ;;  %v6561_v24 = vld [vmem:[%s9536_s3 + $0x724] ss:$16 sps:$4 sm:$0xff]  }
 0x12f   :  { %2090 = vmatprep.mubr.bf16.mxu1 %v7516_v5  ;;  %2019 = vmatprep.subr.bf16.mxu0 %v6483_v30  ;;  %v6495_v5 = vld [vmem:[%s9536_s3 + $0x684] ss:$16 sps:$4 sm:$0xff]   ;;  %v6564_v30 = vld [vmem:[%s9536_s3 + $0x72c] ss:$16 sps:$4 sm:$0xff]  }
 0x130   :  { %2060 = vmatprep.subr.bf16.mxu1 %v6486_v58  ;;  %v6559_v58 = vld [vmem:[%s9536_s3 + $0x720] ss:$16 sps:$4 sm:$0xff]  }
 0x131   :  { %2020 = vmatpush1.bf16.msra.mxu0 %v6481_v42  ;;  %v6562_v42 = vld [vmem:[%s9536_s3 + $0x728] ss:$16 sps:$4 sm:$0xff]  }
 0x132   :  { %2061 = vmatpush1.bf16.msra.mxu1 %v6484_v37  ;;  %2021 = vmatprep.subr.bf16.mxu0 %v6489_v39  ;;  %v6567_v37 = vld [vmem:[%s9536_s3 + $0x704] ss:$16 sps:$4 sm:$0xff]   ;;  %v6570_v39 = vld [vmem:[%s9536_s3 + $0x70c] ss:$16 sps:$4 sm:$0xff]  }
 0x133   :  { %2062 = vmatprep.subr.bf16.mxu1 %v6492_v46 }
 0x134   :  { %v6782_v46 = vpop.eup %6781 }
 0x135   :  { %2022 = vmatpush1.bf16.msra.mxu0 %v6487_v52  ;;  %v6565_v52 = vld [vmem:[%s9536_s3 + $0x700] ss:$16 sps:$4 sm:$0xff]  }
 0x136   :  { %2063 = vmatpush1.bf16.msra.mxu1 %v6490_v53  ;;  %2023 = vmatprep.subr.bf16.mxu0 %v6495_v5  ;;  %v6568_v53 = vld [vmem:[%s9536_s3 + $0x708] ss:$16 sps:$4 sm:$0xff]   ;;  %v6573_v5 = vld [vmem:[%s9536_s3 + $0x8e4] ss:$16 sps:$4 sm:$0xff]  }
 0x137   :  { %2064 = vmatprep.subr.bf16.mxu1 %v6498_v59  ;;  %v6576_v59 = vld [vmem:[%s9536_s3 + $0x8ec] ss:$16 sps:$4 sm:$0xff]  }
 0x139   :  { %2024 = vmatpush1.bf16.msra.mxu0 %v6493_v63  ;;  %v2173_v63 = vmul.f32 %v6782_v46, %v7772_v3  ;;  %v6634_v46 = vld [vmem:[%s9536_s3 + $0x9a8] ss:$16 sps:$4 sm:$0xff]  }
 0x13a   :  { %2065 = vmatpush1.bf16.msra.mxu1 %v6496_v0  ;;  %2025 = vmatprep.subr.bf16.mxu0 %v6501_v1  ;;  %v6571_v0 = vld [vmem:[%s9536_s3 + $0x8e0] ss:$16 sps:$4 sm:$0xff]   ;;  %v6574_v1 = vld [vmem:[%s9536_s3 + $0x8e8] ss:$16 sps:$4 sm:$0xff]  }
 0x13b   :  { %2066 = vmatprep.subr.bf16.mxu1 %v6504_v2  ;;  %v6579_v2 = vld [vmem:[%s9536_s3 + $0x8c4] ss:$16 sps:$4 sm:$0xff]  }
 0x13d   :  { %2026 = vmatpush1.bf16.msra.mxu0 %v6499_v4  ;;  %v7929_v4 = vpack.c.bf16 %v2173_v63, %v2173_v63  ;;  %v6645_v63 = vld [vmem:[%s9536_s3 + $0x964] ss:$16 sps:$4 sm:$0xff]  }
 0x13e   :  { %2067 = vmatpush1.bf16.msra.mxu1 %v6502_v9  ;;  %2027 = vmatprep.subr.bf16.mxu0 %v6507_v10  ;;  %v6582_v10 = vld [vmem:[%s9536_s3 + $0x8cc] ss:$16 sps:$4 sm:$0xff]  }
 0x13f   :  { %2068 = vmatprep.subr.bf16.mxu1 %v6510_v61  ;;  %v6577_v61 = vld [vmem:[%s9536_s3 + $0x8c0] ss:$16 sps:$4 sm:$0xff]  }
 0x141   :  { %2028 = vmatpush1.bf16.msra.mxu0 %v6505_v38 }
 0x142   :  { %2069 = vmatpush1.bf16.msra.mxu1 %v6508_v12  ;;  %2029 = vmatprep.subr.bf16.mxu0 %v6513_v13  ;;  %v6580_v12 = vld [vmem:[%s9536_s3 + $0x8c8] ss:$16 sps:$4 sm:$0xff]   ;;  %v6588_v13 = vld [vmem:[%s9536_s3 + $0x8ac] ss:$16 sps:$4 sm:$0xff]  }
 0x143   :  { %2070 = vmatprep.subr.bf16.mxu1 %v6516_v31 }
 0x145   :  { %2030 = vmatpush1.bf16.msra.mxu0 %v6511_v45  ;;  %v6583_v45 = vld [vmem:[%s9536_s3 + $0x8a0] ss:$16 sps:$4 sm:$0xff]  }
 0x146   :  { %2071 = vmatpush1.bf16.msra.mxu1 %v6514_v14  ;;  %2031 = vmatprep.subr.bf16.mxu0 %v6519_v16 }
 0x147   :  { %2072 = vmatprep.subr.bf16.mxu1 %v6522_v17  ;;  %v6586_v17 = vld [vmem:[%s9536_s3 + $0x8a8] ss:$16 sps:$4 sm:$0xff]  }
 0x149   :  { %2032 = vmatpush1.bf16.msra.mxu0 %v6517_v19  ;;  %v6591_v19 = vld [vmem:[%s9536_s3 + $0x884] ss:$16 sps:$4 sm:$0xff]  }
 0x14a   :  { %2073 = vmatpush1.bf16.msra.mxu1 %v6520_v21  ;;  %2033 = vmatprep.subr.bf16.mxu0 %v6525_v22  ;;  %v6594_v21 = vld [vmem:[%s9536_s3 + $0x88c] ss:$16 sps:$4 sm:$0xff]   ;;  %v6589_v22 = vld [vmem:[%s9536_s3 + $0x880] ss:$16 sps:$4 sm:$0xff]  }
 0x14b   :  { %2074 = vmatprep.subr.bf16.mxu1 %v6528_v25  ;;  %v7975_v25 = vadd.f32 %v7756_v62, %v7300_v60  ;;  %v6595_v60 = vld [vmem:[%s9536_s3 + $0x860] ss:$16 sps:$4 sm:$0xff]  }
 0x14d   :  { %2034 = vmatpush2.bf16.msra.mxu0 %v6523_v26  ;;  %v6592_v26 = vld [vmem:[%s9536_s3 + $0x888] ss:$16 sps:$4 sm:$0xff]   ;;  %v2160_v62 = vsub.f32 0.0, %v7975_v25 }
 0x14e   :  { %2075 = vmatpush2.bf16.msra.mxu1 %v6526_v27  ;;  %2035 = vmatprep.subr.bf16.mxu0 %v6531_v28  ;;  %v6597_v27 = vld [vmem:[%s9536_s3 + $0x864] ss:$16 sps:$4 sm:$0xff]   ;;  %v6600_v28 = vld [vmem:[%s9536_s3 + $0x86c] ss:$16 sps:$4 sm:$0xff]  }
 0x14f   :  { %2076 = vmatprep.subr.bf16.mxu1 %v6534_v32  ;;  %v6598_v32 = vld [vmem:[%s9536_s3 + $0x868] ss:$16 sps:$4 sm:$0xff]  }
 0x151   :  { %2036 = vmatpush2.bf16.msra.mxu0 %v6529_v33  ;;  %v6603_v33 = vld [vmem:[%s9536_s3 + $0x844] ss:$16 sps:$4 sm:$0xff]  }
 0x152   :  { %2077 = vmatpush2.bf16.msra.mxu1 %v6532_v34  ;;  %2037 = vmatprep.subr.bf16.mxu0 %v6537_v35  ;;  %v6606_v34 = vld [vmem:[%s9536_s3 + $0x84c] ss:$16 sps:$4 sm:$0xff]   ;;  %v6601_v35 = vld [vmem:[%s9536_s3 + $0x840] ss:$16 sps:$4 sm:$0xff]  }
 0x153   :  { %2078 = vmatprep.subr.bf16.mxu1 %v6540_v40  ;;  %v2162_v40 = vmul.f32 1.442695, %v2160_v62 }
 0x155   :  { %2038 = vmatpush2.bf16.msra.mxu0 %v6535_v44  ;;  %v6609_v44 = vld [vmem:[%s9536_s3 + $0x824] ss:$16 sps:$4 sm:$0xff]   ;;  %6783 = vpow2.f32 %v2162_v40  ;;  %v6672_v40 = vld [vmem:[%s9536_s3 + $0xaec] ss:$16 sps:$4 sm:$0xff]  }
 0x156   :  { %2079 = vmatpush2.bf16.msra.mxu1 %v6538_v47  ;;  %2039 = vmatprep.subr.bf16.mxu0 %v6543_v49  ;;  %v6612_v47 = vld [vmem:[%s9536_s3 + $0x82c] ss:$16 sps:$4 sm:$0xff]   ;;  %v6607_v49 = vld [vmem:[%s9536_s3 + $0x820] ss:$16 sps:$4 sm:$0xff]  }
 0x157   :  { %2080 = vmatprep.subr.bf16.mxu1 %v6546_v6  ;;  %v6610_v6 = vld [vmem:[%s9536_s3 + $0x828] ss:$16 sps:$4 sm:$0xff]  }
 0x159   :  { %2040 = vmatpush2.bf16.msra.mxu0 %v6541_v50  ;;  %v6618_v50 = vld [vmem:[%s9536_s3 + $0x80c] ss:$16 sps:$4 sm:$0xff]  }
 0x15a   :  { %2081 = vmatpush2.bf16.msra.mxu1 %v6544_v51  ;;  %2041 = vmatprep.subr.bf16.mxu0 %v6549_v7  ;;  %v6613_v51 = vld [vmem:[%s9536_s3 + $0x800] ss:$16 sps:$4 sm:$0xff]   ;;  %v6616_v7 = vld [vmem:[%s9536_s3 + $0x808] ss:$16 sps:$4 sm:$0xff]  }
 0x15b   :  { %2082 = vmatprep.subr.bf16.mxu1 %v6552_v18  ;;  %v6621_v18 = vld [vmem:[%s9536_s3 + $0x9e4] ss:$16 sps:$4 sm:$0xff]  }
 0x15d   :  { %2042 = vmatpush2.bf16.msra.mxu0 %v6547_v8  ;;  %v6624_v8 = vld [vmem:[%s9536_s3 + $0x9ec] ss:$16 sps:$4 sm:$0xff]  }
 0x15e   :  { %2083 = vmatpush2.bf16.msra.mxu1 %v6550_v54  ;;  %2043 = vmatprep.subr.bf16.mxu0 %v6555_v55  ;;  %v6619_v54 = vld [vmem:[%s9536_s3 + $0x9e0] ss:$16 sps:$4 sm:$0xff]   ;;  %v6622_v55 = vld [vmem:[%s9536_s3 + $0x9e8] ss:$16 sps:$4 sm:$0xff]  }
 0x15f   :  { %2084 = vmatprep.subr.bf16.mxu1 %v6558_v56  ;;  %v6627_v56 = vld [vmem:[%s9536_s3 + $0x9c4] ss:$16 sps:$4 sm:$0xff]  }
 0x161   :  { %2044 = vmatpush2.bf16.msra.mxu0 %v6553_v11  ;;  %v6630_v11 = vld [vmem:[%s9536_s3 + $0x9cc] ss:$16 sps:$4 sm:$0xff]  }
 0x162   :  { %2085 = vmatpush2.bf16.msra.mxu1 %v6556_v57  ;;  %2045 = vmatprep.subr.bf16.mxu0 %v6561_v24  ;;  %v6625_v57 = vld [vmem:[%s9536_s3 + $0x9c0] ss:$16 sps:$4 sm:$0xff]   ;;  %v6628_v24 = vld [vmem:[%s9536_s3 + $0x9c8] ss:$16 sps:$4 sm:$0xff]  }
 0x163   :  { %2086 = vmatprep.subr.bf16.mxu1 %v6564_v30  ;;  %v6633_v30 = vld [vmem:[%s9536_s3 + $0x9a4] ss:$16 sps:$4 sm:$0xff]  }
 0x165   :  { %2046 = vmatpush2.bf16.msra.mxu0 %v6559_v58  ;;  %v6784_v58 = vpop.eup %6783 }
 0x166   :  { %2087 = vmatpush2.bf16.msra.mxu1 %v6562_v42  ;;  %2047 = vmatprep.subr.bf16.mxu0 %v6567_v37  ;;  %v6636_v42 = vld [vmem:[%s9536_s3 + $0x9ac] ss:$16 sps:$4 sm:$0xff]   ;;  %v6631_v37 = vld [vmem:[%s9536_s3 + $0x9a0] ss:$16 sps:$4 sm:$0xff]  }
 0x167   :  { %2088 = vmatprep.subr.bf16.mxu1 %v6570_v39  ;;  %v2166_v39 = vadd.f32 1.0, %v6784_v58  ;;  %v6673_v58 = vld [vmem:[%s9536_s3 + $0xac0] ss:$16 sps:$4 sm:$0xff]  }
 0x169   :  { %2048 = vmatpush2.bf16.msra.mxu0 %v6565_v52  ;;  %v6639_v52 = vld [vmem:[%s9536_s3 + $0x984] ss:$16 sps:$4 sm:$0xff]   ;;  %6785 = vrcp.f32 %v2166_v39 }
 0x16a   :  { %2089 = vmatpush2.bf16.msra.mxu1 %v6568_v53  ;;  %2561 = vmatprep.subr.bf16.mxu0 %v6573_v5  ;;  %v6642_v53 = vld [vmem:[%s9536_s3 + $0x98c] ss:$16 sps:$4 sm:$0xff]   ;;  %v6637_v5 = vld [vmem:[%s9536_s3 + $0x980] ss:$16 sps:$4 sm:$0xff]  }
 0x16b   :  { %2602 = vmatprep.subr.bf16.mxu1 %v6576_v59  ;;  %v6640_v59 = vld [vmem:[%s9536_s3 + $0x988] ss:$16 sps:$4 sm:$0xff]  }
 0x16c   :  { %2050 = vmatmul.mubr.bf16.vlgmr.msra.gmra.mxu0 %v7717_v20  ;;  %v7932_v3 = vpop.f32.mrf.mxu0  ;;  %v7934_v9 = vpop.f32.mrf.mxu1 }
 0x16d   :  { %2091 = vmatmul.mubr.bf16.vlgmr.msra.gmra.mxu1 %v7717_v20  ;;  %2562 = vmatpush1.bf16.msra.mxu0 %v6571_v0  ;;  %v6585_v20 = vld [vmem:[%s9536_s3 + $0x8a4] ss:$16 sps:$4 sm:$0xff]   ;;  %v6648_v0 = vld [vmem:[%s9536_s3 + $0x96c] ss:$16 sps:$4 sm:$0xff]  }
 0x16e   :  { %2593 = vmatprep.mubr.bf16.mxu0 %v7929_v4  ;;  %2603 = vmatpush1.bf16.msra.mxu1 %v6574_v1  ;;  %v7944_v36 = vpop.f32.mrf.mxu0  ;;  %v7946_v38 = vpop.f32.mrf.mxu1  ;;  %v6643_v1 = vld [vmem:[%s9536_s3 + $0x960] ss:$16 sps:$4 sm:$0xff]  }
 0x16f   :  { %2634 = vmatprep.mubr.bf16.mxu1 %v7929_v4  ;;  %2563 = vmatprep.subr.bf16.mxu0 %v6579_v2  ;;  %v6646_v2 = vld [vmem:[%s9536_s3 + $0x968] ss:$16 sps:$4 sm:$0xff]  }
 0x170   :  { %2604 = vmatprep.subr.bf16.mxu1 %v6582_v10  ;;  %v504_v31 = vpop.f32.mrf.mxu0  ;;  %v545_v43 = vpop.f32.mrf.mxu1  ;;  %v6651_v10 = vld [vmem:[%s9536_s3 + $0x944] ss:$16 sps:$4 sm:$0xff]  }
 0x171   :  { %2564 = vmatpush1.bf16.msra.mxu0 %v6577_v61  ;;  %v6654_v61 = vld [vmem:[%s9536_s3 + $0x94c] ss:$16 sps:$4 sm:$0xff]   ;;  %v6652_v31 = vld [vmem:[%s9536_s3 + $0x948] ss:$16 sps:$4 sm:$0xff]   ;;  %v6657_v43 = vld [vmem:[%s9536_s3 + $0x924] ss:$16 sps:$4 sm:$0xff]  }
 0x172   :  { %2605 = vmatpush1.bf16.msra.mxu1 %v6580_v12  ;;  %v505_v14 = vpop.f32.mrf.mxu0  ;;  %v546_v16 = vpop.f32.mrf.mxu1  ;;  %2565 = vmatprep.subr.bf16.mxu0 %v6585_v20  ;;  %v548_v12 = vld [vmem:[%s9541_s4] sm:$0xff]  ;;  %v550_v20 = vld [vmem:[%s9541_s4 + $0x10] sm:$0xff] }
 0x173   :  { %2606 = vmatprep.subr.bf16.mxu1 %v6588_v13  ;;  %v6649_v13 = vld [vmem:[%s9536_s3 + $0x940] ss:$16 sps:$4 sm:$0xff]   ;;  %v551_v14 = vld [vmem:[%s9541_s4 + $0x18] sm:$0xff] }
 0x174   :  { %v6660_v16 = vld [vmem:[%s9536_s3 + $0x92c] ss:$16 sps:$4 sm:$0xff]  }
 0x175   :  { %2566 = vmatpush1.bf16.msra.mxu0 %v6583_v45  ;;  %v549_v45 = vld [vmem:[%s9541_s4 + $0x8] sm:$0xff] }
 0x176   :  { %2607 = vmatpush1.bf16.msra.mxu1 %v6586_v17  ;;  %2567 = vmatprep.subr.bf16.mxu0 %v6591_v19  ;;  %v552_v17 = vmul.f32 %v548_v12, %v7932_v3  ;;  %v554_v19 = vmul.f32 %v550_v20, %v7934_v9  ;;  %v6663_v3 = vld [vmem:[%s9536_s3 + $0x904] ss:$16 sps:$4 sm:$0xff]   ;;  %v6786_v9 = vpop.eup %6785 }
 0x177   :  { %2608 = vmatprep.subr.bf16.mxu1 %v6594_v21  ;;  %v6655_v21 = vld [vmem:[%s9536_s3 + $0x920] ss:$16 sps:$4 sm:$0xff]   ;;  %v2172_v62 = vmul.f32 %v6786_v9, %v7975_v25  ;;  %v6690_v9 = vld [vmem:[%s9536_s3 + $0xa8c] ss:$16 sps:$4 sm:$0xff]  }
 0x178   :  { %v6667_v25 = vld [vmem:[%s9536_s3 + $0xae0] ss:$16 sps:$4 sm:$0xff]  }
 0x179   :  { %2568 = vmatpush1.bf16.msra.mxu0 %v6589_v22  ;;  %v553_v22 = vmul.f32 %v549_v45, %v7944_v36  ;;  %v568_v36 = vrot.slane %v554_v19, 4 }
 0x17a   :  { %2609 = vmatpush1.bf16.msra.mxu1 %v6592_v26  ;;  %2569 = vmatprep.subr.bf16.mxu0 %v6597_v27  ;;  %v555_v26 = vmul.f32 %v551_v14, %v7946_v38  ;;  %v6658_v27 = vld [vmem:[%s9536_s3 + $0x928] ss:$16 sps:$4 sm:$0xff]   ;;  %v6661_v38 = vld [vmem:[%s9536_s3 + $0x900] ss:$16 sps:$4 sm:$0xff]  }
 0x17b   :  { %2610 = vmatprep.subr.bf16.mxu1 %v6600_v28  ;;  %v6666_v28 = vld [vmem:[%s9536_s3 + $0x90c] ss:$16 sps:$4 sm:$0xff]  }
 0x17d   :  { %2570 = vmatpush1.bf16.msra.mxu0 %v6595_v60  ;;  %v556_v60 = vrot.slane %v552_v17, 4 }
 0x17e   :  { %2611 = vmatpush1.bf16.msra.mxu1 %v6598_v32  ;;  %2571 = vmatprep.subr.bf16.mxu0 %v6603_v33  ;;  %v562_v32 = vrot.slane %v553_v22, 4  ;;  %v574_v33 = vrot.slane %v555_v26, 4 }
 0x17f   :  { %2612 = vmatprep.subr.bf16.mxu1 %v6606_v34  ;;  %v6664_v34 = vld [vmem:[%s9536_s3 + $0x908] ss:$16 sps:$4 sm:$0xff]  }
 0x181   :  { %2572 = vmatpush1.bf16.msra.mxu0 %v6601_v35  ;;  %v6669_v35 = vld [vmem:[%s9536_s3 + $0xae4] ss:$16 sps:$4 sm:$0xff]  }
 0x182   :  { %2613 = vmatpush1.bf16.msra.mxu1 %v6604_v41  ;;  %2573 = vmatprep.subr.bf16.mxu0 %v6609_v44  ;;  %v557_v41 = vadd.f32 %v556_v60, %v552_v17  ;;  %v569_v44 = vadd.f32 %v568_v36, %v554_v19  ;;  %v6682_v19 = vld [vmem:[%s9536_s3 + $0xaa8] ss:$16 sps:$4 sm:$0xff]  }
 0x183   :  { %2614 = vmatprep.subr.bf16.mxu1 %v6612_v47  ;;  %v8151_v47 = vpack.c.bf16 %v2172_v62, %v2172_v62 }
 0x185   :  { %2574 = vmatpush1.bf16.msra.mxu0 %v6607_v49  ;;  %v563_v49 = vadd.f32 %v562_v32, %v553_v22 }
 0x186   :  { %2615 = vmatpush1.bf16.msra.mxu1 %v6610_v6  ;;  %2575 = vmatprep.subr.bf16.mxu0 %v6615_v48  ;;  %v575_v6 = vadd.f32 %v574_v33, %v555_v26  ;;  %v5521_v48 = vld [vmem:[%s9541_s4 + $0x20] sm:$0xff] }
 0x187   :  { %2616 = vmatprep.subr.bf16.mxu1 %v6618_v50  ;;  %v5523_v50 = vld [vmem:[%s9541_s4 + $0x30] sm:$0xff] }
 0x188   :  { %v6685_v33 = vld [vmem:[%s9536_s3 + $0xa80] ss:$16 sps:$4 sm:$0xff]  }
 0x189   :  { %2576 = vmatpush1.bf16.msra.mxu0 %v6613_v51  ;;  %v6670_v51 = vld [vmem:[%s9536_s3 + $0xae8] ss:$16 sps:$4 sm:$0xff]  }
 0x18a   :  { %2617 = vmatpush1.bf16.msra.mxu1 %v6616_v7  ;;  %2577 = vmatprep.subr.bf16.mxu0 %v6621_v18  ;;  %v6675_v7 = vld [vmem:[%s9536_s3 + $0xac4] ss:$16 sps:$4 sm:$0xff]   ;;  %v558_v18 = vrot.slane %v557_v41, 2 }
 0x18b   :  { %2618 = vmatprep.subr.bf16.mxu1 %v6624_v8  ;;  %v570_v8 = vrot.slane %v569_v44, 2 }
 0x18d   :  { %2578 = vmatpush2.bf16.msra.mxu0 %v6619_v54 }
 0x18e   :  { %2619 = vmatpush2.bf16.msra.mxu1 %v6622_v55  ;;  %2579 = vmatprep.subr.bf16.mxu0 %v6627_v56  ;;  %v5522_v56 = vld [vmem:[%s9541_s4 + $0x28] sm:$0xff] }
 0x18f   :  { %2620 = vmatprep.subr.bf16.mxu1 %v6630_v11  ;;  %v5524_v11 = vld [vmem:[%s9541_s4 + $0x38] sm:$0xff] }
 0x191   :  { %2580 = vmatpush2.bf16.msra.mxu0 %v6625_v57  ;;  %v6678_v57 = vld [vmem:[%s9536_s3 + $0xacc] ss:$16 sps:$4 sm:$0xff]  }
 0x192   :  { %2621 = vmatpush2.bf16.msra.mxu1 %v6628_v24  ;;  %2581 = vmatprep.subr.bf16.mxu0 %v6633_v30 }
 0x193   :  { %2622 = vmatprep.subr.bf16.mxu1 %v6636_v42  ;;  %v564_v42 = vrot.slane %v563_v49, 2 }
 0x195   :  { %2582 = vmatpush2.bf16.msra.mxu0 %v6631_v37  ;;  %v576_v37 = vrot.slane %v575_v6, 2  ;;  %v565_v45 = vadd.f32 %v564_v42, %v563_v49 }
 0x196   :  { %2623 = vmatpush2.bf16.msra.mxu1 %v6634_v46  ;;  %2583 = vmatprep.subr.bf16.mxu0 %v6639_v52  ;;  %v6676_v52 = vld [vmem:[%s9536_s3 + $0xac8] ss:$16 sps:$4 sm:$0xff]  }
 0x197   :  { %2624 = vmatprep.subr.bf16.mxu1 %v6642_v53  ;;  %v6681_v53 = vld [vmem:[%s9536_s3 + $0xaa4] ss:$16 sps:$4 sm:$0xff]   ;;  %v577_v14 = vadd.f32 %v576_v37, %v575_v6 }
 0x199   :  { %2584 = vmatpush2.bf16.msra.mxu0 %v6637_v5 }
 0x19a   :  { %2625 = vmatpush2.bf16.msra.mxu1 %v6640_v59  ;;  %2585 = vmatprep.subr.bf16.mxu0 %v6645_v63 }
 0x19b   :  { %2626 = vmatprep.subr.bf16.mxu1 %v6648_v0 }
 0x19d   :  { %2586 = vmatpush2.bf16.msra.mxu0 %v6643_v1  ;;  %v6684_v1 = vld [vmem:[%s9536_s3 + $0xaac] ss:$16 sps:$4 sm:$0xff]  }
 0x19e   :  { %2627 = vmatpush2.bf16.msra.mxu1 %v6646_v2  ;;  %2587 = vmatprep.subr.bf16.mxu0 %v6651_v10  ;;  %v559_v2 = vadd.f32 %v558_v18, %v557_v41  ;;  %v571_v10 = vadd.f32 %v570_v8, %v569_v44  ;;  %v6693_v41 = vld [vmem:[%s9536_s3 + $0xa64] ss:$16 sps:$4 sm:$0xff]  }
 0x19f   :  { %2628 = vmatprep.subr.bf16.mxu1 %v6654_v61 }
 0x1a0   :  { %v572_v60 = vrot.slane %v571_v10, 1 }
 0x1a1   :  { %2588 = vmatpush2.bf16.msra.mxu0 %v6649_v13 }
 0x1a2   :  { %2629 = vmatpush2.bf16.msra.mxu1 %v6652_v31  ;;  %2589 = vmatprep.subr.bf16.mxu0 %v6657_v43 }
 0x1a3   :  { %2630 = vmatprep.subr.bf16.mxu1 %v6660_v16 }
 0x1a5   :  { %2590 = vmatpush2.bf16.msra.mxu0 %v6655_v21  ;;  %v6687_v21 = vld [vmem:[%s9536_s3 + $0xa84] ss:$16 sps:$4 sm:$0xff]  }
 0x1a6   :  { %2631 = vmatpush2.bf16.msra.mxu1 %v6658_v27  ;;  %2591 = vmatprep.subr.bf16.mxu0 %v6663_v3 }
 0x1a7   :  { %2632 = vmatprep.subr.bf16.mxu1 %v6666_v28  ;;  %v560_v28 = vrot.slane %v559_v2, 1 }
 0x1a9   :  { %2592 = vmatpush2.bf16.msra.mxu0 %v6661_v38 }
 0x1aa   :  { %2633 = vmatpush2.bf16.msra.mxu1 %v6664_v34  ;;  %3065 = vmatprep.subr.bf16.mxu0 %v6669_v35  ;;  %v566_v34 = vrot.slane %v565_v45, 1  ;;  %v578_v35 = vrot.slane %v577_v14, 1 }
 0x1ab   :  { %3106 = vmatprep.subr.bf16.mxu1 %v6672_v40  ;;  %v6688_v40 = vld [vmem:[%s9536_s3 + $0xa88] ss:$16 sps:$4 sm:$0xff]  }
 0x1ac   :  { %v1003_v54 = vpop.f32.mrf.mxu0  ;;  %v1044_v55 = vpop.f32.mrf.mxu1  ;;  %2594 = vmatmul.mubr.bf16.vlgmr.msra.gmra.mxu0 %v8151_v47 }
 0x1ad   :  { %v1056_v24 = vmul.f32 %v5521_v48, %v1003_v54  ;;  %v1058_v30 = vmul.f32 %v5523_v50, %v1044_v55  ;;  %2635 = vmatmul.mubr.bf16.vlgmr.msra.gmra.mxu1 %v8151_v47  ;;  %3066 = vmatpush1.bf16.msra.mxu0 %v6667_v25  ;;  %v6696_v48 = vld [vmem:[%s9536_s3 + $0xa6c] ss:$16 sps:$4 sm:$0xff]   ;;  %v561_v50 = vadd.f32 %v560_v28, %v559_v2  ;;  %v6691_v55 = vld [vmem:[%s9536_s3 + $0xa60] ss:$16 sps:$4 sm:$0xff]   ;;  %v6711_v2 = vld [vmem:[%s9536_s3 + $0xa04] ss:$16 sps:$4 sm:$0xff]  }
 0x1ae   :  { %3097 = vmatprep.mubr.bf16.mxu0 %v7929_v4  ;;  %3107 = vmatpush1.bf16.msra.mxu1 %v6670_v51  ;;  %v1005_v39 = vpop.f32.mrf.mxu0  ;;  %v1046_v46 = vpop.f32.mrf.mxu1  ;;  %v573_v51 = vadd.f32 %v572_v60, %v571_v10  ;;  %v6714_v10 = vld [vmem:[%s9536_s3 + $0xa0c] ss:$16 sps:$4 sm:$0xff]   ;;  %v6741_v28 = vld [vmem:[%s9536_s3 + $0xb64] ss:$16 sps:$4 sm:$0xff]  }
 0x1af   :  { %v1060_v5 = vrot.slane %v1056_v24, 4  ;;  %v1072_v59 = vrot.slane %v1058_v30, 4  ;;  %3138 = vmatprep.mubr.bf16.mxu1 %v7929_v4  ;;  %v1057_v63 = vmul.f32 %v5522_v56, %v1005_v39  ;;  %v1059_v0 = vmul.f32 %v5524_v11, %v1046_v46  ;;  %3067 = vmatprep.subr.bf16.mxu0 %v6675_v7  ;;  %v6679_v4 = vld [vmem:[%s9536_s3 + $0xaa0] ss:$16 sps:$4 sm:$0xff]   ;;  %v6702_v39 = vld [vmem:[%s9536_s3 + $0xa4c] ss:$16 sps:$4 sm:$0xff]  }
 0x1b0   :  { %v1007_v61 = vpop.f32.mrf.mxu0  ;;  %v1048_v12 = vpop.f32.mrf.mxu1  ;;  %3108 = vmatprep.subr.bf16.mxu1 %v6678_v57  ;;  %v567_v56 = vadd.f32 %v566_v34, %v565_v45  ;;  %v579_v11 = vadd.f32 %v578_v35, %v577_v14  ;;  %v6694_v57 = vld [vmem:[%s9536_s3 + $0xa68] ss:$16 sps:$4 sm:$0xff]   ;;  %v6726_v45 = vld [vmem:[%s9536_s3 + $0xbcc] ss:$16 sps:$4 sm:$0xff]   ;;  %v6721_v14 = vld [vmem:[%s9536_s3 + $0xbc0] ss:$16 sps:$4 sm:$0xff]  }
 0x1b1   :  { %v1061_v20 = vadd.f32 %v1060_v5, %v1056_v24  ;;  %v1073_v13 = vadd.f32 %v1072_v59, %v1058_v30  ;;  %v1066_v31 = vrot.slane %v1057_v63, 4  ;;  %v1078_v43 = vrot.slane %v1059_v0, 4  ;;  %3068 = vmatpush1.bf16.msra.mxu0 %v6673_v58  ;;  %v6699_v24 = vld [vmem:[%s9536_s3 + $0xa44] ss:$16 sps:$4 sm:$0xff]   ;;  %v6700_v5 = vld [vmem:[%s9536_s3 + $0xa48] ss:$16 sps:$4 sm:$0xff]  }
 0x1b2   :  { %3109 = vmatpush1.bf16.msra.mxu1 %v6676_v52  ;;  %v1008_v16 = vpop.f32.mrf.mxu0  ;;  %v1049_v17 = vpop.f32.mrf.mxu1  ;;  %3069 = vmatprep.subr.bf16.mxu0 %v6681_v53  ;;  %v6697_v53 = vld [vmem:[%s9536_s3 + $0xa40] ss:$16 sps:$4 sm:$0xff]   ;;  %v6705_v59 = vld [vmem:[%s9536_s3 + $0xa24] ss:$16 sps:$4 sm:$0xff]   ;;  %v6712_v12 = vld [vmem:[%s9536_s3 + $0xa08] ss:$16 sps:$4 sm:$0xff]  }
 0x1b3   :  { %v1062_v22 = vrot.slane %v1061_v20, 2  ;;  %v1074_v26 = vrot.slane %v1073_v13, 2  ;;  %v1067_v27 = vadd.f32 %v1066_v31, %v1057_v63  ;;  %v1079_v3 = vadd.f32 %v1078_v43, %v1059_v0  ;;  %3110 = vmatprep.subr.bf16.mxu1 %v6684_v1  ;;  %v6708_v63 = vld [vmem:[%s9536_s3 + $0xa2c] ss:$16 sps:$4 sm:$0xff]   ;;  %v6703_v0 = vld [vmem:[%s9536_s3 + $0xa20] ss:$16 sps:$4 sm:$0xff]  }
 0x1b4   :  { %v6706_v1 = vld [vmem:[%s9536_s3 + $0xa28] ss:$16 sps:$4 sm:$0xff]   ;;  %v6709_v61 = vld [vmem:[%s9536_s3 + $0xa00] ss:$16 sps:$4 sm:$0xff]   ;;  %v6729_v17 = vld [vmem:[%s9536_s3 + $0xba4] ss:$16 sps:$4 sm:$0xff]  }
 0x1b5   :  { %v1063_v36 = vadd.f32 %v1062_v22, %v1061_v20  ;;  %v1075_v38 = vadd.f32 %v1074_v26, %v1073_v13  ;;  %v1068_v62 = vrot.slane %v1067_v27, 2  ;;  %v1080_v32 = vrot.slane %v1079_v3, 2  ;;  %3070 = vmatpush1.bf16.msra.mxu0 %v6679_v4  ;;  %v6717_v20 = vld [vmem:[%s9536_s3 + $0xbe4] ss:$16 sps:$4 sm:$0xff]   ;;  %v6720_v13 = vld [vmem:[%s9536_s3 + $0xbec] ss:$16 sps:$4 sm:$0xff]  }
 0x1b6   :  { %3111 = vmatpush1.bf16.msra.mxu1 %v6682_v19  ;;  %3071 = vmatprep.subr.bf16.mxu0 %v6687_v21  ;;  %v6715_v31 = vld [vmem:[%s9536_s3 + $0xbe0] ss:$16 sps:$4 sm:$0xff]   ;;  %v6718_v43 = vld [vmem:[%s9536_s3 + $0xbe8] ss:$16 sps:$4 sm:$0xff]   ;;  %v6723_v4 = vld [vmem:[%s9536_s3 + $0xbc4] ss:$16 sps:$4 sm:$0xff]  }
 0x1b7   :  { %v1064_v44 = vrot.slane %v1063_v36, 1  ;;  %v1076_v25 = vrot.slane %v1075_v38, 1  ;;  %v1069_v49 = vadd.f32 %v1068_v62, %v1067_v27  ;;  %v1081_v6 = vadd.f32 %v1080_v32, %v1079_v3  ;;  %3112 = vmatprep.subr.bf16.mxu1 %v6690_v9  ;;  %v6724_v16 = vld [vmem:[%s9536_s3 + $0xbc8] ss:$16 sps:$4 sm:$0xff]   ;;  %v6732_v19 = vld [vmem:[%s9536_s3 + $0xbac] ss:$16 sps:$4 sm:$0xff]  }
 0x1b8   :  { %v6727_v21 = vld [vmem:[%s9536_s3 + $0xba0] ss:$16 sps:$4 sm:$0xff]   ;;  %v6730_v22 = vld [vmem:[%s9536_s3 + $0xba8] ss:$16 sps:$4 sm:$0xff]   ;;  %v6735_v26 = vld [vmem:[%s9536_s3 + $0xb84] ss:$16 sps:$4 sm:$0xff]  }
 0x1b9   :  { %v1065_v7 = vadd.f32 %v1064_v44, %v1063_v36  ;;  %v1077_v18 = vadd.f32 %v1076_v25, %v1075_v38  ;;  %v1070_v8 = vrot.slane %v1069_v49, 1  ;;  %v1082_v54 = vrot.slane %v1081_v6, 1  ;;  %3072 = vmatpush1.bf16.msra.mxu0 %v6685_v33  ;;  %v6738_v27 = vld [vmem:[%s9536_s3 + $0xb8c] ss:$16 sps:$4 sm:$0xff]   ;;  %v6733_v3 = vld [vmem:[%s9536_s3 + $0xb80] ss:$16 sps:$4 sm:$0xff]  }
 0x1ba   :  { %3113 = vmatpush1.bf16.msra.mxu1 %v6688_v40  ;;  %3073 = vmatprep.subr.bf16.mxu0 %v6693_v41  ;;  %v6736_v9 = vld [vmem:[%s9536_s3 + $0xb88] ss:$16 sps:$4 sm:$0xff]   ;;  %v6744_v60 = vld [vmem:[%s9536_s3 + $0xb6c] ss:$16 sps:$4 sm:$0xff]   ;;  %v6739_v36 = vld [vmem:[%s9536_s3 + $0xb60] ss:$16 sps:$4 sm:$0xff]  }
 0x1bb   :  { %v8223_v30 = vadd.f32 %v1065_v7, %v561_v50  ;;  %v8225_v58 = vadd.f32 %v1077_v18, %v573_v51  ;;  %v1071_v42 = vadd.f32 %v1070_v8, %v1069_v49  ;;  %v1083_v37 = vadd.f32 %v1082_v54, %v1081_v6  ;;  %3114 = vmatprep.subr.bf16.mxu1 %v6696_v48  ;;  %v6742_v38 = vld [vmem:[%s9536_s3 + $0xb68] ss:$16 sps:$4 sm:$0xff]   ;;  %v6747_v62 = vld [vmem:[%s9536_s3 + $0xb44] ss:$16 sps:$4 sm:$0xff]   ;;  %v6750_v32 = vld [vmem:[%s9536_s3 + $0xb4c] ss:$16 sps:$4 sm:$0xff]  }
 0x1bc   :  { %v6745_v33 = vld [vmem:[%s9536_s3 + $0xb40] ss:$16 sps:$4 sm:$0xff]   ;;  %v6748_v34 = vld [vmem:[%s9536_s3 + $0xb48] ss:$16 sps:$4 sm:$0xff]   ;;  %v6753_v35 = vld [vmem:[%s9536_s3 + $0xb24] ss:$16 sps:$4 sm:$0xff]  }
 0x1bd   :  { %v8230_v46 = vadd.f32 %v1071_v42, %v567_v56  ;;  %v8232_v52 = vadd.f32 %v1083_v37, %v579_v11  ;;  %3074 = vmatpush1.bf16.msra.mxu0 %v6691_v55  ;;  %v6756_v40 = vld [vmem:[%s9536_s3 + $0xb2c] ss:$16 sps:$4 sm:$0xff]   ;;  %v6751_v41 = vld [vmem:[%s9536_s3 + $0xb20] ss:$16 sps:$4 sm:$0xff]   ;;  %v6754_v44 = vld [vmem:[%s9536_s3 + $0xb28] ss:$16 sps:$4 sm:$0xff]  }
 0x1be   :  { %3115 = vmatpush1.bf16.msra.mxu1 %v6694_v57  ;;  %3075 = vmatprep.subr.bf16.mxu0 %v6699_v24  ;;  %v6759_v25 = vld [vmem:[%s9536_s3 + $0xb04] ss:$16 sps:$4 sm:$0xff]   ;;  %v6762_v49 = vld [vmem:[%s9536_s3 + $0xb0c] ss:$16 sps:$4 sm:$0xff]   ;;  %v6757_v6 = vld [vmem:[%s9536_s3 + $0xb00] ss:$16 sps:$4 sm:$0xff]  }
 0x1bf   :  { %3116 = vmatprep.subr.bf16.mxu1 %v6702_v39  ;;  %v6760_v48 = vld [vmem:[%s9536_s3 + $0xb08] ss:$16 sps:$4 sm:$0xff]   ;;  %v9546_v7 = vmov 0.0   ;;  %v5655_v57 = vld [vmem:[%s9541_s4 + $0x40] sm:$0xff]  ;;  %v5657_v24 = vld [vmem:[%s9541_s4 + $0x50] sm:$0xff] }
 0x1c0   :  { %v5658_v37 = vld [vmem:[%s9541_s4 + $0x58] sm:$0xff] }
 0x1c1   :  { %3076 = vmatpush1.bf16.msra.mxu0 %v6697_v53 }
 0x1c2   :  { %3117 = vmatpush1.bf16.msra.mxu1 %v6700_v5  ;;  %3077 = vmatprep.subr.bf16.mxu0 %v6705_v59 }
 0x1c3   :  { %3118 = vmatprep.subr.bf16.mxu1 %v6708_v63 }
 0x1c5   :  { %3078 = vmatpush1.bf16.msra.mxu0 %v6703_v0 }
 0x1c6   :  { %3119 = vmatpush1.bf16.msra.mxu1 %v6706_v1  ;;  %3079 = vmatprep.subr.bf16.mxu0 %v6711_v2 }
 0x1c7   :  { %3120 = vmatprep.subr.bf16.mxu1 %v6714_v10 }
 0x1c9   :  { %3080 = vmatpush1.bf16.msra.mxu0 %v6709_v61  ;;  %v5787_v61 = vld [vmem:[%s9541_s4 + $0x60] sm:$0xff] }
 0x1ca   :  { %3121 = vmatpush1.bf16.msra.mxu1 %v6712_v12  ;;  %3081 = vmatprep.subr.bf16.mxu0 %v6717_v20  ;;  %v5789_v20 = vld [vmem:[%s9541_s4 + $0x70] sm:$0xff] }
 0x1cb   :  { %3122 = vmatprep.subr.bf16.mxu1 %v6720_v13 }
 0x1cd   :  { %3082 = vmatpush2.bf16.msra.mxu0 %v6715_v31 }
 0x1ce   :  { %3123 = vmatpush2.bf16.msra.mxu1 %v6718_v43  ;;  %3083 = vmatprep.subr.bf16.mxu0 %v6723_v4  ;;  %v5788_v43 = vld [vmem:[%s9541_s4 + $0x68] sm:$0xff] }
 0x1cf   :  { %3124 = vmatprep.subr.bf16.mxu1 %v6726_v45 }
 0x1d1   :  { %3084 = vmatpush2.bf16.msra.mxu0 %v6721_v14 }
 0x1d2   :  { %3125 = vmatpush2.bf16.msra.mxu1 %v6724_v16  ;;  %3085 = vmatprep.subr.bf16.mxu0 %v6729_v17  ;;  %v5790_v16 = vld [vmem:[%s9541_s4 + $0x78] sm:$0xff] }
 0x1d3   :  { %3126 = vmatprep.subr.bf16.mxu1 %v6732_v19 }
 0x1d5   :  { %3086 = vmatpush2.bf16.msra.mxu0 %v6727_v21 }
 0x1d6   :  { %3127 = vmatpush2.bf16.msra.mxu1 %v6730_v22  ;;  %3087 = vmatprep.subr.bf16.mxu0 %v6735_v26 }
 0x1d7   :  { %3128 = vmatprep.subr.bf16.mxu1 %v6738_v27 }
 0x1d9   :  { %3088 = vmatpush2.bf16.msra.mxu0 %v6733_v3 }
 0x1da   :  { %3129 = vmatpush2.bf16.msra.mxu1 %v6736_v9  ;;  %3089 = vmatprep.subr.bf16.mxu0 %v6741_v28 }
 0x1db   :  { %3130 = vmatprep.subr.bf16.mxu1 %v6744_v60 }
 0x1dd   :  { %3090 = vmatpush2.bf16.msra.mxu0 %v6739_v36 }
 0x1de   :  { %3131 = vmatpush2.bf16.msra.mxu1 %v6742_v38  ;;  %3091 = vmatprep.subr.bf16.mxu0 %v6747_v62 }
 0x1df   :  { %3132 = vmatprep.subr.bf16.mxu1 %v6750_v32 }
 0x1e1   :  { %3092 = vmatpush2.bf16.msra.mxu0 %v6745_v33 }
 0x1e2   :  { %3133 = vmatpush2.bf16.msra.mxu1 %v6748_v34  ;;  %3093 = vmatprep.subr.bf16.mxu0 %v6753_v35 }
 0x1e3   :  { %3134 = vmatprep.subr.bf16.mxu1 %v6756_v40 }
 0x1e5   :  { %3094 = vmatpush2.bf16.msra.mxu0 %v6751_v41 }
 0x1e6   :  { %3135 = vmatpush2.bf16.msra.mxu1 %v6754_v44  ;;  %3095 = vmatprep.subr.bf16.mxu0 %v6759_v25 }
 0x1e7   :  { %3136 = vmatprep.subr.bf16.mxu1 %v6762_v49 }
 0x1e9   :  { %3096 = vmatpush2.bf16.msra.mxu0 %v6757_v6 }
 0x1ea   :  { %3137 = vmatpush2.bf16.msra.mxu1 %v6760_v48 }
 0x1ec   :  { %v1547_v50 = vpop.f32.mrf.mxu0  ;;  %3098 = vmatmul.mubr.bf16.vlgmr.msra.gmra.mxu0 %v8151_v47 }
 0x1ed   :  { %v1588_v51 = vpop.f32.mrf.mxu1  ;;  %3139 = vmatmul.mubr.bf16.vlgmr.msra.gmra.mxu1 %v8151_v47  ;;  %3391 = vmatprep.mubr.f32.mxu0 %v9546_v7  ;;  %v5656_v47 = vld [vmem:[%s9541_s4 + $0x48] sm:$0xff]  ;;  %v1600_v42 = vmul.f32 %v5655_v57, %v1547_v50 }
 0x1ee   :  { %v1549_v18 = vpop.f32.mrf.mxu0  ;;  %3462 = vmatprep.mubr.f32.mxu1 %v9546_v7  ;;  %v1602_v39 = vmul.f32 %v5657_v24, %v1588_v51 }
 0x1ef   :  { %v1590_v8 = vpop.f32.mrf.mxu1  ;;  %v1601_v53 = vmul.f32 %v5656_v47, %v1549_v18  ;;  %v1604_v59 = vrot.slane %v1600_v42, 4 }
 0x1f0   :  { %v1551_v54 = vpop.f32.mrf.mxu0  ;;  %v1603_v5 = vmul.f32 %v5658_v37, %v1590_v8  ;;  %v1616_v63 = vrot.slane %v1602_v39, 4 }
 0x1f1   :  { %v1592_v55 = vpop.f32.mrf.mxu1  ;;  %v1610_v0 = vrot.slane %v1601_v53, 4  ;;  %v1605_v2 = vadd.f32 %v1604_v59, %v1600_v42 }
 0x1f2   :  { %v1552_v56 = vpop.f32.mrf.mxu0  ;;  %v1622_v1 = vrot.slane %v1603_v5, 4  ;;  %v1617_v10 = vadd.f32 %v1616_v63, %v1602_v39  ;;  %v3214_v63 = vpop.permute.xlu0 %3213 }
 0x1f3   :  { %v1593_v11 = vpop.f32.mrf.mxu1  ;;  %v1611_v12 = vadd.f32 %v1610_v0, %v1601_v53  ;;  %v1606_v4 = vrot.slane %v1605_v2, 2 }
 0x1f4   :  { %v1623_v13 = vadd.f32 %v1622_v1, %v1603_v5  ;;  %v1618_v17 = vrot.slane %v1617_v10, 2 }
 0x1f5   :  { %v1612_v22 = vrot.slane %v1611_v12, 2  ;;  %v1607_v38 = vadd.f32 %v1606_v4, %v1605_v2 }
 0x1f6   :  { %v1624_v9 = vrot.slane %v1623_v13, 2  ;;  %v1619_v34 = vadd.f32 %v1618_v17, %v1617_v10 }
 0x1f7   :  { %v1613_v44 = vadd.f32 %v1612_v22, %v1611_v12  ;;  %v1608_v18 = vrot.slane %v1607_v38, 1 }
 0x1f8   :  { %v1625_v48 = vadd.f32 %v1624_v9, %v1623_v13  ;;  %v1620_v55 = vrot.slane %v1619_v34, 1 }
 0x1f9   :  { %v1614_v57 = vrot.slane %v1613_v44, 1  ;;  %v1609_v53 = vadd.f32 %v1608_v18, %v1607_v38 }
 0x1fa   :  { %v1626_v42 = vrot.slane %v1625_v48, 1  ;;  %v1621_v0 = vadd.f32 %v1620_v55, %v1619_v34 }
 0x1fb   :  { %v1615_v10 = vadd.f32 %v1614_v57, %v1613_v44  ;;  %v3243_v44 = vld [vmem:[%s9542_s5 + $0x58] sm:$0xff] }
 0x22c   :  { %v2051_v31 = vpop.f32.mrf.mxu0 }
 0x22d   :  { %v2104_v45 = vmul.f32 %v5787_v61, %v2051_v31  ;;  %v2092_v14 = vpop.f32.mrf.mxu1 }
 0x22e   :  { %v2106_v19 = vmul.f32 %v5789_v20, %v2092_v14  ;;  %v2053_v21 = vpop.f32.mrf.mxu0  ;;  %v1627_v20 = vadd.f32 %v1626_v42, %v1625_v48 }
 0x22f   :  { %v2108_v26 = vrot.slane %v2104_v45, 4  ;;  %v2105_v27 = vmul.f32 %v5788_v43, %v2053_v21  ;;  %v2094_v3 = vpop.f32.mrf.mxu1  ;;  %v3209_v21 = vpop.permute.xlu1 %3208 }
 0x230   :  { %v2120_v28 = vrot.slane %v2106_v19, 4  ;;  %v2107_v60 = vmul.f32 %v5790_v16, %v2094_v3  ;;  %v2055_v36 = vpop.f32.mrf.mxu0 }
 0x231   :  { %v2109_v62 = vadd.f32 %v2108_v26, %v2104_v45  ;;  %v2114_v32 = vrot.slane %v2105_v27, 4  ;;  %v2096_v33 = vpop.f32.mrf.mxu1  ;;  %v3245_v36 = vld [vmem:[%s9542_s5 + $0x68] sm:$0xff] }
 0x232   :  { %v2121_v35 = vadd.f32 %v2120_v28, %v2106_v19  ;;  %v2126_v40 = vrot.slane %v2107_v60, 4  ;;  %v2056_v41 = vpop.f32.mrf.mxu0  ;;  %v3204_v19 = vpop.permute.xlu0 %3203 }
 0x233   :  { %v2110_v25 = vrot.slane %v2109_v62, 2  ;;  %v2115_v49 = vadd.f32 %v2114_v32, %v2105_v27  ;;  %v2097_v6 = vpop.f32.mrf.mxu1  ;;  %v3244_v27 = vld [vmem:[%s9542_s5 + $0x60] sm:$0xff] }
 0x234   :  { %v2122_v50 = vrot.slane %v2121_v35, 2  ;;  %v2127_v51 = vadd.f32 %v2126_v40, %v2107_v60 }
 0x235   :  { %v2111_v8 = vadd.f32 %v2110_v25, %v2109_v62  ;;  %v2116_v54 = vrot.slane %v2115_v49, 2  ;;  %v3241_v62 = vld [vmem:[%s9542_s5 + $0x48] sm:$0xff] }
 0x236   :  { %v2123_v56 = vadd.f32 %v2122_v50, %v2121_v35  ;;  %v2128_v11 = vrot.slane %v2127_v51, 2  ;;  %v3247_v35 = vld [vmem:[%s9542_s5 + $0x78] sm:$0xff] }
 0x237   :  { %v2112_v24 = vrot.slane %v2111_v8, 1  ;;  %v2117_v47 = vadd.f32 %v2116_v54, %v2115_v49 }
 0x238   :  { %v2124_v37 = vrot.slane %v2123_v56, 1  ;;  %v2129_v39 = vadd.f32 %v2128_v11, %v2127_v51 }
 0x239   :  { %v2113_v5 = vadd.f32 %v2112_v24, %v2111_v8  ;;  %v2118_v59 = vrot.slane %v2117_v47, 1 }
 0x23a   :  { %v2125_v1 = vadd.f32 %v2124_v37, %v2123_v56  ;;  %v2130_v2 = vrot.slane %v2129_v39, 1 }
 0x23b   :  { %v2132_v61 = vadd.f32 %v2113_v5, %v1609_v53  ;;  %v2119_v12 = vadd.f32 %v2118_v59, %v2117_v47  ;;  %v3236_v53 = vld [vmem:[%s9542_s5 + $0x20] sm:$0xff]  ;;  %v3238_v5 = vld [vmem:[%s9542_s5 + $0x30] sm:$0xff] }
 0x23c   :  { %v2134_v13 = vadd.f32 %v2125_v1, %v1621_v0  ;;  %v2131_v31 = vadd.f32 %v2130_v2, %v2129_v39  ;;  %v3237_v1 = vld [vmem:[%s9542_s5 + $0x28] sm:$0xff]  ;;  %v3239_v2 = vld [vmem:[%s9542_s5 + $0x38] sm:$0xff] }
 0x23d   :  { %v3184_v43 = vadd.f32 %v2132_v61, %v8223_v30  ;;  %v2133_v4 = vadd.f32 %v2119_v12, %v1615_v10  ;;  %v3240_v30 = vld [vmem:[%s9542_s5 + $0x40] sm:$0xff] }
 0x23e   :  { %v3186_v45 = vadd.f32 %v2134_v13, %v8225_v58  ;;  %v2135_v14 = vadd.f32 %v2131_v31, %v1627_v20 }
 0x23f   :  { %v8390_v16 = vmul.f32 0.5, %v3184_v43  ;;  %v3185_v17 = vadd.f32 %v2133_v4, %v8230_v46  ;;  %v3246_v46 = vld [vmem:[%s9542_s5 + $0x70] sm:$0xff] }
 0x240   :  { %v8393_v22 = vmul.f32 0.5, %v3186_v45  ;;  %v3187_v26 = vadd.f32 %v2135_v14, %v8232_v52  ;;  %v3242_v52 = vld [vmem:[%s9542_s5 + $0x50] sm:$0xff] }
 0x241   :  { %v8402_v58 = vmul.f32 0.5, %v3185_v17  ;;  %v3228_v3 = vmul.f32 %v3214_v63, %v8390_v16  ;;  %v3224_v9 = vmul.f32 %v3209_v21, %v8390_v16  ;;  %v3220_v28 = vmul.f32 %v3204_v19, %v8390_v16  ;;  %v3233_v17 = vld [vmem:[%s9542_s5 + $0x8] sm:$0xff] }
 0x242   :  { %v8413_v60 = vmul.f32 0.5, %v3187_v26  ;;  %v3230_v38 = vmul.f32 %v3214_v63, %v8393_v22  ;;  %v3226_v32 = vmul.f32 %v3209_v21, %v8393_v22  ;;  %v3222_v33 = vmul.f32 %v3204_v19, %v8393_v22 }
 0x243   :  { %v3229_v34 = vmul.f32 %v3214_v63, %v8402_v58  ;;  %v3260_v40 = vadd.f32 %v3244_v27, %v3228_v3  ;;  %v3225_v41 = vmul.f32 %v3209_v21, %v8402_v58  ;;  %v3256_v25 = vadd.f32 %v3240_v30, %v3224_v9  ;;  %v3199_v27 = vpop.permute.xlu1 %3198 }
 0x244   :  { %v3231_v49 = vmul.f32 %v3214_v63, %v8413_v60  ;;  %v3262_v6 = vadd.f32 %v3246_v46, %v3230_v38  ;;  %v3227_v48 = vmul.f32 %v3209_v21, %v8413_v60  ;;  %v3258_v50 = vadd.f32 %v3242_v52, %v3226_v32 }
 0x245   :  { %v3261_v51 = vadd.f32 %v3245_v36, %v3229_v34  ;;  %vm3276_vm0 = vcmp.gt.f32.partialorder %v3260_v40, 0.0  ;;  %v3292_v18 = vmul.f32 0.01, %v3260_v40  ;;  %v3257_v8 = vadd.f32 %v3241_v62, %v3225_v41  ;;  %v3234_v36 = vld [vmem:[%s9542_s5 + $0x10] sm:$0xff] }
 0x246   :  { %v3263_v54 = vadd.f32 %v3247_v35, %v3231_v49  ;;  %vm3278_vm1 = vcmp.gt.f32.partialorder %v3262_v6, 0.0  ;;  %v3294_v55 = vmul.f32 0.01, %v3262_v6  ;;  %v3259_v56 = vadd.f32 %v3243_v44, %v3227_v48 }
 0x247   :  { %vm3277_vm2 = vcmp.gt.f32.partialorder %v3261_v51, 0.0  ;;  %v3293_v11 = vmul.f32 0.01, %v3261_v51  ;;  %v3308_v57 = vsel %vm3276_vm0, %v3260_v40, %v3292_v18  ;;  %vm3273_vm3 = vcmp.gt.f32.partialorder %v3257_v8, 0.0  ;;  %v3312_v18 = vld [vmem:[%s9543_s9] sm:$0x1] }
 0x248   :  { %vm3279_vm4 = vcmp.gt.f32.partialorder %v3263_v54, 0.0  ;;  %v3295_v24 = vmul.f32 0.01, %v3263_v54  ;;  %v3310_v47 = vsel %vm3278_vm1, %v3262_v6, %v3294_v55  ;;  %v3289_v42 = vmul.f32 0.01, %v3257_v8 }
 0x249   :  { %v3309_v37 = vsel %vm3277_vm2, %v3261_v51, %v3293_v11  ;;  %vm3275_vm5 = vcmp.gt.f32.partialorder %v3259_v56, 0.0  ;;  %v3291_v39 = vmul.f32 0.01, %v3259_v56  ;;  %vm3272_vm6 = vcmp.gt.f32.partialorder %v3256_v25, 0.0 }
 0x24a   :  { %3351 = vmatprep.subr.mxu0 %v3309_v37  ;;  %v3311_v59 = vsel %vm3279_vm4, %v3263_v54, %v3295_v24  ;;  %v3305_v63 = vsel %vm3273_vm3, %v3257_v8, %v3289_v42  ;;  %v3288_v0 = vmul.f32 0.01, %v3256_v25  ;;  %vm3274_vm7 = vcmp.gt.f32.partialorder %v3258_v50, 0.0 }
 0x24b   :  { %3422 = vmatprep.subr.mxu1 %v3311_v59  ;;  %3352 = vmatpush1.msra.mxu0 %v3308_v57  ;;  %v3307_v10 = vsel %vm3275_vm5, %v3259_v56, %v3291_v39  ;;  %v3290_v61 = vmul.f32 0.01, %v3258_v50  ;;  %v3221_v12 = vmul.f32 %v3204_v19, %v8402_v58  ;;  %v3223_v20 = vmul.f32 %v3204_v19, %v8413_v60  ;;  %v3235_v19 = vld [vmem:[%s9542_s5 + $0x18] sm:$0xff]  ;;  %v5921_v39 = vld [vmem:[%s9541_s4 + $0x80] sm:$0xff] }
 0x24c   :  { %3423 = vmatpush1.msra.mxu1 %v3310_v47  ;;  %3353 = vmatprep.subr.mxu0 %v3305_v63  ;;  %v3304_v13 = vsel %vm3272_vm6, %v3256_v25, %v3288_v0  ;;  %v3252_v31 = vadd.f32 %v3236_v53, %v3220_v28  ;;  %v3254_v43 = vadd.f32 %v3238_v5, %v3222_v33  ;;  %v3232_v28 = vld [vmem:[%s9542_s5] sm:$0xff]  ;;  %vm3323_vm0 = vcmask 261120   ;;  %v5923_v53 = vld [vmem:[%s9541_s4 + $0x90] sm:$0xff]  ;;  %v5922_v5 = vld [vmem:[%s9541_s4 + $0x88] sm:$0xff] }
 0x24d   :  { %3424 = vmatprep.subr.mxu1 %v3307_v10  ;;  %3354 = vmatpush1.msra.mxu0 %v3304_v13  ;;  %v3306_v4 = vsel %vm3274_vm7, %v3258_v50, %v3290_v61  ;;  %v3253_v45 = vadd.f32 %v3237_v1, %v3221_v12  ;;  %v3255_v14 = vadd.f32 %v3239_v2, %v3223_v20  ;;  %v5924_v63 = vld [vmem:[%s9541_s4 + $0x98] sm:$0xff] }
 0x24e   :  { %3425 = vmatpush1.msra.mxu1 %v3306_v4  ;;  %vm3268_vm8 = vcmp.gt.f32.partialorder %v3252_v31, 0.0  ;;  %v3284_v21 = vmul.f32 0.01, %v3252_v31  ;;  %vm3270_vm9 = vcmp.gt.f32.partialorder %v3254_v43, 0.0  ;;  %v3286_v26 = vmul.f32 0.01, %v3254_v43 }
 0x24f   :  { %vm3269_vm10 = vcmp.gt.f32.partialorder %v3253_v45, 0.0  ;;  %v3285_v30 = vmul.f32 0.01, %v3253_v45  ;;  %vm3271_vm11 = vcmp.gt.f32.partialorder %v3255_v14, 0.0  ;;  %v3287_v3 = vmul.f32 0.01, %v3255_v14 }
 0x250   :  { %v3300_v46 = vsel %vm3268_vm8, %v3252_v31, %v3284_v21  ;;  %v3217_v9 = vmul.f32 %v3199_v27, %v8402_v58  ;;  %v3219_v52 = vmul.f32 %v3199_v27, %v8413_v60  ;;  %v3216_v32 = vmul.f32 %v3199_v27, %v8390_v16 }
 0x251   :  { %v3301_v38 = vsel %vm3269_vm10, %v3253_v45, %v3285_v30  ;;  %v3303_v62 = vsel %vm3271_vm11, %v3255_v14, %v3287_v3  ;;  %v3218_v33 = vmul.f32 %v3199_v27, %v8393_v22  ;;  %v3302_v34 = vsel %vm3270_vm9, %v3254_v43, %v3286_v26  ;;  %v6053_v43 = vld [vmem:[%s9541_s4 + $0xa0] sm:$0xff]  ;;  %v6055_v45 = vld [vmem:[%s9541_s4 + $0xb0] sm:$0xff]  ;;  %v6056_v30 = vld [vmem:[%s9541_s4 + $0xb8] sm:$0xff] }
 0x252   :  { %3355 = vmatprep.subr.mxu0 %v3301_v38  ;;  %3426 = vmatprep.subr.mxu1 %v3303_v62  ;;  %v3249_v35 = vadd.f32 %v3233_v17, %v3217_v9  ;;  %v3251_v40 = vadd.f32 %v3235_v19, %v3219_v52  ;;  %v3248_v41 = vadd.f32 %v3232_v28, %v3216_v32  ;;  %v6054_v19 = vld [vmem:[%s9541_s4 + $0xa8] sm:$0xff] }
 0x253   :  { %3356 = vmatpush1.msra.mxu0 %v3300_v46  ;;  %3427 = vmatpush1.msra.mxu1 %v3302_v34  ;;  %v3250_v44 = vadd.f32 %v3234_v36, %v3218_v33 }
 0x254   :  { %vm3265_vm12 = vcmp.gt.f32.partialorder %v3249_v35, 0.0  ;;  %v3281_v25 = vmul.f32 0.01, %v3249_v35  ;;  %vm3267_vm13 = vcmp.gt.f32.partialorder %v3251_v40, 0.0  ;;  %v3283_v49 = vmul.f32 0.01, %v3251_v40 }
 0x255   :  { %vm3264_vm14 = vcmp.gt.f32.partialorder %v3248_v41, 0.0  ;;  %v3280_v6 = vmul.f32 0.01, %v3248_v41  ;;  %vm3266_vm15 = vcmp.gt.f32.partialorder %v3250_v44, 0.0  ;;  %v3282_v48 = vmul.f32 0.01, %v3250_v44 }
 0x256   :  { %v3297_v50 = vsel %vm3265_vm12, %v3249_v35, %v3281_v25  ;;  %v3299_v51 = vsel %vm3267_vm13, %v3251_v40, %v3283_v49 }
 0x257   :  { %3357 = vmatprep.subr.mxu0 %v3297_v50  ;;  %3428 = vmatprep.subr.mxu1 %v3299_v51  ;;  %v3296_v8 = vsel %vm3264_vm14, %v3248_v41, %v3280_v6  ;;  %v3298_v54 = vsel %vm3266_vm15, %v3250_v44, %v3282_v48 }
 0x258   :  { %3358 = vmatpush1.msra.mxu0 %v3296_v8  ;;  %3429 = vmatpush1.msra.mxu1 %v3298_v54 }
 0x259   :  { %6057 = vmatmul.mubr.msk.f32.vlgmr.msra.gmra.mxu0 %vm3323_vm0, %v3312_v18  ;;  %6058 = vmatmul.mubr.msk.f32.vlgmr.msra.gmra.mxu1 %vm3323_vm0, %v3312_v18 }
 0x25a   :  { %3744 = vmatprep.mubr.f32.mxu0 %v9546_v7  ;;  %3815 = vmatprep.mubr.f32.mxu1 %v9546_v7 }
 0x26c   :  { %v2595_v55 = vpop.f32.mrf.mxu0 }
 0x26d   :  { %v2636_v56 = vpop.f32.mrf.mxu1  ;;  %v2648_v59 = vmul.f32 %v5921_v39, %v2595_v55 }
 0x26e   :  { %v2597_v11 = vpop.f32.mrf.mxu0  ;;  %v2650_v0 = vmul.f32 %v5923_v53, %v2636_v56 }
 0x26f   :  { %v2638_v57 = vpop.f32.mrf.mxu1  ;;  %v2649_v1 = vmul.f32 %v5922_v5, %v2597_v11  ;;  %v2652_v10 = vrot.slane %v2648_v59, 4 }
 0x270   :  { %v2599_v24 = vpop.f32.mrf.mxu0  ;;  %v2651_v2 = vmul.f32 %v5924_v63, %v2638_v57  ;;  %v2664_v61 = vrot.slane %v2650_v0, 4 }
 0x271   :  { %v2640_v47 = vpop.f32.mrf.mxu1  ;;  %v2658_v12 = vrot.slane %v2649_v1, 4  ;;  %v2653_v13 = vadd.f32 %v2652_v10, %v2648_v59 }
 0x272   :  { %v2600_v42 = vpop.f32.mrf.mxu0  ;;  %v2670_v20 = vrot.slane %v2651_v2, 4  ;;  %v2665_v31 = vadd.f32 %v2664_v61, %v2650_v0 }
 0x273   :  { %v2641_v37 = vpop.f32.mrf.mxu1  ;;  %v2659_v4 = vadd.f32 %v2658_v12, %v2649_v1  ;;  %v2654_v21 = vrot.slane %v2653_v13, 2 }
 0x274   :  { %v2671_v14 = vadd.f32 %v2670_v20, %v2651_v2  ;;  %v2666_v3 = vrot.slane %v2665_v31, 2 }
 0x275   :  { %v2660_v52 = vrot.slane %v2659_v4, 2  ;;  %v2655_v35 = vadd.f32 %v2654_v21, %v2653_v13  ;;  %v3317_v21 = vpop.permute.xlu0 %3316 }
 0x276   :  { %v2672_v62 = vrot.slane %v2671_v14, 2  ;;  %v2667_v25 = vadd.f32 %v2666_v3, %v2665_v31 }
 0x277   :  { %v2661_v50 = vadd.f32 %v2660_v52, %v2659_v4  ;;  %v2656_v11 = vrot.slane %v2655_v35, 1 }
 0x278   :  { %v2673_v54 = vadd.f32 %v2672_v62, %v2671_v14  ;;  %v2668_v47 = vrot.slane %v2667_v25, 1 }
 0x279   :  { %v2662_v39 = vrot.slane %v2661_v50, 1  ;;  %v2657_v1 = vadd.f32 %v2656_v11, %v2655_v35  ;;  %v6077_v11 = vld [vmem:[%s9542_s5 + $0xd0] sm:$0xff] }
 0x27a   :  { %v2674_v59 = vrot.slane %v2673_v54, 1  ;;  %v2669_v61 = vadd.f32 %v2668_v47, %v2667_v25 }
 0x27b   :  { %v2663_v13 = vadd.f32 %v2662_v39, %v2661_v50  ;;  %v6076_v50 = vld [vmem:[%s9542_s5 + $0xc8] sm:$0xff] }
 0x27c   :  { %v2675_v4 = vadd.f32 %v2674_v59, %v2673_v54 }
 0x2ac   :  { %v3099_v17 = vpop.f32.mrf.mxu0 }
 0x2ad   :  { %v3152_v26 = vmul.f32 %v6053_v43, %v3099_v17  ;;  %v3140_v27 = vpop.f32.mrf.mxu1 }
 0x2ae   :  { %v3154_v46 = vmul.f32 %v6055_v45, %v3140_v27  ;;  %v3101_v9 = vpop.f32.mrf.mxu0  ;;  %v3492_v27 = vpop.permute.xlu1 %3491 }
 0x2af   :  { %v3156_v28 = vrot.slane %v3152_v26, 4  ;;  %v3153_v36 = vmul.f32 %v6054_v19, %v3101_v9  ;;  %v3142_v38 = vpop.f32.mrf.mxu1  ;;  %v3507_v62 = vmul.f32 %v3492_v27, %v8402_v58 }
 0x2b0   :  { %v3168_v32 = vrot.slane %v3154_v46, 4  ;;  %v3155_v33 = vmul.f32 %v6056_v30, %v3142_v38  ;;  %v3103_v34 = vpop.f32.mrf.mxu0 }
 0x2b1   :  { %v3157_v40 = vadd.f32 %v3156_v28, %v3152_v26  ;;  %v3162_v41 = vrot.slane %v3153_v36, 4  ;;  %v3144_v44 = vpop.f32.mrf.mxu1  ;;  %v3487_v26 = vpop.permute.xlu0 %3486  ;;  %v6082_v34 = vld [vmem:[%s9542_s5 + $0xf8] sm:$0xff] }
 0x2b2   :  { %v3169_v49 = vadd.f32 %v3168_v32, %v3154_v46  ;;  %v3174_v6 = vrot.slane %v3155_v33, 4  ;;  %v3104_v48 = vpop.f32.mrf.mxu0  ;;  %v8506_v3 = vpop.permute.xlu1 %3532  ;;  %v3509_v32 = vmul.f32 %v3492_v27, %v8413_v60  ;;  %v3508_v44 = vmul.f32 %v3492_v27, %v8393_v22 }
 0x2b3   :  { %v3158_v51 = vrot.slane %v3157_v40, 2  ;;  %v3163_v18 = vadd.f32 %v3162_v41, %v3153_v36  ;;  %v3145_v8 = vpop.f32.mrf.mxu1  ;;  %v6079_v41 = vld [vmem:[%s9542_s5 + $0xe0] sm:$0xff]  ;;  %v3503_v25 = vmul.f32 %v3487_v26, %v8402_v58  ;;  %v6081_v48 = vld [vmem:[%s9542_s5 + $0xf0] sm:$0xff]  ;;  %v3502_v54 = vmul.f32 %v3487_v26, %v8390_v16 }
 0x2b4   :  { %v3170_v55 = vrot.slane %v3169_v49, 2  ;;  %v3175_v56 = vadd.f32 %v3174_v6, %v3155_v33  ;;  %v6080_v33 = vld [vmem:[%s9542_s5 + $0xe8] sm:$0xff]  ;;  %v8534_v6 = vrot.slane %v3317_v21, %v7284_v29  ;;  %v8547_v8 = vadd.f32 %v6082_v34, %v3509_v32 }
 0x2b5   :  { %v3159_v57 = vadd.f32 %v3158_v51, %v3157_v40  ;;  %v3164_v24 = vrot.slane %v3163_v18, 2  ;;  %v3482_v30 = vpop.permute.xlu0 %3481  ;;  %v3506_v40 = vmul.f32 %v3492_v27, %v8390_v16  ;;  %v6078_v51 = vld [vmem:[%s9542_s5 + $0xd8] sm:$0xff]  ;;  %v8568_v59 = vadd.f32 %v6076_v50, %v3503_v25  ;;  %v8603_v21 = vld [vmem:[%s9542_s5 + $0x88] sm:$0xff]  ;;  %v6069_v27 = vld [vmem:[%s9542_s5 + $0x90] sm:$0xff] }
 0x2b6   :  { %v3171_v42 = vadd.f32 %v3170_v55, %v3169_v49  ;;  %v3176_v37 = vrot.slane %v3175_v56, 2  ;;  %v8508_v9 = vpop.permute.xlu1 %3527  ;;  %v3505_v49 = vmul.f32 %v3487_v26, %v8413_v60  ;;  %v3504_v55 = vmul.f32 %v3487_v26, %v8393_v22  ;;  %9572 = vst [vmem:[#allocation7_spill] sm:$0xff] %v8603_v21  ;;  %v8608_v26 = vld [vmem:[%s9542_s5 + $0x98] sm:$0xff]  ;;  %v8636_v25 = vld [vmem:[%s9542_s5 + $0x160] sm:$0xff] }
 0x2b7   :  { %v3160_v53 = vrot.slane %v3159_v57, 1  ;;  %v3165_v5 = vadd.f32 %v3164_v24, %v3163_v18  ;;  %v8545_v18 = vadd.f32 %v6080_v33, %v3507_v62  ;;  %v6072_v24 = vld [vmem:[%s9542_s5 + $0xa8] sm:$0xff]  ;;  %v3501_v47 = vmul.f32 %v3482_v30, %v8413_v60  ;;  %9573 = vst [vmem:[#allocation8_spill] sm:$0xff] %v8608_v26  ;;  %9574 = vst [vmem:[#allocation9_spill] sm:$0xff] %v8636_v25 }
 0x2b8   :  { %v3172_v63 = vrot.slane %v3171_v42, 1  ;;  %v3177_v0 = vadd.f32 %v3176_v37, %v3175_v56  ;;  %v6075_v56 = vld [vmem:[%s9542_s5 + $0xc0] sm:$0xff]  ;;  %v3500_v37 = vmul.f32 %v3482_v30, %v8393_v22 }
 0x2b9   :  { %v3161_v2 = vadd.f32 %v3160_v53, %v3159_v57  ;;  %v3166_v10 = vrot.slane %v3165_v5, 1  ;;  %v3477_v46 = vpop.permute.xlu0 %3476  ;;  %v3499_v57 = vmul.f32 %v3482_v30, %v8402_v58  ;;  %v8564_v53 = vadd.f32 %v6079_v41, %v3506_v40  ;;  %v6112_v40 = vld [vmem:[%s9542_s5 + $0x168] sm:$0xff]  ;;  %v6114_v41 = vld [vmem:[%s9542_s5 + $0x178] sm:$0xff] }
 0x2ba   :  { %v3173_v12 = vadd.f32 %v3172_v63, %v3171_v42  ;;  %v3178_v20 = vrot.slane %v3177_v0, 1  ;;  %v8512_v28 = vpop.permute.xlu1 %3522  ;;  %v3498_v42 = vmul.f32 %v3482_v30, %v8390_v16  ;;  %v8570_v63 = vadd.f32 %v6078_v51, %v3505_v49 }
 0x2bb   :  { %v8498_v31 = vadd.f32 %v3161_v2, %v2657_v1  ;;  %v3167_v43 = vadd.f32 %v3166_v10, %v3165_v5  ;;  %v8566_v5 = vadd.f32 %v6081_v48, %v3508_v44  ;;  %v8580_v1 = vld [vmem:[%s9542_s5 + $0xa0] sm:$0xff]  ;;  %v8585_v2 = vld [vmem:[%s9542_s5 + $0xb0] sm:$0xff]  ;;  %v3495_v10 = vmul.f32 %v3477_v46, %v8402_v58 }
 0x2bc   :  { %v8500_v45 = vadd.f32 %v3173_v12, %v2669_v61  ;;  %v3179_v14 = vadd.f32 %v3178_v20, %v3177_v0  ;;  %v8575_v0 = vld [vmem:[%s9542_s5 + $0xb8] sm:$0xff]  ;;  %9570 = vst [vmem:[#allocation5_spill] sm:$0xff] %v8580_v1  ;;  %9571 = vst [vmem:[#allocation6_spill] sm:$0xff] %v8585_v2  ;;  %v3497_v61 = vmul.f32 %v3477_v46, %v8413_v60  ;;  %v6067_v20 = vld [vmem:[%s9542_s5 + $0x80] sm:$0xff] }
 0x2bd   :  { %v8502_v17 = vadd.f32 %v3167_v43, %v2663_v13  ;;  %v8510_v52 = vpop.permute.xlu0 %3517  ;;  %9569 = vst [vmem:[#allocation4_spill] sm:$0xff] %v8575_v0  ;;  %v3494_v12 = vmul.f32 %v3477_v46, %v8390_v16  ;;  %v3496_v13 = vmul.f32 %v3477_v46, %v8393_v22  ;;  %v8615_v62 = vadd.f32 %v6072_v24, %v3499_v57  ;;  %v6110_v57 = vld [vmem:[%s9542_s5 + $0x158] sm:$0xff] }
 0x2be   :  { %v8504_v19 = vadd.f32 %v3179_v14, %v2675_v4  ;;  %v8514_v38 = vpop.permute.xlu1 %3670  ;;  %v8596_v4 = vadd.f32 %v6075_v56, %v3502_v54  ;;  %v8598_v14 = vadd.f32 %v6077_v11, %v3504_v55  ;;  %v8618_v32 = vadd.f32 %v8575_v0, %v3501_v47  ;;  %v8654_v11 = vld [vmem:[%s9542_s5 + $0x170] sm:$0xff] }
 0x2bf   :  { %9568 = vst [vmem:[#allocation3_spill] sm:$0xff] %v8514_v38  ;;  %v8621_v33 = vadd.f32 %v8580_v1, %v3498_v42  ;;  %v8624_v34 = vadd.f32 %v8585_v2, %v3500_v37  ;;  %v8642_v51 = vadd.f32 %v8603_v21, %v3495_v10  ;;  %v8645_v54 = vadd.f32 %v8608_v26, %v3497_v61  ;;  %v8673_v61 = vld [vmem:[%s9542_s5 + $0x140] sm:$0xff]  ;;  %v8699_v26 = vld [vmem:[%s9542_s5 + $0x138] sm:$0xff] }
 0x2c0   :  { %v8647_v55 = vadd.f32 %v6067_v20, %v3494_v12  ;;  %v8649_v56 = vadd.f32 %v6069_v27, %v3496_v13  ;;  %9575 = vst [vmem:[#allocation10_spill] sm:$0xff] %v8654_v11  ;;  %9577 = vst [vmem:[#allocation12_spill] sm:$0xff] %v8673_v61  ;;  %v6109_v12 = vld [vmem:[%s9542_s5 + $0x150] sm:$0xff]  ;;  %v6104_v13 = vld [vmem:[%s9542_s5 + $0x128] sm:$0xff] }
 0x2c1   :  { %v3845_v36 = vpop.permute.xlu0 %3844  ;;  %9578 = vst [vmem:[#allocation13_spill] sm:$0xff] %v8699_v26 }
 0x2c2   :  { %v3840_v39 = vpop.permute.xlu1 %3839  ;;  %v3860_v30 = vmul.f32 %v3845_v36, %v8402_v58  ;;  %v3862_v46 = vmul.f32 %v3845_v36, %v8413_v60  ;;  %v3859_v44 = vmul.f32 %v3845_v36, %v8390_v16  ;;  %v3861_v49 = vmul.f32 %v3845_v36, %v8393_v22  ;;  %v8659_v36 = vld [vmem:[%s9542_s5 + $0x148] sm:$0xff] }
 0x2c3   :  { %v3856_v48 = vmul.f32 %v3840_v39, %v8402_v58  ;;  %v3858_v50 = vmul.f32 %v3840_v39, %v8413_v60  ;;  %9576 = vst [vmem:[#allocation11_spill] sm:$0xff] %v8659_v36  ;;  %v3855_v37 = vmul.f32 %v3840_v39, %v8390_v16  ;;  %v3857_v10 = vmul.f32 %v3840_v39, %v8393_v22 }
 0x2c4   :  { %v8664_v47 = vadd.f32 %v6112_v40, %v3860_v30  ;;  %v8666_v42 = vadd.f32 %v6114_v41, %v3862_v46  ;;  %v8686_v40 = vadd.f32 %v8636_v25, %v3859_v44  ;;  %v8689_v41 = vadd.f32 %v8654_v11, %v3861_v49  ;;  %v8709_v44 = vld [vmem:[%s9542_s5 + $0x130] sm:$0xff]  ;;  %v6099_v11 = vld [vmem:[%s9542_s5 + $0x100] sm:$0xff] }
 0x2c5   :  { %v8524_v35 = vpop.permute.xlu0 %3885  ;;  %v8692_v15 = vadd.f32 %v8659_v36, %v3856_v48  ;;  %v8694_v7 = vadd.f32 %v6110_v57, %v3858_v50  ;;  %9580 = vst [vmem:[#allocation15_spill] sm:$0xff] %v8709_v44  ;;  %v8721_v1 = vadd.f32 %v8673_v61, %v3855_v37  ;;  %v8723_v0 = vadd.f32 %v6109_v12, %v3857_v10 }
 0x2c6   :  { %v3835_v24 = vpop.permute.xlu1 %3834 }
 0x2c7   :  { %v3852_v20 = vmul.f32 %v3835_v24, %v8402_v58  ;;  %v3854_v27 = vmul.f32 %v3835_v24, %v8413_v60  ;;  %v3851_v30 = vmul.f32 %v3835_v24, %v8390_v16  ;;  %v3853_v39 = vmul.f32 %v3835_v24, %v8393_v22  ;;  %v8704_v24 = vld [vmem:[%s9542_s5 + $0x120] sm:$0xff] }
 0x2c8   :  { %9579 = vst [vmem:[#allocation14_spill] sm:$0xff] %v8704_v24 }
 0x2c9   :  { %v8594_v43 = vpop.permute.xlu0 %3880  ;;  %v8743_v10 = vadd.f32 %v8699_v26, %v3854_v27  ;;  %v8746_v12 = vadd.f32 %v8704_v24, %v3851_v30 }
 0x2cd   :  { %v3830_v46 = vpop.permute.xlu0 %3829 }
 0x2ce   :  { %v3848_v50 = vmul.f32 %v3830_v46, %v8402_v58  ;;  %v3850_v57 = vmul.f32 %v3830_v46, %v8413_v60  ;;  %v3847_v36 = vmul.f32 %v3830_v46, %v8390_v16  ;;  %v3849_v25 = vmul.f32 %v3830_v46, %v8393_v22  ;;  %v8728_v58 = vld [vmem:[%s9542_s5 + $0x108] sm:$0xff]  ;;  %v8733_v16 = vld [vmem:[%s9542_s5 + $0x118] sm:$0xff]  ;;  %v8738_v22 = vld [vmem:[%s9542_s5 + $0x110] sm:$0xff] }
 0x2cf   :  { %9581 = vst [vmem:[#allocation16_spill] sm:$0xff] %v8728_v58  ;;  %9582 = vst [vmem:[#allocation17_spill] sm:$0xff] %v8733_v16  ;;  %v8740_v46 = vadd.f32 %v6104_v13, %v3852_v20 }
 0x2d0   :  { %9583 = vst [vmem:[#allocation18_spill] sm:$0xff] %v8738_v22  ;;  %v8760_v13 = vadd.f32 %v8728_v58, %v3848_v50  ;;  %v8763_v27 = vadd.f32 %v8733_v16, %v3850_v57  ;;  %v8765_v30 = vadd.f32 %v6099_v11, %v3847_v36 }
 0x319   :  { %v3393_v49 = vpop.f32.mrf.mxu0  ;;  %v3464_v48 = vpop.f32.mrf.mxu1 }
 0x31a   :  { %v3394_v21 = vadd.f32 %v3393_v49, %v8534_v6  ;;  %v3465_v2 = vadd.f32 %v3464_v48, %v8534_v6  ;;  %v8749_v49 = vadd.f32 %v8709_v44, %v3853_v39  ;;  %v8768_v39 = vadd.f32 %v8738_v22, %v3849_v25 }
 0x31b   :  { %v3395_v60 = vpop.f32.mrf.mxu0  ;;  %v3466_v37 = vpop.f32.mrf.mxu1 }
 0x31c   :  { %v8752_v48 = vrot.slane %v3394_v21, %v7284_v29  ;;  %v8755_v61 = vrot.slane %v3465_v2, %v7284_v29  ;;  %v3396_v23 = vadd.f32 %v3395_v60, %v8534_v6  ;;  %v3467_v20 = vadd.f32 %v3466_v37, %v8534_v6 }
 0x31e   :  { %v8771_v21 = vrot.slane %v3396_v23, %v7284_v29  ;;  %v8774_v2 = vrot.slane %v3467_v20, %v7284_v29  ;;  %v3563_v6 = vmul.f32 %v8752_v48, %v8506_v3  ;;  %v3565_v50 = vmul.f32 %v8755_v61, %v8506_v3 }
 0x31f   :  { %v3559_v57 = vmul.f32 %v8752_v48, %v8508_v9  ;;  %v3561_v11 = vmul.f32 %v8755_v61, %v8508_v9  ;;  %v3555_v25 = vmul.f32 %v8752_v48, %v8512_v28  ;;  %v3557_v23 = vmul.f32 %v8755_v61, %v8512_v28 }
 0x320   :  { %v3564_v36 = vmul.f32 %v8771_v21, %v8506_v3  ;;  %v3566_v60 = vmul.f32 %v8774_v2, %v8506_v3  ;;  %v3612_v37 = vadd.f32 %v8564_v53, %v3563_v6  ;;  %v3614_v20 = vadd.f32 %v8566_v5, %v3565_v50 }
 0x321   :  { %v3560_v22 = vmul.f32 %v8771_v21, %v8508_v9  ;;  %v3562_v16 = vmul.f32 %v8774_v2, %v8508_v9  ;;  %v3608_v58 = vadd.f32 %v8596_v4, %v3559_v57  ;;  %v3610_v44 = vadd.f32 %v8598_v14, %v3561_v11 }
 0x322   :  { %v3613_v24 = vadd.f32 %v8545_v18, %v3564_v36  ;;  %v3615_v26 = vadd.f32 %v8547_v8, %v3566_v60  ;;  %vm3628_vm1 = vcmp.gt.f32.partialorder %v3612_v37, 0.0  ;;  %v3644_v3 = vmul.f32 0.01, %v3612_v37 }
 0x323   :  { %vm3630_vm2 = vcmp.gt.f32.partialorder %v3614_v20, 0.0  ;;  %v3646_v53 = vmul.f32 0.01, %v3614_v20  ;;  %v3609_v5 = vadd.f32 %v8568_v59, %v3560_v22  ;;  %v3611_v6 = vadd.f32 %v8570_v63, %v3562_v16 }
 0x324   :  { %vm3629_vm3 = vcmp.gt.f32.partialorder %v3613_v24, 0.0  ;;  %v3645_v50 = vmul.f32 0.01, %v3613_v24  ;;  %vm3631_vm4 = vcmp.gt.f32.partialorder %v3615_v26, 0.0  ;;  %v3647_v9 = vmul.f32 0.01, %v3615_v26 }
 0x325   :  { %v3660_v38 = vsel %vm3628_vm1, %v3612_v37, %v3644_v3  ;;  %v3662_v4 = vsel %vm3630_vm2, %v3614_v20, %v3646_v53  ;;  %vm3625_vm5 = vcmp.gt.f32.partialorder %v3609_v5, 0.0  ;;  %v3641_v14 = vmul.f32 0.01, %v3609_v5  ;;  %v8814_v53 = vpop.permute.xlu1 %3926 }
 0x326   :  { %v3661_v57 = vsel %vm3629_vm3, %v3613_v24, %v3645_v50  ;;  %v3663_v18 = vsel %vm3631_vm4, %v3615_v26, %v3647_v9  ;;  %vm3627_vm6 = vcmp.gt.f32.partialorder %v3611_v6, 0.0  ;;  %v3643_v8 = vmul.f32 0.01, %v3611_v6 }
 0x327   :  { %3704 = vmatprep.subr.mxu0 %v3661_v57  ;;  %3775 = vmatprep.subr.mxu1 %v3663_v18  ;;  %v3657_v11 = vsel %vm3625_vm5, %v3609_v5, %v3641_v14  ;;  %vm3624_vm7 = vcmp.gt.f32.partialorder %v3608_v58, 0.0  ;;  %v3640_v36 = vmul.f32 0.01, %v3608_v58  ;;  %vm3626_vm8 = vcmp.gt.f32.partialorder %v3610_v44, 0.0 }
 0x328   :  { %3705 = vmatpush1.msra.mxu0 %v3660_v38  ;;  %3776 = vmatpush1.msra.mxu1 %v3662_v4  ;;  %v3659_v59 = vsel %vm3627_vm6, %v3611_v6, %v3643_v8  ;;  %v3642_v63 = vmul.f32 0.01, %v3610_v44  ;;  %v3556_v16 = vmul.f32 %v8771_v21, %v8512_v28  ;;  %v3558_v22 = vmul.f32 %v8774_v2, %v8512_v28 }
 0x329   :  { %3706 = vmatprep.subr.mxu0 %v3657_v11  ;;  %3777 = vmatprep.subr.mxu1 %v3659_v59  ;;  %v3656_v26 = vsel %vm3624_vm7, %v3608_v58, %v3640_v36  ;;  %v3604_v24 = vadd.f32 %v8621_v33, %v3555_v25  ;;  %v3606_v60 = vadd.f32 %v8624_v34, %v3557_v23  ;;  %v3876_v8 = vpop.permute.xlu1 %3875 }
 0x32a   :  { %3707 = vmatpush1.msra.mxu0 %v3656_v26  ;;  %v3658_v37 = vsel %vm3626_vm8, %v3610_v44, %v3642_v63  ;;  %v3605_v38 = vadd.f32 %v8615_v62, %v3556_v16  ;;  %v3607_v20 = vadd.f32 %v8618_v32, %v3558_v22  ;;  %v3552_v3 = vmul.f32 %v8771_v21, %v8510_v52 }
 0x32b   :  { %3778 = vmatpush1.msra.mxu1 %v3658_v37  ;;  %vm3620_vm9 = vcmp.gt.f32.partialorder %v3604_v24, 0.0  ;;  %v3636_v28 = vmul.f32 0.01, %v3604_v24  ;;  %vm3622_vm10 = vcmp.gt.f32.partialorder %v3606_v60, 0.0  ;;  %v3638_v58 = vmul.f32 0.01, %v3606_v60 }
 0x32c   :  { %vm3621_vm11 = vcmp.gt.f32.partialorder %v3605_v38, 0.0  ;;  %v3637_v33 = vmul.f32 0.01, %v3605_v38  ;;  %vm3623_vm12 = vcmp.gt.f32.partialorder %v3607_v20, 0.0  ;;  %v3639_v34 = vmul.f32 0.01, %v3607_v20 }
 0x32d   :  { %v3652_v25 = vsel %vm3620_vm9, %v3604_v24, %v3636_v28  ;;  %v3654_v44 = vsel %vm3622_vm10, %v3606_v60, %v3638_v58  ;;  %v3601_v62 = vadd.f32 %v8642_v51, %v3552_v3  ;;  %v3554_v32 = vmul.f32 %v8774_v2, %v8510_v52  ;;  %v3871_v3 = vpop.permute.xlu1 %3870 }
 0x32e   :  { %v3653_v23 = vsel %vm3621_vm11, %v3605_v38, %v3637_v33  ;;  %v3655_v5 = vsel %vm3623_vm12, %v3607_v20, %v3639_v34  ;;  %v3551_v6 = vmul.f32 %v8752_v48, %v8510_v52  ;;  %v3553_v50 = vmul.f32 %v8755_v61, %v8510_v52 }
 0x32f   :  { %3708 = vmatprep.subr.mxu0 %v3653_v23  ;;  %3779 = vmatprep.subr.mxu1 %v3655_v5  ;;  %vm3617_vm13 = vcmp.gt.f32.partialorder %v3601_v62, 0.0  ;;  %v3633_v9 = vmul.f32 0.01, %v3601_v62  ;;  %v3603_v4 = vadd.f32 %v8645_v54, %v3554_v32  ;;  %v3901_v51 = vmul.f32 %v8524_v35, %v8771_v21 }
 0x330   :  { %3709 = vmatpush1.msra.mxu0 %v3652_v25  ;;  %3780 = vmatpush1.msra.mxu1 %v3654_v44  ;;  %v3600_v14 = vadd.f32 %v8647_v55, %v3551_v6  ;;  %v3602_v57 = vadd.f32 %v8649_v56, %v3553_v50  ;;  %v3903_v18 = vmul.f32 %v8524_v35, %v8774_v2  ;;  %v6083_v55 = vld [vmem:[%s9543_s9 + $0x1] sm:$0x1]  ;;  %v9584_v34 = vmov 0.0  }
 0x331   :  { %v3649_v52 = vsel %vm3617_vm13, %v3601_v62, %v3633_v9  ;;  %vm3619_vm14 = vcmp.gt.f32.partialorder %v3603_v4, 0.0  ;;  %v3635_v11 = vmul.f32 0.01, %v3603_v4  ;;  %v8831_v36 = vadd.f32 %v8664_v47, %v3901_v51 }
 0x332   :  { %3710 = vmatprep.subr.mxu0 %v3649_v52  ;;  %vm3616_vm15 = vcmp.gt.f32.partialorder %v3600_v14, 0.0  ;;  %v3632_v54 = vmul.f32 0.01, %v3600_v14  ;;  %vm3618_vm1 = vcmp.gt.f32.partialorder %v3602_v57, 0.0  ;;  %v3634_v59 = vmul.f32 0.01, %v3602_v57 }
 0x333   :  { %v3651_v63 = vsel %vm3619_vm14, %v3603_v4, %v3635_v11  ;;  %v8837_v56 = vadd.f32 %v8666_v42, %v3903_v18  ;;  %v3900_v16 = vmul.f32 %v8524_v35, %v8752_v48  ;;  %v3902_v47 = vmul.f32 %v8524_v35, %v8755_v61  ;;  %v4321_v4 = vld [vmem:[%s9542_s5 + $0x78] sm:$0xff] }
 0x334   :  { %3781 = vmatprep.subr.mxu1 %v3651_v63  ;;  %v3648_v22 = vsel %vm3616_vm15, %v3600_v14, %v3632_v54  ;;  %v3650_v26 = vsel %vm3618_vm1, %v3602_v57, %v3634_v59  ;;  %v3897_v24 = vmul.f32 %v8594_v43, %v8771_v21  ;;  %v3899_v60 = vmul.f32 %v8594_v43, %v8774_v2  ;;  %v4314_v59 = vld [vmem:[%s9542_s5 + $0x40] sm:$0xff] }
 0x335   :  { %3711 = vmatpush1.msra.mxu0 %v3648_v22  ;;  %3782 = vmatpush1.msra.mxu1 %v3650_v26  ;;  %v8848_v42 = vadd.f32 %v8686_v40, %v3900_v16  ;;  %v8851_v37 = vadd.f32 %v8689_v41, %v3902_v47  ;;  %v3896_v35 = vmul.f32 %v8594_v43, %v8752_v48  ;;  %v4317_v22 = vld [vmem:[%s9542_s5 + $0x58] sm:$0xff]  ;;  %v4316_v26 = vld [vmem:[%s9542_s5 + $0x50] sm:$0xff] }
 0x336   :  { %6085 = vmatmul.mubr.msk.f32.vlgmr.msra.gmra.mxu0 %vm3323_vm0, %v6083_v55  ;;  %6086 = vmatmul.mubr.msk.f32.vlgmr.msra.gmra.mxu1 %vm3323_vm0, %v6083_v55  ;;  %v8858_v38 = vadd.f32 %v8692_v15, %v3897_v24  ;;  %v8861_v20 = vadd.f32 %v8694_v7, %v3899_v60  ;;  %v3898_v40 = vmul.f32 %v8594_v43, %v8755_v61  ;;  %v9585_v55 = vld [vmem:[#allocation3_spill] sm:$0xff] }
 0x337   :  { %v8866_v41 = vadd.f32 %v8721_v1, %v3896_v35  ;;  %v3893_v28 = vmul.f32 %v3876_v8, %v8771_v21  ;;  %v3895_v58 = vmul.f32 %v3876_v8, %v8774_v2  ;;  %v3892_v33 = vmul.f32 %v3876_v8, %v8752_v48  ;;  %4154 = vmatprep.mubr.f32.mxu0 %v9584_v34 }
 0x338   :  { %v8873_v15 = vadd.f32 %v8723_v0, %v3898_v40  ;;  %v3894_v7 = vmul.f32 %v3876_v8, %v8755_v61  ;;  %v3889_v25 = vmul.f32 %v3871_v3, %v8771_v21  ;;  %v3891_v43 = vmul.f32 %v3871_v3, %v8774_v2  ;;  %4225 = vmatprep.mubr.f32.mxu1 %v9584_v34  ;;  %v4315_v8 = vld [vmem:[%s9542_s5 + $0x48] sm:$0xff] }
 0x339   :  { %v8880_v1 = vadd.f32 %v8740_v46, %v3893_v28  ;;  %v8883_v44 = vadd.f32 %v8743_v10, %v3895_v58  ;;  %v8886_v62 = vadd.f32 %v8746_v12, %v3892_v33  ;;  %v3888_v0 = vmul.f32 %v3871_v3, %v8752_v48  ;;  %v8905_v12 = vpop.permute.xlu0 %3921 }
 0x33a   :  { %v8890_v32 = vadd.f32 %v8749_v49, %v3894_v7  ;;  %v8893_v21 = vadd.f32 %v8760_v13, %v3889_v25  ;;  %v8896_v2 = vadd.f32 %v8763_v27, %v3891_v43  ;;  %v3890_v46 = vmul.f32 %v3871_v3, %v8755_v61  ;;  %v8909_v49 = vpop.permute.xlu1 %3911  ;;  %v4319_v61 = vld [vmem:[%s9542_s5 + $0x68] sm:$0xff] }
 0x33b   :  { %v8900_v23 = vadd.f32 %v8765_v30, %v3888_v0  ;;  %v4318_v30 = vld [vmem:[%s9542_s5 + $0x60] sm:$0xff]  ;;  %v3676_v16 = vrot.slane %v9585_v55, %v7284_v29 }
 0x33c   :  { %v8903_v10 = vadd.f32 %v8768_v39, %v3890_v46  ;;  %v4320_v39 = vld [vmem:[%s9542_s5 + $0x70] sm:$0xff] }
 0x33d   :  { %v8907_v48 = vpop.permute.xlu0 %3916 }
 0x33e   :  { %v4283_v9 = vpop.permute.xlu1 %4282 }
 0x33f   :  { %v4299_v18 = vmul.f32 %v4283_v9, %v8502_v17  ;;  %v4298_v52 = vmul.f32 %v4283_v9, %v8498_v31  ;;  %v4300_v63 = vmul.f32 %v4283_v9, %v8500_v45  ;;  %v4301_v47 = vmul.f32 %v4283_v9, %v8504_v19 }
 0x341   :  { %v4288_v5 = vpop.permute.xlu0 %4287  ;;  %v8951_v28 = vadd.f32 %v4315_v8, %v4299_v18  ;;  %v8953_v58 = vadd.f32 %v4314_v59, %v4298_v52  ;;  %v8955_v43 = vadd.f32 %v4316_v26, %v4300_v63 }
 0x342   :  { %v4303_v13 = vmul.f32 %v4288_v5, %v8502_v17  ;;  %v4302_v27 = vmul.f32 %v4288_v5, %v8498_v31  ;;  %v4304_v6 = vmul.f32 %v4288_v5, %v8500_v45  ;;  %v4305_v50 = vmul.f32 %v4288_v5, %v8504_v19  ;;  %v8979_v8 = vpop.permute.xlu1 %4272 }
 0x343   :  { %v8977_v18 = vmul.f32 0.01, %v8951_v28  ;;  %vm4347_vm14 = vcmp.gt.f32.partialorder %v8951_v28, 0.0 }
 0x344   :  { %v4335_v51 = vadd.f32 %v4319_v61, %v4303_v13  ;;  %v4334_v14 = vadd.f32 %v4318_v30, %v4302_v27  ;;  %v4336_v57 = vadd.f32 %v4320_v39, %v4304_v6  ;;  %v4337_v54 = vadd.f32 %v4321_v4, %v4305_v50  ;;  %v4311_v6 = vld [vmem:[%s9542_s5 + $0x28] sm:$0xff]  ;;  %v4313_v61 = vld [vmem:[%s9542_s5 + $0x38] sm:$0xff] }
 0x345   :  { %v4278_v11 = vpop.permute.xlu0 %4277  ;;  %v8959_v27 = vadd.f32 %v4317_v22, %v4301_v47 }
 0x346   :  { %v8946_v24 = vmul.f32 %v4278_v11, %v8498_v31  ;;  %v8949_v60 = vmul.f32 %v4278_v11, %v8500_v45  ;;  %v4367_v35 = vmul.f32 0.01, %v4335_v51  ;;  %v4366_v40 = vmul.f32 0.01, %v4334_v14 }
 0x347   :  { %v4368_v3 = vmul.f32 0.01, %v4336_v57  ;;  %vm4351_vm2 = vcmp.gt.f32.partialorder %v4335_v51, 0.0  ;;  %vm4350_vm3 = vcmp.gt.f32.partialorder %v4334_v14, 0.0  ;;  %vm4352_vm4 = vcmp.gt.f32.partialorder %v4336_v57, 0.0 }
 0x348   :  { %v4369_v25 = vmul.f32 0.01, %v4337_v54  ;;  %v4295_v0 = vmul.f32 %v4278_v11, %v8502_v17  ;;  %v4297_v46 = vmul.f32 %v4278_v11, %v8504_v19  ;;  %vm4353_vm5 = vcmp.gt.f32.partialorder %v4337_v54, 0.0 }
 0x349   :  { %v8968_v50 = vsel %vm4351_vm2, %v4335_v51, %v4367_v35  ;;  %v8971_v9 = vsel %vm4350_vm3, %v4334_v14, %v4366_v40  ;;  %v8974_v4 = vsel %vm4352_vm4, %v4336_v57, %v4368_v3  ;;  %v8995_v57 = vmul.f32 %v8979_v8, %v8502_v17 }
 0x34a   :  { %v8987_v63 = vsel %vm4353_vm5, %v4337_v54, %v4369_v25  ;;  %v8989_v14 = vadd.f32 %v4311_v6, %v4295_v0  ;;  %v8991_v55 = vadd.f32 %v4313_v61, %v4297_v46  ;;  %vm4349_vm15 = vcmp.gt.f32.partialorder %v8959_v27, 0.0 }
 0x34b   :  { %vm4346_vm3 = vcmp.gt.f32.partialorder %v8953_v58, 0.0 }
 0x3f6   :  { %v3746_v33 = vpop.f32.mrf.mxu0  ;;  %v3817_v7 = vpop.f32.mrf.mxu1 }
 0x3f7   :  { %v3747_v5 = vadd.f32 %v3746_v33, %v3676_v16  ;;  %v3818_v13 = vadd.f32 %v3817_v7, %v3676_v16 }
 0x3f8   :  { %v3748_v30 = vpop.f32.mrf.mxu0  ;;  %v3819_v39 = vpop.f32.mrf.mxu1 }
 0x3f9   :  { %v8982_v52 = vrot.slane %v3747_v5, %v7284_v29  ;;  %v8985_v11 = vrot.slane %v3818_v13, %v7284_v29  ;;  %v3749_v59 = vadd.f32 %v3748_v30, %v3676_v16  ;;  %v3820_v51 = vadd.f32 %v3819_v39, %v3676_v16 }
 0x3fb   :  { %v3936_v47 = vrot.slane %v3749_v59, %v7284_v29  ;;  %v8999_v22 = vrot.slane %v3820_v51, %v7284_v29  ;;  %v3957_v26 = vmul.f32 %v8982_v52, %v8814_v53  ;;  %v3959_v54 = vmul.f32 %v8985_v11, %v8814_v53 }
 0x3fc   :  { %v3953_v16 = vmul.f32 %v8982_v52, %v8905_v12  ;;  %v3955_v35 = vmul.f32 %v8985_v11, %v8905_v12  ;;  %v3949_v40 = vmul.f32 %v8982_v52, %v8907_v48  ;;  %v3951_v3 = vmul.f32 %v8985_v11, %v8907_v48 }
 0x3fd   :  { %v3958_v33 = vmul.f32 %v3936_v47, %v8814_v53  ;;  %v3960_v7 = vmul.f32 %v8999_v22, %v8814_v53  ;;  %v4022_v25 = vadd.f32 %v8848_v42, %v3957_v26  ;;  %v4024_v0 = vadd.f32 %v8851_v37, %v3959_v54 }
 0x3fe   :  { %v3954_v46 = vmul.f32 %v3936_v47, %v8905_v12  ;;  %v3956_v5 = vmul.f32 %v8999_v22, %v8905_v12  ;;  %v4018_v13 = vadd.f32 %v8866_v41, %v3953_v16  ;;  %v4020_v6 = vadd.f32 %v8873_v15, %v3955_v35 }
 0x3ff   :  { %v4023_v61 = vadd.f32 %v8831_v36, %v3958_v33  ;;  %v4025_v30 = vadd.f32 %v8837_v56, %v3960_v7  ;;  %vm4038_vm6 = vcmp.gt.f32.partialorder %v4022_v25, 0.0  ;;  %v4054_v39 = vmul.f32 0.01, %v4022_v25 }
 0x400   :  { %vm4040_vm7 = vcmp.gt.f32.partialorder %v4024_v0, 0.0  ;;  %v4056_v53 = vmul.f32 0.01, %v4024_v0  ;;  %v4019_v42 = vadd.f32 %v8858_v38, %v3954_v46  ;;  %v4021_v37 = vadd.f32 %v8861_v20, %v3956_v5 }
 0x401   :  { %vm4039_vm8 = vcmp.gt.f32.partialorder %v4023_v61, 0.0  ;;  %v4055_v59 = vmul.f32 0.01, %v4023_v61  ;;  %vm4041_vm9 = vcmp.gt.f32.partialorder %v4025_v30, 0.0  ;;  %v4057_v12 = vmul.f32 0.01, %v4025_v30 }
 0x402   :  { %v4070_v51 = vsel %vm4038_vm6, %v4022_v25, %v4054_v39  ;;  %v4072_v41 = vsel %vm4040_vm7, %v4024_v0, %v4056_v53  ;;  %vm4035_vm10 = vcmp.gt.f32.partialorder %v4019_v42, 0.0  ;;  %v4051_v15 = vmul.f32 0.01, %v4019_v42 }
 0x403   :  { %v4071_v26 = vsel %vm4039_vm8, %v4023_v61, %v4055_v59  ;;  %v4073_v36 = vsel %vm4041_vm9, %v4025_v30, %v4057_v12  ;;  %vm4037_vm11 = vcmp.gt.f32.partialorder %v4021_v37, 0.0  ;;  %v4053_v56 = vmul.f32 0.01, %v4021_v37 }
 0x404   :  { %4114 = vmatprep.subr.mxu0 %v4071_v26  ;;  %4185 = vmatprep.subr.mxu1 %v4073_v36  ;;  %v4067_v54 = vsel %vm4035_vm10, %v4019_v42, %v4051_v15  ;;  %vm4034_vm12 = vcmp.gt.f32.partialorder %v4018_v13, 0.0  ;;  %v4050_v16 = vmul.f32 0.01, %v4018_v13  ;;  %vm4036_vm13 = vcmp.gt.f32.partialorder %v4020_v6, 0.0  ;;  %v4306_v15 = vld [vmem:[%s9542_s5] sm:$0xff] }
 0x405   :  { %4115 = vmatpush1.msra.mxu0 %v4070_v51  ;;  %4186 = vmatpush1.msra.mxu1 %v4072_v41  ;;  %v4069_v38 = vsel %vm4037_vm11, %v4021_v37, %v4053_v56  ;;  %v4052_v20 = vmul.f32 0.01, %v4020_v6  ;;  %v3950_v35 = vmul.f32 %v3936_v47, %v8907_v48  ;;  %v3952_v33 = vmul.f32 %v8999_v22, %v8907_v48 }
 0x406   :  { %4116 = vmatprep.subr.mxu0 %v4067_v54  ;;  %4187 = vmatprep.subr.mxu1 %v4069_v38  ;;  %v4066_v7 = vsel %vm4034_vm12, %v4018_v13, %v4050_v16  ;;  %v4014_v25 = vadd.f32 %v8886_v62, %v3949_v40  ;;  %v4016_v0 = vadd.f32 %v8890_v32, %v3951_v3  ;;  %v9034_v46 = vmul.f32 0.01, %v8959_v27  ;;  %v6115_v16 = vld [vmem:[%s9543_s9 + $0x2] sm:$0x1] }
 0x407   :  { %4117 = vmatpush1.msra.mxu0 %v4066_v7  ;;  %v4068_v5 = vsel %vm4036_vm13, %v4020_v6, %v4052_v20  ;;  %v4015_v61 = vadd.f32 %v8880_v1, %v3950_v35  ;;  %v4017_v30 = vadd.f32 %v8883_v44, %v3952_v33  ;;  %v3946_v48 = vmul.f32 %v3936_v47, %v8909_v49 }
 0x408   :  { %4188 = vmatpush1.msra.mxu1 %v4068_v5  ;;  %vm4030_vm1 = vcmp.gt.f32.partialorder %v4014_v25, 0.0  ;;  %v4046_v13 = vmul.f32 0.01, %v4014_v25  ;;  %vm4032_vm2 = vcmp.gt.f32.partialorder %v4016_v0, 0.0  ;;  %v4048_v62 = vmul.f32 0.01, %v4016_v0 }
 0x409   :  { %vm4031_vm4 = vcmp.gt.f32.partialorder %v4015_v61, 0.0  ;;  %v4047_v32 = vmul.f32 0.01, %v4015_v61  ;;  %vm4033_vm5 = vcmp.gt.f32.partialorder %v4017_v30, 0.0  ;;  %v4049_v40 = vmul.f32 0.01, %v4017_v30 }
 0x40a   :  { %v4062_v3 = vsel %vm4030_vm1, %v4014_v25, %v4046_v13  ;;  %v4011_v1 = vadd.f32 %v8893_v21, %v3946_v48  ;;  %v3948_v44 = vmul.f32 %v8999_v22, %v8909_v49  ;;  %v4293_v47 = vmul.f32 %v8979_v8, %v8504_v19 }
 0x40b   :  { %v4063_v6 = vsel %vm4031_vm4, %v4015_v61, %v4047_v32  ;;  %v4065_v39 = vsel %vm4033_vm5, %v4017_v30, %v4049_v40  ;;  %v3945_v53 = vmul.f32 %v8982_v52, %v8909_v49  ;;  %v3947_v42 = vmul.f32 %v8985_v11, %v8909_v49  ;;  %v4310_v49 = vld [vmem:[%s9542_s5 + $0x20] sm:$0xff]  ;;  %v4312_v52 = vld [vmem:[%s9542_s5 + $0x30] sm:$0xff] }
 0x40c   :  { %4118 = vmatprep.subr.mxu0 %v4063_v6  ;;  %4189 = vmatprep.subr.mxu1 %v4065_v39  ;;  %v4064_v37 = vsel %vm4032_vm2, %v4016_v0, %v4048_v62  ;;  %vm4027_vm6 = vcmp.gt.f32.partialorder %v4011_v1, 0.0  ;;  %v4043_v21 = vmul.f32 0.01, %v4011_v1  ;;  %v4013_v59 = vadd.f32 %v8896_v2, %v3948_v44 }
 0x40d   :  { %4119 = vmatpush1.msra.mxu0 %v4062_v3  ;;  %4190 = vmatpush1.msra.mxu1 %v4064_v37  ;;  %v4010_v22 = vadd.f32 %v8900_v23, %v3945_v53  ;;  %v4012_v12 = vadd.f32 %v8903_v10, %v3947_v42  ;;  %v4362_v51 = vmul.f32 0.01, %v8953_v58  ;;  %v4290_v11 = vmul.f32 %v8979_v8, %v8498_v31  ;;  %v4307_v23 = vld [vmem:[%s9542_s5 + $0x8] sm:$0xff]  ;;  %v4309_v10 = vld [vmem:[%s9542_s5 + $0x18] sm:$0xff]  ;;  %v4391_v3 = vpop.permute.xlu0 %4390  ;;  %v4564_v42 = vpop.permute.xlu1 %4563 }
 0x40e   :  { %v4059_v2 = vsel %vm4027_vm6, %v4011_v1, %v4043_v21  ;;  %vm4029_vm7 = vcmp.gt.f32.partialorder %v4013_v59, 0.0  ;;  %v4045_v41 = vmul.f32 0.01, %v4013_v59  ;;  %v4292_v26 = vmul.f32 %v8979_v8, %v8500_v45  ;;  %v4308_v8 = vld [vmem:[%s9542_s5 + $0x10] sm:$0xff] }
 0x40f   :  { %4120 = vmatprep.subr.mxu0 %v4059_v2  ;;  %vm4026_vm8 = vcmp.gt.f32.partialorder %v4010_v22, 0.0  ;;  %v4042_v36 = vmul.f32 0.01, %v4010_v22  ;;  %vm4028_vm9 = vcmp.gt.f32.partialorder %v4012_v12, 0.0  ;;  %v4044_v56 = vmul.f32 0.01, %v4012_v12 }
 0x410   :  { %v4061_v54 = vsel %vm4029_vm7, %v4013_v59, %v4045_v41  ;;  %v4379_v38 = vsel %vm4347_vm14, %v8951_v28, %v8977_v18  ;;  %v4326_v20 = vadd.f32 %v4310_v49, %v8946_v24  ;;  %v4328_v35 = vadd.f32 %v4312_v52, %v8949_v60 }
 0x411   :  { %4191 = vmatprep.subr.mxu1 %v4061_v54  ;;  %v4058_v33 = vsel %vm4026_vm8, %v4010_v22, %v4042_v36  ;;  %v4060_v7 = vsel %vm4028_vm9, %v4012_v12, %v4044_v56  ;;  %v4323_v25 = vadd.f32 %v4307_v23, %v8995_v57  ;;  %v4325_v0 = vadd.f32 %v4309_v10, %v4293_v47  ;;  %v4559_v1 = vpop.permute.xlu0 %4558  ;;  %v9136_v21 = vpop.permute.xlu1 %4603 }
 0x412   :  { %4121 = vmatpush1.msra.mxu0 %v4058_v33  ;;  %4192 = vmatpush1.msra.mxu1 %v4060_v7  ;;  %v4381_v28 = vsel %vm4349_vm15, %v8959_v27, %v9034_v46  ;;  %vm4348_vm10 = vcmp.gt.f32.partialorder %v8955_v43, 0.0  ;;  %v4364_v24 = vmul.f32 0.01, %v8955_v43  ;;  %v4322_v60 = vadd.f32 %v4306_v15, %v4290_v11 }
 0x413   :  { %6117 = vmatmul.mubr.msk.f32.vlgmr.msra.gmra.mxu0 %vm3323_vm0, %v6115_v16  ;;  %6118 = vmatmul.mubr.msk.f32.vlgmr.msra.gmra.mxu1 %vm3323_vm0, %v6115_v16  ;;  %v4378_v18 = vsel %vm4346_vm3, %v8953_v58, %v4362_v51  ;;  %v4359_v57 = vmul.f32 0.01, %v8989_v14  ;;  %v4361_v5 = vmul.f32 0.01, %v8991_v55  ;;  %v4324_v61 = vadd.f32 %v4308_v8, %v4292_v26 }
 0x414   :  { %4424 = vmatprep.subr.mxu0 %v8968_v50  ;;  %4495 = vmatprep.subr.mxu1 %v8987_v63  ;;  %vm4343_vm11 = vcmp.gt.f32.partialorder %v8989_v14, 0.0  ;;  %vm4345_vm12 = vcmp.gt.f32.partialorder %v8991_v55, 0.0  ;;  %v4358_v27 = vmul.f32 0.01, %v4326_v20  ;;  %v4360_v46 = vmul.f32 0.01, %v4328_v35 }
 0x415   :  { %4425 = vmatpush1.msra.mxu0 %v8971_v9  ;;  %4496 = vmatpush1.msra.mxu1 %v8974_v4  ;;  %vm4342_vm13 = vcmp.gt.f32.partialorder %v4326_v20, 0.0  ;;  %vm4344_vm14 = vcmp.gt.f32.partialorder %v4328_v35, 0.0  ;;  %v4355_v58 = vmul.f32 0.01, %v4323_v25  ;;  %v4357_v30 = vmul.f32 0.01, %v4325_v0  ;;  %v4554_v44 = vpop.permute.xlu0 %4553  ;;  %v9140_v22 = vpop.permute.xlu1 %4598 }
 0x416   :  { %4426 = vmatprep.subr.mxu0 %v4379_v38  ;;  %4497 = vmatprep.subr.mxu1 %v4381_v28  ;;  %v4380_v50 = vsel %vm4348_vm10, %v8955_v43, %v4364_v24  ;;  %vm4339_vm15 = vcmp.gt.f32.partialorder %v4323_v25, 0.0  ;;  %vm4341_vm1 = vcmp.gt.f32.partialorder %v4325_v0, 0.0  ;;  %v4354_v63 = vmul.f32 0.01, %v4322_v60 }
 0x417   :  { %4427 = vmatpush1.msra.mxu0 %v4378_v18  ;;  %4498 = vmatpush1.msra.mxu1 %v4380_v50  ;;  %v4375_v9 = vsel %vm4343_vm11, %v8989_v14, %v4359_v57  ;;  %v4377_v4 = vsel %vm4345_vm12, %v8991_v55, %v4361_v5  ;;  %vm4338_vm2 = vcmp.gt.f32.partialorder %v4322_v60, 0.0  ;;  %v4356_v48 = vmul.f32 0.01, %v4324_v61  ;;  %v4386_v55 = vld [vmem:[%s9543_s9] sm:$0x1]  ;;  %v6788_v18 = vld [vmem:[%s9542_s5 + $0xf8] sm:$0xff] }
 0x418   :  { %4428 = vmatprep.subr.mxu0 %v4375_v9  ;;  %4499 = vmatprep.subr.mxu1 %v4377_v4  ;;  %v4374_v13 = vsel %vm4342_vm13, %v4326_v20, %v4358_v27  ;;  %v4376_v43 = vsel %vm4344_vm14, %v4328_v35, %v4360_v46  ;;  %vm4340_vm3 = vcmp.gt.f32.partialorder %v4324_v61, 0.0  ;;  %v4371_v62 = vsel %vm4339_vm15, %v4323_v25, %v4355_v58  ;;  %v9586_v20 = vld [vmem:[#allocation2_spill] sm:$0xff]  ;;  %v6787_v25 = vld [vmem:[%s9542_s5 + $0xe8] sm:$0xff]  ;;  %v6790_v27 = vld [vmem:[%s9542_s5 + $0xf0] sm:$0xff] }
 0x419   :  { %4429 = vmatpush1.msra.mxu0 %v4374_v13  ;;  %4500 = vmatpush1.msra.mxu1 %v4376_v43  ;;  %v4373_v32 = vsel %vm4341_vm1, %v4325_v0, %v4357_v30  ;;  %v4370_v14 = vsel %vm4338_vm2, %v4322_v60, %v4354_v63  ;;  %v4372_v40 = vsel %vm4340_vm3, %v4324_v61, %v4356_v48  ;;  %v4549_v47 = vpop.permute.xlu0 %4548  ;;  %v9144_v51 = vpop.permute.xlu1 %4593  ;;  %v6806_v52 = vmov 1966171168   ;;  %v6789_v5 = vld [vmem:[%s9542_s5 + $0xe0] sm:$0xff]  ;;  %v6791_v50 = vld [vmem:[%s9542_s5 + $0xc8] sm:$0xff]  ;;  %v6792_v9 = vld [vmem:[%s9542_s5 + $0xd8] sm:$0xff] }
 0x41a   :  { %4430 = vmatprep.subr.mxu0 %v4371_v62  ;;  %4501 = vmatprep.subr.mxu1 %v4373_v32  ;;  %v4239_v11 = vunpack.c.l.s4 %v6806_v52  ;;  %v4579_v10 = vmul.f32 %v4564_v42, %v8502_v17  ;;  %v4581_v15 = vmul.f32 %v4564_v42, %v8504_v19  ;;  %v4578_v26 = vmul.f32 %v4564_v42, %v8498_v31  ;;  %v6793_v48 = vld [vmem:[%s9542_s5 + $0xc0] sm:$0xff]  ;;  %v6794_v43 = vld [vmem:[%s9542_s5 + $0xd0] sm:$0xff] }
 0x41b   :  { %4431 = vmatpush1.msra.mxu0 %v4370_v14  ;;  %4464 = vmatprep.mubr.f32.mxu0 %v9584_v34  ;;  %v4580_v36 = vmul.f32 %v4564_v42, %v8500_v45  ;;  %v4575_v56 = vmul.f32 %v4559_v1, %v8502_v17  ;;  %v4577_v54 = vmul.f32 %v4559_v1, %v8504_v19  ;;  %v9588_v42 = vld [vmem:[#allocation4_spill] sm:$0xff] }
 0x41c   :  { %4502 = vmatpush1.msra.mxu1 %v4372_v40  ;;  %4535 = vmatprep.mubr.f32.mxu1 %v9584_v34  ;;  %v4240_v2 = vunpack.c.0.s8 %v4239_v11  ;;  %v4574_v16 = vmul.f32 %v4559_v1, %v8498_v31  ;;  %v4576_v38 = vmul.f32 %v4559_v1, %v8500_v45  ;;  %v9162_v8 = vrot.slane %v4391_v3, %v7284_v29  ;;  %v9589_v11 = vld [vmem:[#allocation5_spill] sm:$0xff] }
 0x41d   :  { %6119 = vmatmul.mubr.msk.f32.vlgmr.msra.gmra.mxu0 %vm3323_vm0, %v4386_v55  ;;  %6120 = vmatmul.mubr.msk.f32.vlgmr.msra.gmra.mxu1 %vm3323_vm0, %v4386_v55  ;;  %v9128_v6 = vpop.permute.xlu0 %4588  ;;  %v9148_v41 = vpop.permute.xlu1 %4738  ;;  %v4571_v7 = vmul.f32 %v4554_v44, %v8502_v17  ;;  %v9169_v0 = vadd.f32 %v6787_v25, %v4579_v10  ;;  %v4573_v28 = vmul.f32 %v4554_v44, %v8504_v19  ;;  %v6795_v55 = vld [vmem:[%s9542_s5 + $0xa8] sm:$0xff] }
 0x41e   :  { %4812 = vmatprep.mubr.f32.mxu0 %v9584_v34  ;;  %4883 = vmatprep.mubr.f32.mxu1 %v9584_v34  ;;  %v9159_v35 = vsub.s32 %v4240_v2, %v9586_v20  ;;  %v4570_v24 = vmul.f32 %v4554_v44, %v8498_v31  ;;  %v4572_v60 = vmul.f32 %v4554_v44, %v8500_v45 }
 0x41f   :  { %v9177_v57 = vadd.f32 %v6788_v18, %v4581_v15  ;;  %v9182_v61 = vadd.f32 %v6789_v5, %v4578_v26  ;;  %v9187_v46 = vadd.f32 %v6790_v27, %v4580_v36  ;;  %v4567_v58 = vmul.f32 %v4549_v47, %v8502_v17  ;;  %v6796_v18 = vld [vmem:[%s9542_s5 + $0x80] sm:$0xff]  ;;  %v6797_v27 = vld [vmem:[%s9542_s5 + $0x90] sm:$0xff] }
 0x420   :  { %9587 = vst [vmem:[#allocation3_spill] sm:$0xff] %v9159_v35  ;;  %v9193_v63 = vadd.f32 %v6791_v50, %v4575_v56  ;;  %v9198_v4 = vadd.f32 %v6792_v9, %v4577_v54  ;;  %v9203_v13 = vadd.f32 %v6793_v48, %v4574_v16  ;;  %v9208_v62 = vadd.f32 %v6794_v43, %v4576_v38  ;;  %v9591_v56 = vld [vmem:[#allocation7_spill] sm:$0xff] }
 0x421   :  { %v9130_v39 = vpop.permute.xlu0 %4911  ;;  %v4907_v30 = vpop.permute.xlu1 %4906  ;;  %v9213_v40 = vadd.f32 %v6795_v55, %v4571_v7  ;;  %v4569_v3 = vmul.f32 %v4549_v47, %v8504_v19  ;;  %v4566_v1 = vmul.f32 %v4549_v47, %v8498_v31  ;;  %v4568_v44 = vmul.f32 %v4549_v47, %v8500_v45  ;;  %v6799_v55 = vld [vmem:[%s9542_s5 + $0x178] sm:$0xff] }
 0x422   :  { %v9219_v52 = vadd.f32 %v9588_v42, %v4573_v28  ;;  %v9222_v2 = vadd.f32 %v9589_v11, %v4570_v24  ;;  %v4927_v15 = vmul.f32 %v9130_v39, %v8502_v17  ;;  %v9230_v54 = vadd.f32 %v9591_v56, %v4567_v58  ;;  %v9592_v24 = vld [vmem:[#allocation8_spill] sm:$0xff]  ;;  %v9594_v42 = vld [vmem:[#allocation10_spill] sm:$0xff]  ;;  %v9595_v56 = vld [vmem:[#allocation11_spill] sm:$0xff] }
 0x423   :  { %v4929_v47 = vmul.f32 %v9130_v39, %v8504_v19  ;;  %v4926_v16 = vmul.f32 %v9130_v39, %v8498_v31  ;;  %v4928_v38 = vmul.f32 %v9130_v39, %v8500_v45  ;;  %v9244_v5 = vadd.f32 %v6796_v18, %v4566_v1  ;;  %v9593_v1 = vld [vmem:[#allocation9_spill] sm:$0xff] }
 0x424   :  { %v9249_v58 = vadd.f32 %v6797_v27, %v4568_v44  ;;  %v4923_v39 = vmul.f32 %v4907_v30, %v8502_v17  ;;  %v4922_v48 = vmul.f32 %v4907_v30, %v8498_v31  ;;  %v9597_v27 = vlaneseq }
 0x425   :  { %v9132_v53 = vpop.permute.xlu0 %4951  ;;  %v4902_v43 = vpop.permute.xlu1 %4901  ;;  %v9265_v44 = vadd.f32 %v9593_v1, %v4926_v16  ;;  %v9268_v11 = vadd.f32 %v9594_v42, %v4928_v38  ;;  %v6800_v38 = vld [vmem:[%s9542_s5 + $0x158] sm:$0xff]  ;;  %v6801_v1 = vld [vmem:[%s9542_s5 + $0x150] sm:$0xff] }
 0x426   :  { %v4920_v16 = vmul.f32 %v4902_v43, %v8500_v45  ;;  %vm9291_vm4 = vcmp.lt.s32.totalorder %v9597_v27, 512  ;;  %v9604_v27 = vld [vmem:[#allocation16_spill] sm:$0xff] }
 0x429   :  { %v9134_v37 = vpop.permute.xlu0 %4946 }
 0x42d   :  { %v9138_v59 = vpop.permute.xlu0 %4896 }
 0x42e   :  { %v4915_v18 = vmul.f32 %v9138_v59, %v8502_v17 }
 0x431   :  { %v9142_v12 = vpop.permute.xlu0 %4986 }
 0x435   :  { %v9146_v49 = vpop.permute.xlu0 %4981 }
 0x439   :  { %v4081_v23 = vpop.permute.xlu0 %4080 }
 0x43a   :  { %v4086_v33 = vrot.slane %v4081_v23, %v7284_v29  ;;  %v9590_v23 = vld [vmem:[#allocation6_spill] sm:$0xff] }
 0x43b   :  { %v9225_v10 = vadd.f32 %v9590_v23, %v4572_v60  ;;  %v9239_v60 = vadd.f32 %v9592_v24, %v4569_v3  ;;  %v9262_v3 = vadd.f32 %v6799_v55, %v4929_v47  ;;  %v4921_v47 = vmul.f32 %v4902_v43, %v8504_v19  ;;  %v9596_v24 = vld [vmem:[#allocation12_spill] sm:$0xff] }
 0x4d3   :  { %v4156_v32 = vpop.f32.mrf.mxu0  ;;  %v4227_v14 = vpop.f32.mrf.mxu1 }
 0x4d4   :  { %v4157_v20 = vadd.f32 %v4156_v32, %v4086_v33  ;;  %v4228_v7 = vadd.f32 %v4227_v14, %v4086_v33  ;;  %v6798_v32 = vld [vmem:[%s9542_s5 + $0x168] sm:$0xff] }
 0x4d5   :  { %v4158_v26 = vpop.f32.mrf.mxu0  ;;  %v4229_v36 = vpop.f32.mrf.mxu1  ;;  %v9257_v14 = vadd.f32 %v6798_v32, %v4927_v15  ;;  %v4919_v15 = vmul.f32 %v4902_v43, %v8502_v17 }
 0x4d6   :  { %v4159_v25 = vadd.f32 %v4158_v26, %v4086_v33  ;;  %v4230_v28 = vadd.f32 %v4229_v36, %v4086_v33  ;;  %v4925_v33 = vmul.f32 %v4907_v30, %v8504_v19  ;;  %v4924_v36 = vmul.f32 %v4907_v30, %v8500_v45 }
 0x4d7   :  { %v9286_v30 = vadd.f32 %v9596_v24, %v4922_v48  ;;  %v4916_v48 = vmul.f32 %v9138_v59, %v8500_v45  ;;  %v9601_v45 = vld [vmem:[#allocation13_spill] sm:$0xff] }
 0x4d8   :  { %v4236_v50 = vcombine.low %v4157_v20, %v4159_v25  ;;  %v4237_v9 = vcombine.low %v4228_v7, %v4230_v28  ;;  %v9275_v20 = vadd.f32 %v9595_v56, %v4923_v39  ;;  %v4918_v7 = vmul.f32 %v4902_v43, %v8498_v31  ;;  %v9602_v56 = vld [vmem:[#allocation14_spill] sm:$0xff] }
 0x4d9   :  { %v9283_v28 = vadd.f32 %v6800_v38, %v4925_v33  ;;  %v9598_v39 = vmov 0  ;;  %v4917_v43 = vmul.f32 %v9138_v59, %v8504_v19  ;;  %v4914_v33 = vmul.f32 %v9138_v59, %v8498_v31  ;;  %v6802_v31 = vld [vmem:[%s9542_s5 + $0x128] sm:$0xff] }
 0x4da   :  { %v4244_v23 = vrot.slane %v4236_v50, %v9159_v35  ;;  %v4251_v26 = vrot.slane %v4237_v9, %v9159_v35  ;;  %v9599_v39 = vsel %vm9291_vm4, 4294967295, %v9598_v39  ;;  %v9307_v42 = vadd.f32 %v6801_v1, %v4924_v36  ;;  %v9603_v38 = vld [vmem:[#allocation15_spill] sm:$0xff] }
 0x4db   :  { %9600 = vst [vmem:[#allocation2_spill] sm:$0xff] %v9599_v39  ;;  %v9315_v59 = vadd.f32 %v9601_v45, %v4921_v47  ;;  %v9321_v24 = vadd.f32 %v9603_v38, %v4920_v16  ;;  %v9605_v16 = vld [vmem:[#allocation17_spill] sm:$0xff] }
 0x4dc   :  { %v4252_v25 = vcombine.low %v4244_v23, %v4251_v26  ;;  %v9312_v26 = vadd.f32 %v6802_v31, %v4919_v15 }
 0x4dd   :  { %v4466_v50 = vpop.f32.mrf.mxu0  ;;  %v4537_v9 = vpop.f32.mrf.mxu1 }
 0x4de   :  { %v4259_v32 = vrot.slane %v4252_v25, %v9159_v35  ;;  %v4467_v17 = vadd.f32 %v4466_v50, %v9162_v8  ;;  %v4538_v55 = vadd.f32 %v4537_v9, %v9162_v8  ;;  %v9318_v25 = vadd.f32 %v9602_v56, %v4918_v7 }
 0x4df   :  { %v4468_v23 = vpop.f32.mrf.mxu0  ;;  %v4539_v19 = vpop.f32.mrf.mxu1  ;;  %v9337_v50 = vadd.f32 %v9604_v27, %v4915_v18  ;;  %v9340_v9 = vadd.f32 %v9605_v16, %v4917_v43 }
 0x4e0   :  { %4265 = vst.msk [vmem:[%s9544_s11] sm:$0xf] %vm9291_vm4, %v4259_v32  ;;  %v9329_v36 = vrot.slane %v4467_v17, %v7284_v29  ;;  %v9332_v15 = vrot.slane %v4538_v55, %v7284_v29  ;;  %v4469_v47 = vadd.f32 %v4468_v23, %v9162_v8  ;;  %v4540_v7 = vadd.f32 %v4539_v19, %v9162_v8  ;;  %v6803_v32 = vld [vmem:[%s9542_s5 + $0x100] sm:$0xff] }
 0x4e1   :  { %v9345_v1 = vadd.f32 %v6803_v32, %v4914_v33  ;;  %v9606_v17 = vld [vmem:[#allocation18_spill] sm:$0xff] }
 0x4e2   :  { %v9348_v31 = vadd.f32 %v9606_v17, %v4916_v48  ;;  %v9351_v55 = vrot.slane %v4469_v47, %v7284_v29  ;;  %v9354_v8 = vrot.slane %v4540_v7, %v7284_v29  ;;  %v4634_v18 = vmul.f32 %v9329_v36, %v9136_v21 }
 0x4e3   :  { %v4636_v43 = vmul.f32 %v9332_v15, %v9136_v21  ;;  %v4630_v23 = vmul.f32 %v9329_v36, %v9140_v22  ;;  %v4632_v33 = vmul.f32 %v9332_v15, %v9140_v22  ;;  %v4626_v48 = vmul.f32 %v9329_v36, %v9144_v51 }
 0x4e4   :  { %v4628_v19 = vmul.f32 %v9332_v15, %v9144_v51  ;;  %v4635_v45 = vmul.f32 %v9351_v55, %v9136_v21  ;;  %v4637_v56 = vmul.f32 %v9354_v8, %v9136_v21  ;;  %v4682_v38 = vadd.f32 %v9182_v61, %v4634_v18 }
 0x4e5   :  { %v4684_v47 = vadd.f32 %v9187_v46, %v4636_v43  ;;  %v4631_v7 = vmul.f32 %v9351_v55, %v9140_v22  ;;  %v4633_v27 = vmul.f32 %v9354_v8, %v9140_v22  ;;  %v4678_v16 = vadd.f32 %v9203_v13, %v4630_v23 }
 0x4e6   :  { %v4680_v32 = vadd.f32 %v9208_v62, %v4632_v33  ;;  %v4683_v17 = vadd.f32 %v9169_v0, %v4635_v45  ;;  %v4685_v39 = vadd.f32 %v9177_v57, %v4637_v56  ;;  %vm4698_vm5 = vcmp.gt.f32.partialorder %v4682_v38, 0.0 }
 0x4e7   :  { %v4714_v21 = vmul.f32 0.01, %v4682_v38  ;;  %vm4700_vm6 = vcmp.gt.f32.partialorder %v4684_v47, 0.0  ;;  %v4716_v61 = vmul.f32 0.01, %v4684_v47  ;;  %v4679_v46 = vadd.f32 %v9193_v63, %v4631_v7 }
 0x4e8   :  { %v4681_v18 = vadd.f32 %v9198_v4, %v4633_v27  ;;  %vm4699_vm7 = vcmp.gt.f32.partialorder %v4683_v17, 0.0  ;;  %v4715_v43 = vmul.f32 0.01, %v4683_v17  ;;  %vm4701_vm8 = vcmp.gt.f32.partialorder %v4685_v39, 0.0 }
 0x4e9   :  { %v4717_v22 = vmul.f32 0.01, %v4685_v39  ;;  %v4730_v35 = vsel %vm4698_vm5, %v4682_v38, %v4714_v21  ;;  %v4732_v13 = vsel %vm4700_vm6, %v4684_v47, %v4716_v61  ;;  %vm4695_vm9 = vcmp.gt.f32.partialorder %v4679_v46, 0.0  ;;  %v9394_v61 = vpop.permute.xlu1 %4991 }
 0x4ea   :  { %v4711_v62 = vmul.f32 0.01, %v4679_v46  ;;  %v4731_v23 = vsel %vm4699_vm7, %v4683_v17, %v4715_v43  ;;  %vm4697_vm10 = vcmp.gt.f32.partialorder %v4681_v18, 0.0  ;;  %v4713_v57 = vmul.f32 0.01, %v4681_v18 }
 0x4eb   :  { %v4733_v0 = vsel %vm4701_vm8, %v4685_v39, %v4717_v22  ;;  %4772 = vmatprep.subr.mxu0 %v4731_v23  ;;  %vm4694_vm11 = vcmp.gt.f32.partialorder %v4678_v16, 0.0  ;;  %v4710_v45 = vmul.f32 0.01, %v4678_v16  ;;  %vm4696_vm12 = vcmp.gt.f32.partialorder %v4680_v32, 0.0 }
 0x4ec   :  { %4843 = vmatprep.subr.mxu1 %v4733_v0  ;;  %v4727_v33 = vsel %vm4695_vm9, %v4679_v46, %v4711_v62  ;;  %4773 = vmatpush1.msra.mxu0 %v4730_v35  ;;  %v4729_v63 = vsel %vm4697_vm10, %v4681_v18, %v4713_v57  ;;  %v4712_v4 = vmul.f32 0.01, %v4680_v32  ;;  %v4627_v56 = vmul.f32 %v9351_v55, %v9144_v51 }
 0x4ed   :  { %4844 = vmatpush1.msra.mxu1 %v4732_v13  ;;  %v4629_v38 = vmul.f32 %v9354_v8, %v9144_v51  ;;  %4774 = vmatprep.subr.mxu0 %v4727_v33  ;;  %v4726_v39 = vsel %vm4694_vm11, %v4678_v16, %v4710_v45  ;;  %v4674_v47 = vadd.f32 %v9222_v2, %v4626_v48  ;;  %v4942_v57 = vpop.permute.xlu1 %4941 }
 0x4ee   :  { %4845 = vmatprep.subr.mxu1 %v4729_v63  ;;  %v4676_v7 = vadd.f32 %v9225_v10, %v4628_v19  ;;  %4775 = vmatpush1.msra.mxu0 %v4726_v39  ;;  %v4728_v27 = vsel %vm4696_vm12, %v4680_v32, %v4712_v4  ;;  %v4675_v35 = vadd.f32 %v9213_v40, %v4627_v56 }
 0x4ef   :  { %v4677_v17 = vadd.f32 %v9219_v52, %v4629_v38  ;;  %v4623_v21 = vmul.f32 %v9351_v55, %v9128_v6  ;;  %4846 = vmatpush1.msra.mxu1 %v4728_v27  ;;  %vm4690_vm13 = vcmp.gt.f32.partialorder %v4674_v47, 0.0  ;;  %v4706_v51 = vmul.f32 0.01, %v4674_v47 }
 0x4f0   :  { %vm4692_vm14 = vcmp.gt.f32.partialorder %v4676_v7, 0.0  ;;  %v4708_v16 = vmul.f32 0.01, %v4676_v7  ;;  %vm4691_vm15 = vcmp.gt.f32.partialorder %v4675_v35, 0.0  ;;  %v4707_v2 = vmul.f32 0.01, %v4675_v35 }
 0x4f1   :  { %vm4693_vm1 = vcmp.gt.f32.partialorder %v4677_v17, 0.0  ;;  %v4709_v10 = vmul.f32 0.01, %v4677_v17  ;;  %v4722_v48 = vsel %vm4690_vm13, %v4674_v47, %v4706_v51  ;;  %v4671_v40 = vadd.f32 %v9230_v54, %v4623_v21  ;;  %v4937_v51 = vpop.permute.xlu1 %4936 }
 0x4f2   :  { %v4724_v19 = vsel %vm4692_vm14, %v4676_v7, %v4708_v16  ;;  %v4625_v52 = vmul.f32 %v9354_v8, %v9128_v6  ;;  %v4723_v32 = vsel %vm4691_vm15, %v4675_v35, %v4707_v2  ;;  %v4622_v18 = vmul.f32 %v9329_v36, %v9128_v6 }
 0x4f3   :  { %v4725_v46 = vsel %vm4693_vm1, %v4677_v17, %v4709_v10  ;;  %v4624_v43 = vmul.f32 %v9332_v15, %v9128_v6  ;;  %4776 = vmatprep.subr.mxu0 %v4723_v32  ;;  %vm4687_vm2 = vcmp.gt.f32.partialorder %v4671_v40, 0.0  ;;  %v4703_v22 = vmul.f32 0.01, %v4671_v40 }
 0x4f4   :  { %4847 = vmatprep.subr.mxu1 %v4725_v46  ;;  %v4673_v13 = vadd.f32 %v9239_v60, %v4625_v52  ;;  %v4967_v54 = vmul.f32 %v9132_v53, %v9351_v55  ;;  %4777 = vmatpush1.msra.mxu0 %v4722_v48  ;;  %v4670_v62 = vadd.f32 %v9244_v5, %v4622_v18  ;;  %v6145_v5 = vld [vmem:[%s9543_s9 + $0x1] sm:$0x1] }
 0x4f5   :  { %4848 = vmatpush1.msra.mxu1 %v4724_v19  ;;  %v4672_v23 = vadd.f32 %v9249_v58, %v4624_v43  ;;  %v4969_v0 = vmul.f32 %v9132_v53, %v9354_v8  ;;  %v4719_v6 = vsel %vm4687_vm2, %v4671_v40, %v4703_v22  ;;  %v4966_v56 = vmul.f32 %v9132_v53, %v9329_v36 }
 0x4f6   :  { %vm4689_vm3 = vcmp.gt.f32.partialorder %v4673_v13, 0.0  ;;  %v4705_v33 = vmul.f32 0.01, %v4673_v13  ;;  %v9411_v45 = vadd.f32 %v9257_v14, %v4967_v54  ;;  %4778 = vmatprep.subr.mxu0 %v4719_v6  ;;  %vm4686_vm5 = vcmp.gt.f32.partialorder %v4670_v62, 0.0 }
 0x4f7   :  { %v4702_v60 = vmul.f32 0.01, %v4670_v62  ;;  %vm4688_vm6 = vcmp.gt.f32.partialorder %v4672_v23, 0.0  ;;  %v4704_v63 = vmul.f32 0.01, %v4672_v23  ;;  %v9417_v58 = vadd.f32 %v9262_v3, %v4969_v0 }
 0x4f8   :  { %v4721_v4 = vsel %vm4689_vm3, %v4673_v13, %v4705_v33  ;;  %v4968_v14 = vmul.f32 %v9132_v53, %v9332_v15  ;;  %v4963_v47 = vmul.f32 %v9134_v37, %v9351_v55  ;;  %v4965_v7 = vmul.f32 %v9134_v37, %v9354_v8 }
 0x4f9   :  { %4849 = vmatprep.subr.mxu1 %v4721_v4  ;;  %v4718_v38 = vsel %vm4686_vm5, %v4670_v62, %v4702_v60  ;;  %v4720_v39 = vsel %vm4688_vm6, %v4672_v23, %v4704_v63  ;;  %v5070_v3 = vadd.f32 %v9265_v44, %v4966_v56  ;;  %v4962_v35 = vmul.f32 %v9134_v37, %v9329_v36 }
 0x4fa   :  { %4779 = vmatpush1.msra.mxu0 %v4718_v38  ;;  %4850 = vmatpush1.msra.mxu1 %v4720_v39  ;;  %v5072_v27 = vadd.f32 %v9268_v11, %v4968_v14  ;;  %v5067_v53 = vadd.f32 %v9275_v20, %v4963_v47  ;;  %v5069_v17 = vadd.f32 %v9283_v28, %v4965_v7 }
 0x4fb   :  { %6147 = vmatmul.mubr.msk.f32.vlgmr.msra.gmra.mxu0 %vm3323_vm0, %v6145_v5  ;;  %6148 = vmatmul.mubr.msk.f32.vlgmr.msra.gmra.mxu1 %vm3323_vm0, %v6145_v5  ;;  %v4964_v21 = vmul.f32 %v9134_v37, %v9332_v15  ;;  %v5066_v16 = vadd.f32 %v9286_v30, %v4962_v35  ;;  %v4959_v44 = vmul.f32 %v4942_v57, %v9351_v55 }
 0x4fc   :  { %v4961_v11 = vmul.f32 %v4942_v57, %v9354_v8  ;;  %v4958_v2 = vmul.f32 %v4942_v57, %v9329_v36  ;;  %5216 = vmatprep.mubr.f32.mxu0 %v9584_v34  ;;  %v4960_v20 = vmul.f32 %v4942_v57, %v9332_v15  ;;  %v4955_v28 = vmul.f32 %v4937_v51, %v9351_v55 }
 0x4fd   :  { %v5068_v10 = vadd.f32 %v9307_v42, %v4964_v21  ;;  %v4957_v48 = vmul.f32 %v4937_v51, %v9354_v8  ;;  %5287 = vmatprep.mubr.f32.mxu1 %v9584_v34  ;;  %v9448_v37 = vadd.f32 %v9312_v26, %v4959_v44  ;;  %v4954_v40 = vmul.f32 %v4937_v51, %v9329_v36 }
 0x4fe   :  { %v9451_v30 = vadd.f32 %v9315_v59, %v4961_v11  ;;  %v9454_v19 = vadd.f32 %v9318_v25, %v4958_v2  ;;  %v9458_v42 = vadd.f32 %v9321_v24, %v4960_v20  ;;  %v9461_v55 = vadd.f32 %v9337_v50, %v4955_v28  ;;  %v4977_v2 = vpop.permute.xlu1 %4976 }
 0x4ff   :  { %v9464_v8 = vadd.f32 %v9340_v9, %v4957_v48  ;;  %v4956_v34 = vmul.f32 %v4937_v51, %v9332_v15  ;;  %v9468_v26 = vadd.f32 %v9345_v1, %v4954_v40  ;;  %v4744_v25 = vrot.slane %v9148_v41, %v7284_v29 }
 0x501   :  { %v9471_v59 = vadd.f32 %v9348_v31, %v4956_v34 }
 0x5bb   :  { %v4814_v36 = vpop.f32.mrf.mxu0  ;;  %v4885_v24 = vpop.f32.mrf.mxu1 }
 0x5bc   :  { %v4815_v52 = vadd.f32 %v4814_v36, %v4744_v25  ;;  %v4886_v32 = vadd.f32 %v4885_v24, %v4744_v25 }
 0x5bd   :  { %v4816_v50 = vpop.f32.mrf.mxu0  ;;  %v4887_v46 = vpop.f32.mrf.mxu1 }
 0x5be   :  { %v9476_v9 = vrot.slane %v4815_v52, %v7284_v29  ;;  %v9479_v15 = vrot.slane %v4886_v32, %v7284_v29  ;;  %v4817_v1 = vadd.f32 %v4816_v50, %v4744_v25  ;;  %v4888_v18 = vadd.f32 %v4887_v46, %v4744_v25 }
 0x5c0   :  { %v5001_v31 = vrot.slane %v4817_v1, %v7284_v29  ;;  %v9483_v43 = vrot.slane %v4888_v18, %v7284_v29  ;;  %v5022_v41 = vmul.f32 %v9476_v9, %v9394_v61  ;;  %v5024_v22 = vmul.f32 %v9479_v15, %v9394_v61 }
 0x5c1   :  { %v5018_v13 = vmul.f32 %v9476_v9, %v9142_v12  ;;  %v5020_v54 = vmul.f32 %v9479_v15, %v9142_v12  ;;  %v5014_v62 = vmul.f32 %v9476_v9, %v9146_v49  ;;  %v5016_v23 = vmul.f32 %v9479_v15, %v9146_v49 }
 0x5c2   :  { %v5023_v0 = vmul.f32 %v5001_v31, %v9394_v61  ;;  %v5025_v57 = vmul.f32 %v9483_v43, %v9394_v61  ;;  %v5086_v6 = vadd.f32 %v5070_v3, %v5022_v41  ;;  %v5088_v33 = vadd.f32 %v5072_v27, %v5024_v22 }
 0x5c3   :  { %v5019_v60 = vmul.f32 %v5001_v31, %v9142_v12  ;;  %v5021_v63 = vmul.f32 %v9483_v43, %v9142_v12  ;;  %v5082_v4 = vadd.f32 %v5066_v16, %v5018_v13  ;;  %v5084_v5 = vadd.f32 %v5068_v10, %v5020_v54  ;;  %v6177_v54 = vld [vmem:[%s9543_s9 + $0x2] sm:$0x1] }
 0x5c4   :  { %v5087_v56 = vadd.f32 %v9411_v45, %v5023_v0  ;;  %v5089_v14 = vadd.f32 %v9417_v58, %v5025_v57  ;;  %vm5102_vm7 = vcmp.gt.f32.partialorder %v5086_v6, 0.0  ;;  %v5118_v38 = vmul.f32 0.01, %v5086_v6 }
 0x5c5   :  { %vm5104_vm8 = vcmp.gt.f32.partialorder %v5088_v33, 0.0  ;;  %v5120_v39 = vmul.f32 0.01, %v5088_v33  ;;  %v5083_v47 = vadd.f32 %v5067_v53, %v5019_v60  ;;  %v5085_v7 = vadd.f32 %v5069_v17, %v5021_v63 }
 0x5c6   :  { %vm5103_vm9 = vcmp.gt.f32.partialorder %v5087_v56, 0.0  ;;  %v5119_v61 = vmul.f32 0.01, %v5087_v56  ;;  %vm5105_vm10 = vcmp.gt.f32.partialorder %v5089_v14, 0.0  ;;  %v5121_v3 = vmul.f32 0.01, %v5089_v14 }
 0x5c7   :  { %v5134_v27 = vsel %vm5102_vm7, %v5086_v6, %v5118_v38  ;;  %v5136_v35 = vsel %vm5104_vm8, %v5088_v33, %v5120_v39  ;;  %vm5099_vm11 = vcmp.gt.f32.partialorder %v5083_v47, 0.0  ;;  %v5115_v12 = vmul.f32 0.01, %v5083_v47 }
 0x5c8   :  { %v5135_v21 = vsel %vm5103_vm9, %v5087_v56, %v5119_v61  ;;  %v5137_v51 = vsel %vm5105_vm10, %v5089_v14, %v5121_v3  ;;  %vm5101_vm12 = vcmp.gt.f32.partialorder %v5085_v7, 0.0  ;;  %v5117_v45 = vmul.f32 0.01, %v5085_v7  ;;  %v9607_v14 = vld [vmem:[#allocation3_spill] sm:$0xff] }
 0x5c9   :  { %5176 = vmatprep.subr.mxu0 %v5135_v21  ;;  %5247 = vmatprep.subr.mxu1 %v5137_v51  ;;  %v5131_v58 = vsel %vm5099_vm11, %v5083_v47, %v5115_v12  ;;  %vm5098_vm13 = vcmp.gt.f32.partialorder %v5082_v4, 0.0  ;;  %v5114_v16 = vmul.f32 0.01, %v5082_v4  ;;  %vm5100_vm14 = vcmp.gt.f32.partialorder %v5084_v5, 0.0 }
 0x5ca   :  { %5177 = vmatpush1.msra.mxu0 %v5134_v27  ;;  %5248 = vmatpush1.msra.mxu1 %v5136_v35  ;;  %v5133_v53 = vsel %vm5101_vm12, %v5085_v7, %v5117_v45  ;;  %v5116_v17 = vmul.f32 0.01, %v5084_v5  ;;  %v5015_v44 = vmul.f32 %v5001_v31, %v9146_v49  ;;  %v5017_v11 = vmul.f32 %v9483_v43, %v9146_v49 }
 0x5cb   :  { %5178 = vmatprep.subr.mxu0 %v5131_v58  ;;  %5249 = vmatprep.subr.mxu1 %v5133_v53  ;;  %v5130_v10 = vsel %vm5098_vm13, %v5082_v4, %v5114_v16  ;;  %v5078_v20 = vadd.f32 %v9454_v19, %v5014_v62  ;;  %v5080_v28 = vadd.f32 %v9458_v42, %v5016_v23 }
 0x5cc   :  { %5179 = vmatpush1.msra.mxu0 %v5130_v10  ;;  %v5132_v48 = vsel %vm5100_vm14, %v5084_v5, %v5116_v17  ;;  %v5079_v40 = vadd.f32 %v9448_v37, %v5015_v44  ;;  %v5081_v34 = vadd.f32 %v9451_v30, %v5017_v11  ;;  %v5011_v25 = vmul.f32 %v5001_v31, %v4977_v2 }
 0x5cd   :  { %5250 = vmatpush1.msra.mxu1 %v5132_v48  ;;  %vm5094_vm15 = vcmp.gt.f32.partialorder %v5078_v20, 0.0  ;;  %v5110_v36 = vmul.f32 0.01, %v5078_v20  ;;  %vm5096_vm1 = vcmp.gt.f32.partialorder %v5080_v28, 0.0  ;;  %v5112_v49 = vmul.f32 0.01, %v5080_v28 }
 0x5ce   :  { %vm5095_vm2 = vcmp.gt.f32.partialorder %v5079_v40, 0.0  ;;  %v5111_v24 = vmul.f32 0.01, %v5079_v40  ;;  %vm5097_vm3 = vcmp.gt.f32.partialorder %v5081_v34, 0.0  ;;  %v5113_v52 = vmul.f32 0.01, %v5081_v34 }
 0x5cf   :  { %v5126_v32 = vsel %vm5094_vm15, %v5078_v20, %v5110_v36  ;;  %v5075_v19 = vadd.f32 %v9461_v55, %v5011_v25  ;;  %v5013_v42 = vmul.f32 %v9483_v43, %v4977_v2  ;;  %v5010_v37 = vmul.f32 %v9476_v9, %v4977_v2 }
 0x5d0   :  { %v5127_v50 = vsel %vm5095_vm2, %v5079_v40, %v5111_v24  ;;  %v5129_v46 = vsel %vm5097_vm3, %v5081_v34, %v5113_v52  ;;  %v5012_v30 = vmul.f32 %v9479_v15, %v4977_v2  ;;  %v5128_v1 = vsel %vm5096_vm1, %v5080_v28, %v5112_v49 }
 0x5d1   :  { %5180 = vmatprep.subr.mxu0 %v5127_v50  ;;  %5251 = vmatprep.subr.mxu1 %v5129_v46  ;;  %vm5091_vm5 = vcmp.gt.f32.partialorder %v5075_v19, 0.0  ;;  %v5107_v18 = vmul.f32 0.01, %v5075_v19  ;;  %v5077_v31 = vadd.f32 %v9464_v8, %v5013_v42  ;;  %v5074_v41 = vadd.f32 %v9468_v26, %v5010_v37  ;;  %v5143_v26 = vpop.permute.xlu1 %5142 }
 0x5d2   :  { %5181 = vmatpush1.msra.mxu0 %v5126_v32  ;;  %5252 = vmatpush1.msra.mxu1 %v5128_v1  ;;  %v5076_v55 = vadd.f32 %v9471_v59, %v5012_v30  ;;  %v5148_v0 = vrot.slane %v5143_v26, %v7284_v29 }
 0x5d3   :  { %v5123_v43 = vsel %vm5091_vm5, %v5075_v19, %v5107_v18  ;;  %vm5093_vm6 = vcmp.gt.f32.partialorder %v5077_v31, 0.0  ;;  %v5109_v22 = vmul.f32 0.01, %v5077_v31  ;;  %vm5090_vm7 = vcmp.gt.f32.partialorder %v5074_v41, 0.0 }
 0x5d4   :  { %5182 = vmatprep.subr.mxu0 %v5123_v43  ;;  %v5106_v9 = vmul.f32 0.01, %v5074_v41  ;;  %vm5092_vm8 = vcmp.gt.f32.partialorder %v5076_v55, 0.0  ;;  %v5108_v15 = vmul.f32 0.01, %v5076_v55 }
 0x5d5   :  { %v5125_v13 = vsel %vm5093_vm6, %v5077_v31, %v5109_v22 }
 0x5d6   :  { %5253 = vmatprep.subr.mxu1 %v5125_v13  ;;  %v5122_v8 = vsel %vm5090_vm7, %v5074_v41, %v5106_v9  ;;  %v5124_v62 = vsel %vm5092_vm8, %v5076_v55, %v5108_v15 }
 0x5d7   :  { %5183 = vmatpush1.msra.mxu0 %v5122_v8  ;;  %5254 = vmatpush1.msra.mxu1 %v5124_v62 }
 0x5d8   :  { %6179 = vmatmul.mubr.msk.f32.vlgmr.msra.gmra.mxu0 %vm3323_vm0, %v6177_v54  ;;  %6180 = vmatmul.mubr.msk.f32.vlgmr.msra.gmra.mxu1 %vm3323_vm0, %v6177_v54 }
 0x698   :  { %v5218_v59 = vpop.f32.mrf.mxu0  ;;  %v5289_v23 = vpop.f32.mrf.mxu1 }
 0x699   :  { %v5219_v33 = vadd.f32 %v5218_v59, %v5148_v0  ;;  %v5290_v60 = vadd.f32 %v5289_v23, %v5148_v0 }
 0x69a   :  { %v5220_v57 = vpop.f32.mrf.mxu0  ;;  %v5291_v6 = vpop.f32.mrf.mxu1 }
 0x69b   :  { %v5221_v63 = vadd.f32 %v5220_v57, %v5148_v0  ;;  %v5292_v4 = vadd.f32 %v5291_v6, %v5148_v0 }
 0x69d   :  { %v5298_v5 = vcombine.low %v5219_v33, %v5221_v63  ;;  %v5299_v56 = vcombine.low %v5290_v60, %v5292_v4 }
 0x69f   :  { %v5306_v38 = vrot.slane %v5298_v5, %v9607_v14  ;;  %v5313_v39 = vrot.slane %v5299_v56, %v9607_v14 }
 0x6a1   :  { %v5314_v47 = vcombine.low %v5306_v38, %v5313_v39 }
 0x6a3   :  { %v5321_v7 = vrot.slane %v5314_v47, %v9607_v14 }
 0x6a5   :  { %6181 = vst.msk [vmem:[%s9544_s11 + $0x4] sm:$0xf] %vm9291_vm4, %v5321_v7 }

</bundles_post_ra>
